<compile_context>
chip_gen: v7x
topology: tpu7x:2x2x1
jax: 0.10.0
libtpu: 0.0.40
codegen_flags: <defaults>
</compile_context>

<pallas_src>
import functools
import math

import jax
import jax.numpy as jnp
from jax.experimental import pallas as pl
from jax.experimental.pallas import tpu as pltpu

_EPS = 1e-5
_ROW_TILE_CAP = 256   # v6e/v7x-friendly row tile; small M uses a single full block
_LANE = 128


def _round_up(x, m):
    return (x + m - 1) // m * m


def _row_tiling(m):
    """Row tile: whole extent when small (no padding), else 256-row tiles."""
    if m <= _ROW_TILE_CAP:
        return m, m
    return _ROW_TILE_CAP, _round_up(m, _ROW_TILE_CAP)


def _col_tiling(n):
    """Channel tile: full extent when <=128 (no padding), else 128-lane tiles."""
    if n <= _LANE:
        return n, n
    return _LANE, _round_up(n, _LANE)


# ----------------------- Pallas kernels -----------------------

def _conv_kernel(a_ref, b_ref, y_ref, s_ref, q_ref):
    # y = A @ B (bf16 operands, f32 accumulate); also emit per-channel sum / sumsq
    y = jnp.dot(a_ref[...], b_ref[...], preferred_element_type=jnp.float32)
    y_ref[...] = y
    s_ref[...] = jnp.sum(y, axis=0, keepdims=True).reshape(s_ref.shape)
    q_ref[...] = jnp.sum(y * y, axis=0, keepdims=True).reshape(q_ref.shape)


def _conv_res_kernel(a_ref, b_ref, r_ref, y_ref, s_ref, q_ref):
    # conv + fused residual add (equal-in-out blocks)
    y = jnp.dot(a_ref[...], b_ref[...], preferred_element_type=jnp.float32)
    y = y + r_ref[...]
    y_ref[...] = y
    s_ref[...] = jnp.sum(y, axis=0, keepdims=True).reshape(s_ref.shape)
    q_ref[...] = jnp.sum(y * y, axis=0, keepdims=True).reshape(q_ref.shape)


def _conv_scconv_kernel(a_ref, b_ref, asc_ref, bsc_ref, y_ref, s_ref, q_ref):
    # conv + fused 1x1 shortcut conv (non-equal-in-out blocks)
    y = jnp.dot(a_ref[...], b_ref[...], preferred_element_type=jnp.float32)
    y = y + jnp.dot(asc_ref[...], bsc_ref[...], preferred_element_type=jnp.float32)
    y_ref[...] = y
    s_ref[...] = jnp.sum(y, axis=0, keepdims=True).reshape(s_ref.shape)
    q_ref[...] = jnp.sum(y * y, axis=0, keepdims=True).reshape(q_ref.shape)


def _bn_relu_kernel(x_ref, sc_ref, sh_ref, o_ref):
    # f32 elementwise math (v5e-safe), bf16 output for the next conv's MXU operand
    o_ref[...] = jnp.maximum(x_ref[...] * sc_ref[...] + sh_ref[...], 0.0).astype(o_ref.dtype)


def _bn_relu_pool_kernel(x_ref, sc_ref, sh_ref, o_ref):
    y = jnp.maximum(x_ref[...] * sc_ref[...] + sh_ref[...], 0.0)
    o_ref[...] = jnp.sum(y, axis=1) * (1.0 / x_ref.shape[1])


# ----------------------- kernel wrappers -----------------------

def _fused_matmul(a, b, extra=None, *, mode):
    """a: [M, K] bf16, b: [K, O] bf16.

    mode: "plain" | "res" (extra = residual [M, O] f32)
                  | "scconv" (extra = (a_sc [M, Ksc] bf16, b_sc [Ksc, O] bf16))
    Returns y [M, O] f32 and per-output-channel (sum, sumsq) over rows.
    """
    M, K = a.shape
    O = b.shape[1]
    TM, Mp = _row_tiling(M)
    TN, Op = _col_tiling(O)
    Kp = _round_up(K, 16)
    if (Mp, Kp) != (M, K):
        a = jnp.pad(a, ((0, Mp - M), (0, Kp - K)))
    if (Kp, Op) != (K, O):
        b = jnp.pad(b, ((0, Kp - K), (0, Op - O)))
    mt, nt = Mp // TM, Op // TN

    a_spec = pl.BlockSpec((TM, Kp), lambda i, j: (i, 0))
    b_spec = pl.BlockSpec((Kp, TN), lambda i, j: (0, j))
    y_spec = pl.BlockSpec((TM, TN), lambda i, j: (i, j))
    st_spec = pl.BlockSpec((1, 1, TN), lambda i, j: (i, 0, j))
    out_shape = (jax.ShapeDtypeStruct((Mp, Op), jnp.float32),
                 jax.ShapeDtypeStruct((mt, 1, Op), jnp.float32),
                 jax.ShapeDtypeStruct((mt, 1, Op), jnp.float32))

    if mode == "plain":
        kernel = _conv_kernel
        in_specs = [a_spec, b_spec]
        args = (a, b)
    elif mode == "res":
        r = extra
        if r.shape != (Mp, Op):
            r = jnp.pad(r, ((0, Mp - r.shape[0]), (0, Op - r.shape[1])))
        kernel = _conv_res_kernel
        in_specs = [a_spec, b_spec, pl.BlockSpec((TM, TN), lambda i, j: (i, j))]
        args = (a, b, r)
    elif mode == "scconv":
        asc, bsc = extra
        Ksc = asc.shape[1]
        Kscp = _round_up(Ksc, 16)
        if asc.shape != (Mp, Kscp):
            asc = jnp.pad(asc, ((0, Mp - asc.shape[0]), (0, Kscp - Ksc)))
        if bsc.shape != (Kscp, Op):
            bsc = jnp.pad(bsc, ((0, Kscp - bsc.shape[0]), (0, Op - bsc.shape[1])))
        kernel = _conv_scconv_kernel
        in_specs = [a_spec, b_spec,
                    pl.BlockSpec((TM, Kscp), lambda i, j: (i, 0)),
                    pl.BlockSpec((Kscp, TN), lambda i, j: (0, j))]
        args = (a, b, asc, bsc)
    else:
        raise ValueError(mode)

    y, s, q = pl.pallas_call(
        kernel,
        out_shape=out_shape,
        grid=(mt, nt),
        in_specs=in_specs,
        out_specs=(y_spec, st_spec, st_spec),
        compiler_params=pltpu.CompilerParams(
            dimension_semantics=("parallel", "parallel")),
    )(*args)

    ch_sum = jnp.sum(s.reshape(mt, Op), axis=0)
    ch_sq = jnp.sum(q.reshape(mt, Op), axis=0)
    if Op != O:
        ch_sum, ch_sq = ch_sum[:O], ch_sq[:O]
    if (Mp, Op) != (M, O):
        y = y[:M, :O]
    return y, ch_sum, ch_sq


def _bn_relu_apply(x2d, scale, shift, out_dtype=jnp.bfloat16):
    """relu(x * scale + shift) per channel; bf16 output feeds the next conv."""
    M, C = x2d.shape
    TM, Mp = _row_tiling(M)
    TN, Cp = _col_tiling(C)
    x = x2d if (Mp, Cp) == (M, C) else jnp.pad(x2d, ((0, Mp - M), (0, Cp - C)))
    sc = scale.reshape(1, C)
    sh = shift.reshape(1, C)
    if Cp != C:
        sc = jnp.pad(sc, ((0, 0), (0, Cp - C)))
        sh = jnp.pad(sh, ((0, 0), (0, Cp - C)))
    out = pl.pallas_call(
        _bn_relu_kernel,
        out_shape=jax.ShapeDtypeStruct((Mp, Cp), out_dtype),
        grid=(Mp // TM, Cp // TN),
        in_specs=[pl.BlockSpec((TM, TN), lambda i, j: (i, j)),
                  pl.BlockSpec((1, TN), lambda i, j: (0, j)),
                  pl.BlockSpec((1, TN), lambda i, j: (0, j))],
        out_specs=pl.BlockSpec((TM, TN), lambda i, j: (i, j)),
        compiler_params=pltpu.CompilerParams(
            dimension_semantics=("parallel", "parallel")),
    )(x, sc, sh)
    if (Mp, Cp) != (M, C):
        out = out[:M, :C]
    return out


def bn_relu_global_pool(x_nhwc, ch_sum, ch_sq, gamma, beta):
    """Final bn1 + ReLU + F.avg_pool2d(out, out.size(3)) -> [N, C]."""
    N, H, W, C = x_nhwc.shape
    M = N * H * W
    scale, shift = _bn_scale_shift(ch_sum, ch_sq, M, gamma, beta)
    TN, Cp = _col_tiling(C)
    x3 = x_nhwc.reshape(N, H * W, C).astype(jnp.float32)
    sc = scale.reshape(1, 1, C)
    sh = shift.reshape(1, 1, C)
    if Cp != C:
        x3 = jnp.pad(x3, ((0, 0), (0, 0), (0, Cp - C)))
        sc = jnp.pad(sc, ((0, 0), (0, 0), (0, Cp - C)))
        sh = jnp.pad(sh, ((0, 0), (0, 0), (0, Cp - C)))
    out = pl.pallas_call(
        _bn_relu_pool_kernel,
        out_shape=jax.ShapeDtypeStruct((N, Cp), jnp.float32),
        grid=(Cp // TN,),
        in_specs=[pl.BlockSpec((N, H * W, TN), lambda j: (0, 0, j)),
                  pl.BlockSpec((1, 1, TN), lambda j: (0, 0, j)),
                  pl.BlockSpec((1, 1, TN), lambda j: (0, 0, j))],
        out_specs=pl.BlockSpec((N, TN), lambda j: (0, j)),
        compiler_params=pltpu.CompilerParams(dimension_semantics=("parallel",)),
    )(x3, sc, sh)
    return out[:, :C] if Cp != C else out


# ----------------------- model glue -----------------------

def _bn_scale_shift(ch_sum, ch_sq, count, gamma, beta):
    # training-mode BatchNorm2d (biased variance), folded into scale/shift
    mean = ch_sum / count
    var = jnp.maximum(ch_sq / count - mean * mean, 0.0)
    scale = gamma / jnp.sqrt(var + _EPS)
    shift = beta - mean * scale
    return scale, shift


def _im2col3x3(x_nhwc, stride):
    # TODO(synk): could be folded into the conv grid (9-tap axis) to avoid
    # materializing the 9*C-wide patch tensor; kept in glue for robustness.
    N, H, W, C = x_nhwc.shape
    Ho = (H + 2 - 3) // stride + 1
    Wo = (W + 2 - 3) // stride + 1
    xp = jnp.pad(x_nhwc, ((0, 0), (1, 1), (1, 1), (0, 0)))
    cols = []
    for di in range(3):
        for dj in range(3):
            cols.append(xp[:, di:di + stride * (Ho - 1) + 1:stride,
                           dj:dj + stride * (Wo - 1) + 1:stride, :])
    patches = jnp.concatenate(cols, axis=-1).reshape(N * Ho * Wo, 9 * C)
    return patches, Ho, Wo


def conv3x3_fused(x_nhwc_bf16, w_oihw, stride, *, residual=None, shortcut=None):
    """3x3 conv (pad=1) on bf16 NHWC input; optionally fuses a residual add or a
    1x1 shortcut conv; always emits the output's per-channel sum / sumsq."""
    N, H, W, C = x_nhwc_bf16.shape
    O = w_oihw.shape[0]
    patches, Ho, Wo = _im2col3x3(x_nhwc_bf16, stride)
    wm = jnp.transpose(w_oihw, (2, 3, 1, 0)).reshape(9 * C, O).astype(jnp.bfloat16)
    if residual is not None:
        y, s, q = _fused_matmul(patches, wm,
                                residual.reshape(-1, O).astype(jnp.float32),
                                mode="res")
    elif shortcut is not None:
        a_sc, w_sc = shortcut                                   # a_sc: [M, Cin] bf16
        wsc = w_sc.reshape(O, -1).T.astype(jnp.bfloat16)        # [Cin, O]
        y, s, q = _fused_matmul(patches, wm, (a_sc, wsc), mode="scconv")
    else:
        y, s, q = _fused_matmul(patches, wm, mode="plain")
    return y.reshape(N, Ho, Wo, O), s, q


def basic_block(x_nhwc, x_stats, p, stride, equal_in_out):
    N, H, W, C = x_nhwc.shape
    Mx = N * H * W
    s1, sh1 = _bn_scale_shift(x_stats[0], x_stats[1], Mx, p["bn1_gamma"], p["bn1_beta"])
    a1 = _bn_relu_apply(x_nhwc.reshape(Mx, C), s1, sh1).reshape(N, H, W, C)   # bf16

    h1, hs, hq = conv3x3_fused(a1, p["conv1_w"], stride)      # conv1 + stats for bn2
    # TODO(synk): nn.Dropout path (dropRate > 0) not implemented; default dropRate=0.0.
    Nh, Ho, Wo, O = h1.shape
    Mh = Nh * Ho * Wo
    s2, sh2 = _bn_scale_shift(hs, hq, Mh, p["bn2_gamma"], p["bn2_beta"])
    a2 = _bn_relu_apply(h1.reshape(Mh, O), s2, sh2).reshape(Nh, Ho, Wo, O)    # bf16

    if equal_in_out:
        # shortcut = raw block input, fused into conv2 as a residual add
        y, ys, yq = conv3x3_fused(a2, p["conv2_w"], 1,
                                  residual=x_nhwc.reshape(-1, O))
    else:
        # shortcut = 1x1 conv of relu(bn1(x)), fused into conv2 as a second matmul
        a1_sc = a1[:, ::stride, ::stride, :].reshape(Mh, C)
        y, ys, yq = conv3x3_fused(a2, p["conv2_w"], 1,
                                  shortcut=(a1_sc, p["conv_sc_w"]))
    return y, (ys, yq)


def init_params(key, depth=10, widen_factor=2):
    assert (depth - 4) % 6 == 0
    n = (depth - 4) // 6
    nch = [16, 16 * widen_factor, 32 * widen_factor, 64 * widen_factor]
    keys = iter(jax.random.split(key, 256))

    def conv_w(o, i, k):
        std = math.sqrt(2.0 / (k * k * o))   # matches m.weight.data.normal_(0, sqrt(2/n))
        return std * jax.random.normal(next(keys), (o, i, k, k), jnp.float32)

    params = {"conv1_w": conv_w(nch[0], 3, 3), "blocks": []}
    strides = [2, 2, 2]                      # isCifar=False -> block1 stride 2
    in_planes = nch[0]
    for b in range(3):
        out_planes = nch[b + 1]
        layers = []
        for i in range(n):
            ip = in_planes if i == 0 else out_planes
            st = strides[b] if i == 0 else 1
            equal = ip == out_planes
            lp = {
                "bn1_gamma": jnp.ones((ip,), jnp.float32),
                "bn1_beta": jnp.zeros((ip,), jnp.float32),
                "conv1_w": conv_w(out_planes, ip, 3),
                "bn2_gamma": jnp.ones((out_planes,), jnp.float32),
                "bn2_beta": jnp.zeros((out_planes,), jnp.float32),
                "conv2_w": conv_w(out_planes, out_planes, 3),
                "stride": st,
                "equal": equal,
            }
            if not equal:
                lp["conv_sc_w"] = conv_w(out_planes, ip, 1)
            layers.append(lp)
        params["blocks"].append(layers)
        in_planes = out_planes
    params["bn_final_gamma"] = jnp.ones((nch[3],), jnp.float32)
    params["bn_final_beta"] = jnp.zeros((nch[3],), jnp.float32)
    params["out_dim"] = nch[3]
    return params


def wide_resnet_forward(params, x_nchw):
    x = jnp.transpose(x_nchw, (0, 2, 3, 1)).astype(jnp.bfloat16)  # NCHW -> NHWC, MXU dtype
    out, s, q = conv3x3_fused(x, params["conv1_w"], 1)            # conv1 + stats for bn1
    stats = (s, q)
    for layers in params["blocks"]:
        for lp in layers:
            out, stats = basic_block(out, stats, lp, lp["stride"], lp["equal"])
    feats = bn_relu_global_pool(out, stats[0], stats[1],
                                params["bn_final_gamma"], params["bn_final_beta"])
    return feats


if __name__ == "__main__":
    key = jax.random.PRNGKey(0)
    pkey, xkey = jax.random.split(key)
    params = init_params(pkey, depth=10, widen_factor=2)
    x = jax.random.normal(xkey, (2, 3, 16, 16), jnp.float32)      # NCHW like PyTorch
    fwd = jax.jit(functools.partial(wide_resnet_forward, params))
    feats = fwd(x)
    jax.block_until_ready(feats)
    assert feats.shape == (2, params["out_dim"]) and feats.dtype == jnp.float32
    print("KERNEL_OK")
</pallas_src>

<mosaic_0001>
module attributes {stable_mosaic.version = 11 : i64} {
  func.func @_conv_kernel(%arg0: i32, %arg1: i32, %arg2: memref<256x32xbf16, #tpu.memory_space<vmem>>, %arg3: memref<32x16xbf16, #tpu.memory_space<vmem>>, %arg4: memref<256x16xf32, #tpu.memory_space<vmem>>, %arg5: memref<1x1x16xf32, #tpu.memory_space<vmem>>, %arg6: memref<1x1x16xf32, #tpu.memory_space<vmem>>) attributes {dimension_semantics = [#tpu.dimension_semantics<parallel>, #tpu.dimension_semantics<parallel>], iteration_bounds = array<i64: 2, 1>, scalar_prefetch = 0 : i64, scratch_operands = 0 : i64, tpu.core_type = #tpu.core_type<tc>, window_params = [{transform_indices = @transform_0, window_bounds = array<i64: 256, 32>}, {transform_indices = @transform_1, window_bounds = array<i64: 32, 16>}, {transform_indices = @transform_2, window_bounds = array<i64: 256, 16>}, {transform_indices = @transform_3, window_bounds = array<i64: 1, 1, 16>}, {transform_indices = @transform_4, window_bounds = array<i64: 1, 1, 16>}]} {
    %c0 = arith.constant 0 : index
    %c0_0 = arith.constant 0 : index
    %0 = vector.load %arg2[%c0, %c0_0] : memref<256x32xbf16, #tpu.memory_space<vmem>>, vector<256x32xbf16>
    %c0_1 = arith.constant 0 : index
    %c0_2 = arith.constant 0 : index
    %1 = vector.load %arg3[%c0_1, %c0_2] : memref<32x16xbf16, #tpu.memory_space<vmem>>, vector<32x16xbf16>
    %cst = arith.constant dense<0.000000e+00> : vector<256x16xf32>
    %2 = tpu.matmul %0, %1, %cst {dimension_numbers = #tpu.dot_dimension_numbers<[1], [0], [0], [1], [0, 0, 1, 1], [], []>} : vector<256x32xbf16>, vector<32x16xbf16>, vector<256x16xf32> -> vector<256x16xf32>
    %c0_3 = arith.constant 0 : index
    %c0_4 = arith.constant 0 : index
    %3 = vector.load %arg4[%c0_3, %c0_4] : memref<256x16xf32, #tpu.memory_space<vmem>>, vector<256x16xf32>
    tpu.vector_store %arg4[%c0_3, %c0_4], %2 {strides = array<i32>} : memref<256x16xf32, #tpu.memory_space<vmem>>, vector<256x16xf32>,
    %cst_5 = arith.constant dense<0.000000e+00> : vector<16xf32>
    %4 = vector.multi_reduction <add>, %2, %cst_5 [0] : vector<256x16xf32> to vector<16xf32>
    %5 = vector.shape_cast %4 : vector<16xf32> to vector<1x16xf32>
    %6 = vector.shape_cast %5 : vector<1x16xf32> to vector<1x1x16xf32>
    %c0_6 = arith.constant 0 : index
    %c0_7 = arith.constant 0 : index
    %c0_8 = arith.constant 0 : index
    %7 = vector.load %arg5[%c0_6, %c0_7, %c0_8] : memref<1x1x16xf32, #tpu.memory_space<vmem>>, vector<1x1x16xf32>
    tpu.vector_store %arg5[%c0_6, %c0_7, %c0_8], %6 {strides = array<i32>} : memref<1x1x16xf32, #tpu.memory_space<vmem>>, vector<1x1x16xf32>,
    %8 = arith.mulf %2, %2 : vector<256x16xf32>
    %cst_9 = arith.constant dense<0.000000e+00> : vector<16xf32>
    %9 = vector.multi_reduction <add>, %8, %cst_9 [0] : vector<256x16xf32> to vector<16xf32>
    %10 = vector.shape_cast %9 : vector<16xf32> to vector<1x16xf32>
    %11 = vector.shape_cast %10 : vector<1x16xf32> to vector<1x1x16xf32>
    %c0_10 = arith.constant 0 : index
    %c0_11 = arith.constant 0 : index
    %c0_12 = arith.constant 0 : index
    %12 = vector.load %arg6[%c0_10, %c0_11, %c0_12] : memref<1x1x16xf32, #tpu.memory_space<vmem>>, vector<1x1x16xf32>
    tpu.vector_store %arg6[%c0_10, %c0_11, %c0_12], %11 {strides = array<i32>} : memref<1x1x16xf32, #tpu.memory_space<vmem>>, vector<1x1x16xf32>,
    return
  }
  func.func @transform_0(%arg0: i32, %arg1: i32) -> (i32, i32) {
    %c0_i32 = arith.constant 0 : i32
    %c0_i32_0 = arith.constant 0 : i32
    return %arg0, %c0_i32 : i32, i32
  }
  func.func @transform_1(%arg0: i32, %arg1: i32) -> (i32, i32) {
    %c0_i32 = arith.constant 0 : i32
    %c0_i32_0 = arith.constant 0 : i32
    return %c0_i32, %arg1 : i32, i32
  }
  func.func @transform_2(%arg0: i32, %arg1: i32) -> (i32, i32) {
    %c0_i32 = arith.constant 0 : i32
    return %arg0, %arg1 : i32, i32
  }
  func.func @transform_3(%arg0: i32, %arg1: i32) -> (i32, i32, i32) {
    %c0_i32 = arith.constant 0 : i32
    %c0_i32_0 = arith.constant 0 : i32
    return %arg0, %c0_i32, %arg1 : i32, i32, i32
  }
  func.func @transform_4(%arg0: i32, %arg1: i32) -> (i32, i32, i32) {
    %c0_i32 = arith.constant 0 : i32
    %c0_i32_0 = arith.constant 0 : i32
    return %arg0, %c0_i32, %arg1 : i32, i32, i32
  }
}

module attributes {stable_mosaic.version = 11 : i64} {
  func.func @_bn_relu_kernel(%arg0: i32, %arg1: i32, %arg2: memref<256x16xf32, #tpu.memory_space<vmem>>, %arg3: memref<1x16xf32, #tpu.memory_space<vmem>>, %arg4: memref<1x16xf32, #tpu.memory_space<vmem>>, %arg5: memref<256x16xbf16, #tpu.memory_space<vmem>>) attributes {dimension_semantics = [#tpu.dimension_semantics<parallel>, #tpu.dimension_semantics<parallel>], iteration_bounds = array<i64: 2, 1>, scalar_prefetch = 0 : i64, scratch_operands = 0 : i64, tpu.core_type = #tpu.core_type<tc>, window_params = [{transform_indices = @transform_0, window_bounds = array<i64: 256, 16>}, {transform_indices = @transform_1, window_bounds = array<i64: 1, 16>}, {transform_indices = @transform_2, window_bounds = array<i64: 1, 16>}, {transform_indices = @transform_3, window_bounds = array<i64: 256, 16>}]} {
    %c0 = arith.constant 0 : index
    %c0_0 = arith.constant 0 : index
    %0 = vector.load %arg2[%c0, %c0_0] : memref<256x16xf32, #tpu.memory_space<vmem>>, vector<256x16xf32>
    %c0_1 = arith.constant 0 : index
    %c0_2 = arith.constant 0 : index
    %1 = vector.load %arg3[%c0_1, %c0_2] : memref<1x16xf32, #tpu.memory_space<vmem>>, vector<1x16xf32>
    %2 = vector.broadcast %1 : vector<1x16xf32> to vector<256x16xf32>
    %3 = arith.mulf %0, %2 : vector<256x16xf32>
    %c0_3 = arith.constant 0 : index
    %c0_4 = arith.constant 0 : index
    %4 = vector.load %arg4[%c0_3, %c0_4] : memref<1x16xf32, #tpu.memory_space<vmem>>, vector<1x16xf32>
    %5 = vector.broadcast %4 : vector<1x16xf32> to vector<256x16xf32>
    %6 = arith.addf %3, %5 : vector<256x16xf32>
    %cst = arith.constant 0.000000e+00 : f32
    %7 = vector.broadcast %cst : f32 to vector<256x16xf32>
    %8 = arith.maximumf %6, %7 : vector<256x16xf32>
    %9 = arith.truncf %8 : vector<256x16xf32> to vector<256x16xbf16>
    %c0_5 = arith.constant 0 : index
    %c0_6 = arith.constant 0 : index
    %10 = vector.load %arg5[%c0_5, %c0_6] : memref<256x16xbf16, #tpu.memory_space<vmem>>, vector<256x16xbf16>
    tpu.vector_store %arg5[%c0_5, %c0_6], %9 {strides = array<i32>} : memref<256x16xbf16, #tpu.memory_space<vmem>>, vector<256x16xbf16>,
    return
  }
  func.func @transform_0(%arg0: i32, %arg1: i32) -> (i32, i32) {
    %c0_i32 = arith.constant 0 : i32
    return %arg0, %arg1 : i32, i32
  }
  func.func @transform_1(%arg0: i32, %arg1: i32) -> (i32, i32) {
    %c0_i32 = arith.constant 0 : i32
    %c0_i32_0 = arith.constant 0 : i32
    return %c0_i32, %arg1 : i32, i32
  }
  func.func @transform_2(%arg0: i32, %arg1: i32) -> (i32, i32) {
    %c0_i32 = arith.constant 0 : i32
    %c0_i32_0 = arith.constant 0 : i32
    return %c0_i32, %arg1 : i32, i32
  }
  func.func @transform_3(%arg0: i32, %arg1: i32) -> (i32, i32) {
    %c0_i32 = arith.constant 0 : i32
    return %arg0, %arg1 : i32, i32
  }
}

module attributes {stable_mosaic.version = 11 : i64} {
  func.func @_bn_relu_kernel(%arg0: i32, %arg1: i32, %arg2: memref<128x32xf32, #tpu.memory_space<vmem>>, %arg3: memref<1x32xf32, #tpu.memory_space<vmem>>, %arg4: memref<1x32xf32, #tpu.memory_space<vmem>>, %arg5: memref<128x32xbf16, #tpu.memory_space<vmem>>) attributes {dimension_semantics = [#tpu.dimension_semantics<parallel>, #tpu.dimension_semantics<parallel>], iteration_bounds = array<i64: 1, 1>, scalar_prefetch = 0 : i64, scratch_operands = 0 : i64, tpu.core_type = #tpu.core_type<tc>, window_params = [{transform_indices = @transform_0, window_bounds = array<i64: 128, 32>}, {transform_indices = @transform_1, window_bounds = array<i64: 1, 32>}, {transform_indices = @transform_2, window_bounds = array<i64: 1, 32>}, {transform_indices = @transform_3, window_bounds = array<i64: 128, 32>}]} {
    %c0 = arith.constant 0 : index
    %c0_0 = arith.constant 0 : index
    %0 = vector.load %arg2[%c0, %c0_0] : memref<128x32xf32, #tpu.memory_space<vmem>>, vector<128x32xf32>
    %c0_1 = arith.constant 0 : index
    %c0_2 = arith.constant 0 : index
    %1 = vector.load %arg3[%c0_1, %c0_2] : memref<1x32xf32, #tpu.memory_space<vmem>>, vector<1x32xf32>
    %2 = vector.broadcast %1 : vector<1x32xf32> to vector<128x32xf32>
    %3 = arith.mulf %0, %2 : vector<128x32xf32>
    %c0_3 = arith.constant 0 : index
    %c0_4 = arith.constant 0 : index
    %4 = vector.load %arg4[%c0_3, %c0_4] : memref<1x32xf32, #tpu.memory_space<vmem>>, vector<1x32xf32>
    %5 = vector.broadcast %4 : vector<1x32xf32> to vector<128x32xf32>
    %6 = arith.addf %3, %5 : vector<128x32xf32>
    %cst = arith.constant 0.000000e+00 : f32
    %7 = vector.broadcast %cst : f32 to vector<128x32xf32>
    %8 = arith.maximumf %6, %7 : vector<128x32xf32>
    %9 = arith.truncf %8 : vector<128x32xf32> to vector<128x32xbf16>
    %c0_5 = arith.constant 0 : index
    %c0_6 = arith.constant 0 : index
    %10 = vector.load %arg5[%c0_5, %c0_6] : memref<128x32xbf16, #tpu.memory_space<vmem>>, vector<128x32xbf16>
    tpu.vector_store %arg5[%c0_5, %c0_6], %9 {strides = array<i32>} : memref<128x32xbf16, #tpu.memory_space<vmem>>, vector<128x32xbf16>,
    return
  }
  func.func @transform_0(%arg0: i32, %arg1: i32) -> (i32, i32) {
    %c0_i32 = arith.constant 0 : i32
    return %arg0, %arg1 : i32, i32
  }
  func.func @transform_1(%arg0: i32, %arg1: i32) -> (i32, i32) {
    %c0_i32 = arith.constant 0 : i32
    %c0_i32_0 = arith.constant 0 : i32
    return %c0_i32, %arg1 : i32, i32
  }
  func.func @transform_2(%arg0: i32, %arg1: i32) -> (i32, i32) {
    %c0_i32 = arith.constant 0 : i32
    %c0_i32_0 = arith.constant 0 : i32
    return %c0_i32, %arg1 : i32, i32
  }
  func.func @transform_3(%arg0: i32, %arg1: i32) -> (i32, i32) {
    %c0_i32 = arith.constant 0 : i32
    return %arg0, %arg1 : i32, i32
  }
}

module attributes {stable_mosaic.version = 11 : i64} {
  func.func @_conv_kernel(%arg0: i32, %arg1: i32, %arg2: memref<128x144xbf16, #tpu.memory_space<vmem>>, %arg3: memref<144x32xbf16, #tpu.memory_space<vmem>>, %arg4: memref<128x32xf32, #tpu.memory_space<vmem>>, %arg5: memref<1x1x32xf32, #tpu.memory_space<vmem>>, %arg6: memref<1x1x32xf32, #tpu.memory_space<vmem>>) attributes {dimension_semantics = [#tpu.dimension_semantics<parallel>, #tpu.dimension_semantics<parallel>], iteration_bounds = array<i64: 1, 1>, scalar_prefetch = 0 : i64, scratch_operands = 0 : i64, tpu.core_type = #tpu.core_type<tc>, window_params = [{transform_indices = @transform_0, window_bounds = array<i64: 128, 144>}, {transform_indices = @transform_1, window_bounds = array<i64: 144, 32>}, {transform_indices = @transform_2, window_bounds = array<i64: 128, 32>}, {transform_indices = @transform_3, window_bounds = array<i64: 1, 1, 32>}, {transform_indices = @transform_4, window_bounds = array<i64: 1, 1, 32>}]} {
    %c0 = arith.constant 0 : index
    %c0_0 = arith.constant 0 : index
    %0 = vector.load %arg2[%c0, %c0_0] : memref<128x144xbf16, #tpu.memory_space<vmem>>, vector<128x144xbf16>
    %c0_1 = arith.constant 0 : index
    %c0_2 = arith.constant 0 : index
    %1 = vector.load %arg3[%c0_1, %c0_2] : memref<144x32xbf16, #tpu.memory_space<vmem>>, vector<144x32xbf16>
    %cst = arith.constant dense<0.000000e+00> : vector<128x32xf32>
    %2 = tpu.matmul %0, %1, %cst {dimension_numbers = #tpu.dot_dimension_numbers<[1], [0], [0], [1], [0, 0, 1, 1], [], []>} : vector<128x144xbf16>, vector<144x32xbf16>, vector<128x32xf32> -> vector<128x32xf32>
    %c0_3 = arith.constant 0 : index
    %c0_4 = arith.constant 0 : index
    %3 = vector.load %arg4[%c0_3, %c0_4] : memref<128x32xf32, #tpu.memory_space<vmem>>, vector<128x32xf32>
    tpu.vector_store %arg4[%c0_3, %c0_4], %2 {strides = array<i32>} : memref<128x32xf32, #tpu.memory_space<vmem>>, vector<128x32xf32>,
    %cst_5 = arith.constant dense<0.000000e+00> : vector<32xf32>
    %4 = vector.multi_reduction <add>, %2, %cst_5 [0] : vector<128x32xf32> to vector<32xf32>
    %5 = vector.shape_cast %4 : vector<32xf32> to vector<1x32xf32>
    %6 = vector.shape_cast %5 : vector<1x32xf32> to vector<1x1x32xf32>
    %c0_6 = arith.constant 0 : index
    %c0_7 = arith.constant 0 : index
    %c0_8 = arith.constant 0 : index
    %7 = vector.load %arg5[%c0_6, %c0_7, %c0_8] : memref<1x1x32xf32, #tpu.memory_space<vmem>>, vector<1x1x32xf32>
    tpu.vector_store %arg5[%c0_6, %c0_7, %c0_8], %6 {strides = array<i32>} : memref<1x1x32xf32, #tpu.memory_space<vmem>>, vector<1x1x32xf32>,
    %8 = arith.mulf %2, %2 : vector<128x32xf32>
    %cst_9 = arith.constant dense<0.000000e+00> : vector<32xf32>
    %9 = vector.multi_reduction <add>, %8, %cst_9 [0] : vector<128x32xf32> to vector<32xf32>
    %10 = vector.shape_cast %9 : vector<32xf32> to vector<1x32xf32>
    %11 = vector.shape_cast %10 : vector<1x32xf32> to vector<1x1x32xf32>
    %c0_10 = arith.constant 0 : index
    %c0_11 = arith.constant 0 : index
    %c0_12 = arith.constant 0 : index
    %12 = vector.load %arg6[%c0_10, %c0_11, %c0_12] : memref<1x1x32xf32, #tpu.memory_space<vmem>>, vector<1x1x32xf32>
    tpu.vector_store %arg6[%c0_10, %c0_11, %c0_12], %11 {strides = array<i32>} : memref<1x1x32xf32, #tpu.memory_space<vmem>>, vector<1x1x32xf32>,
    return
  }
  func.func @transform_0(%arg0: i32, %arg1: i32) -> (i32, i32) {
    %c0_i32 = arith.constant 0 : i32
    %c0_i32_0 = arith.constant 0 : i32
    return %arg0, %c0_i32 : i32, i32
  }
  func.func @transform_1(%arg0: i32, %arg1: i32) -> (i32, i32) {
    %c0_i32 = arith.constant 0 : i32
    %c0_i32_0 = arith.constant 0 : i32
    return %c0_i32, %arg1 : i32, i32
  }
  func.func @transform_2(%arg0: i32, %arg1: i32) -> (i32, i32) {
    %c0_i32 = arith.constant 0 : i32
    return %arg0, %arg1 : i32, i32
  }
  func.func @transform_3(%arg0: i32, %arg1: i32) -> (i32, i32, i32) {
    %c0_i32 = arith.constant 0 : i32
    %c0_i32_0 = arith.constant 0 : i32
    return %arg0, %c0_i32, %arg1 : i32, i32, i32
  }
  func.func @transform_4(%arg0: i32, %arg1: i32) -> (i32, i32, i32) {
    %c0_i32 = arith.constant 0 : i32
    %c0_i32_0 = arith.constant 0 : i32
    return %arg0, %c0_i32, %arg1 : i32, i32, i32
  }
}

module attributes {stable_mosaic.version = 11 : i64} {
  func.func @_conv_scconv_kernel(%arg0: i32, %arg1: i32, %arg2: memref<128x288xbf16, #tpu.memory_space<vmem>>, %arg3: memref<288x32xbf16, #tpu.memory_space<vmem>>, %arg4: memref<128x16xbf16, #tpu.memory_space<vmem>>, %arg5: memref<16x32xbf16, #tpu.memory_space<vmem>>, %arg6: memref<128x32xf32, #tpu.memory_space<vmem>>, %arg7: memref<1x1x32xf32, #tpu.memory_space<vmem>>, %arg8: memref<1x1x32xf32, #tpu.memory_space<vmem>>) attributes {dimension_semantics = [#tpu.dimension_semantics<parallel>, #tpu.dimension_semantics<parallel>], iteration_bounds = array<i64: 1, 1>, scalar_prefetch = 0 : i64, scratch_operands = 0 : i64, tpu.core_type = #tpu.core_type<tc>, window_params = [{transform_indices = @transform_0, window_bounds = array<i64: 128, 288>}, {transform_indices = @transform_1, window_bounds = array<i64: 288, 32>}, {transform_indices = @transform_2, window_bounds = array<i64: 128, 16>}, {transform_indices = @transform_3, window_bounds = array<i64: 16, 32>}, {transform_indices = @transform_4, window_bounds = array<i64: 128, 32>}, {transform_indices = @transform_5, window_bounds = array<i64: 1, 1, 32>}, {transform_indices = @transform_6, window_bounds = array<i64: 1, 1, 32>}]} {
    %c0 = arith.constant 0 : index
    %c0_0 = arith.constant 0 : index
    %0 = vector.load %arg2[%c0, %c0_0] : memref<128x288xbf16, #tpu.memory_space<vmem>>, vector<128x288xbf16>
    %c0_1 = arith.constant 0 : index
    %c0_2 = arith.constant 0 : index
    %1 = vector.load %arg3[%c0_1, %c0_2] : memref<288x32xbf16, #tpu.memory_space<vmem>>, vector<288x32xbf16>
    %cst = arith.constant dense<0.000000e+00> : vector<128x32xf32>
    %2 = tpu.matmul %0, %1, %cst {dimension_numbers = #tpu.dot_dimension_numbers<[1], [0], [0], [1], [0, 0, 1, 1], [], []>} : vector<128x288xbf16>, vector<288x32xbf16>, vector<128x32xf32> -> vector<128x32xf32>
    %c0_3 = arith.constant 0 : index
    %c0_4 = arith.constant 0 : index
    %3 = vector.load %arg4[%c0_3, %c0_4] : memref<128x16xbf16, #tpu.memory_space<vmem>>, vector<128x16xbf16>
    %c0_5 = arith.constant 0 : index
    %c0_6 = arith.constant 0 : index
    %4 = vector.load %arg5[%c0_5, %c0_6] : memref<16x32xbf16, #tpu.memory_space<vmem>>, vector<16x32xbf16>
    %cst_7 = arith.constant dense<0.000000e+00> : vector<128x32xf32>
    %5 = tpu.matmul %3, %4, %cst_7 {dimension_numbers = #tpu.dot_dimension_numbers<[1], [0], [0], [1], [0, 0, 1, 1], [], []>} : vector<128x16xbf16>, vector<16x32xbf16>, vector<128x32xf32> -> vector<128x32xf32>
    %6 = arith.addf %2, %5 : vector<128x32xf32>
    %c0_8 = arith.constant 0 : index
    %c0_9 = arith.constant 0 : index
    %7 = vector.load %arg6[%c0_8, %c0_9] : memref<128x32xf32, #tpu.memory_space<vmem>>, vector<128x32xf32>
    tpu.vector_store %arg6[%c0_8, %c0_9], %6 {strides = array<i32>} : memref<128x32xf32, #tpu.memory_space<vmem>>, vector<128x32xf32>,
    %cst_10 = arith.constant dense<0.000000e+00> : vector<32xf32>
    %8 = vector.multi_reduction <add>, %6, %cst_10 [0] : vector<128x32xf32> to vector<32xf32>
    %9 = vector.shape_cast %8 : vector<32xf32> to vector<1x32xf32>
    %10 = vector.shape_cast %9 : vector<1x32xf32> to vector<1x1x32xf32>
    %c0_11 = arith.constant 0 : index
    %c0_12 = arith.constant 0 : index
    %c0_13 = arith.constant 0 : index
    %11 = vector.load %arg7[%c0_11, %c0_12, %c0_13] : memref<1x1x32xf32, #tpu.memory_space<vmem>>, vector<1x1x32xf32>
    tpu.vector_store %arg7[%c0_11, %c0_12, %c0_13], %10 {strides = array<i32>} : memref<1x1x32xf32, #tpu.memory_space<vmem>>, vector<1x1x32xf32>,
    %12 = arith.mulf %6, %6 : vector<128x32xf32>
    %cst_14 = arith.constant dense<0.000000e+00> : vector<32xf32>
    %13 = vector.multi_reduction <add>, %12, %cst_14 [0] : vector<128x32xf32> to vector<32xf32>
    %14 = vector.shape_cast %13 : vector<32xf32> to vector<1x32xf32>
    %15 = vector.shape_cast %14 : vector<1x32xf32> to vector<1x1x32xf32>
    %c0_15 = arith.constant 0 : index
    %c0_16 = arith.constant 0 : index
    %c0_17 = arith.constant 0 : index
    %16 = vector.load %arg8[%c0_15, %c0_16, %c0_17] : memref<1x1x32xf32, #tpu.memory_space<vmem>>, vector<1x1x32xf32>
    tpu.vector_store %arg8[%c0_15, %c0_16, %c0_17], %15 {strides = array<i32>} : memref<1x1x32xf32, #tpu.memory_space<vmem>>, vector<1x1x32xf32>,
    return
  }
  func.func @transform_0(%arg0: i32, %arg1: i32) -> (i32, i32) {
    %c0_i32 = arith.constant 0 : i32
    %c0_i32_0 = arith.constant 0 : i32
    return %arg0, %c0_i32 : i32, i32
  }
  func.func @transform_1(%arg0: i32, %arg1: i32) -> (i32, i32) {
    %c0_i32 = arith.constant 0 : i32
    %c0_i32_0 = arith.constant 0 : i32
    return %c0_i32, %arg1 : i32, i32
  }
  func.func @transform_2(%arg0: i32, %arg1: i32) -> (i32, i32) {
    %c0_i32 = arith.constant 0 : i32
    %c0_i32_0 = arith.constant 0 : i32
    return %arg0, %c0_i32 : i32, i32
  }
  func.func @transform_3(%arg0: i32, %arg1: i32) -> (i32, i32) {
    %c0_i32 = arith.constant 0 : i32
    %c0_i32_0 = arith.constant 0 : i32
    return %c0_i32, %arg1 : i32, i32
  }
  func.func @transform_4(%arg0: i32, %arg1: i32) -> (i32, i32) {
    %c0_i32 = arith.constant 0 : i32
    return %arg0, %arg1 : i32, i32
  }
  func.func @transform_5(%arg0: i32, %arg1: i32) -> (i32, i32, i32) {
    %c0_i32 = arith.constant 0 : i32
    %c0_i32_0 = arith.constant 0 : i32
    return %arg0, %c0_i32, %arg1 : i32, i32, i32
  }
  func.func @transform_6(%arg0: i32, %arg1: i32) -> (i32, i32, i32) {
    %c0_i32 = arith.constant 0 : i32
    %c0_i32_0 = arith.constant 0 : i32
    return %arg0, %c0_i32, %arg1 : i32, i32, i32
  }
}

module attributes {stable_mosaic.version = 11 : i64} {
  func.func @_conv_kernel(%arg0: i32, %arg1: i32, %arg2: memref<32x288xbf16, #tpu.memory_space<vmem>>, %arg3: memref<288x64xbf16, #tpu.memory_space<vmem>>, %arg4: memref<32x64xf32, #tpu.memory_space<vmem>>, %arg5: memref<1x1x64xf32, #tpu.memory_space<vmem>>, %arg6: memref<1x1x64xf32, #tpu.memory_space<vmem>>) attributes {dimension_semantics = [#tpu.dimension_semantics<parallel>, #tpu.dimension_semantics<parallel>], iteration_bounds = array<i64: 1, 1>, scalar_prefetch = 0 : i64, scratch_operands = 0 : i64, tpu.core_type = #tpu.core_type<tc>, window_params = [{transform_indices = @transform_0, window_bounds = array<i64: 32, 288>}, {transform_indices = @transform_1, window_bounds = array<i64: 288, 64>}, {transform_indices = @transform_2, window_bounds = array<i64: 32, 64>}, {transform_indices = @transform_3, window_bounds = array<i64: 1, 1, 64>}, {transform_indices = @transform_4, window_bounds = array<i64: 1, 1, 64>}]} {
    %c0 = arith.constant 0 : index
    %c0_0 = arith.constant 0 : index
    %0 = vector.load %arg2[%c0, %c0_0] : memref<32x288xbf16, #tpu.memory_space<vmem>>, vector<32x288xbf16>
    %c0_1 = arith.constant 0 : index
    %c0_2 = arith.constant 0 : index
    %1 = vector.load %arg3[%c0_1, %c0_2] : memref<288x64xbf16, #tpu.memory_space<vmem>>, vector<288x64xbf16>
    %cst = arith.constant dense<0.000000e+00> : vector<32x64xf32>
    %2 = tpu.matmul %0, %1, %cst {dimension_numbers = #tpu.dot_dimension_numbers<[1], [0], [0], [1], [0, 0, 1, 1], [], []>} : vector<32x288xbf16>, vector<288x64xbf16>, vector<32x64xf32> -> vector<32x64xf32>
    %c0_3 = arith.constant 0 : index
    %c0_4 = arith.constant 0 : index
    %3 = vector.load %arg4[%c0_3, %c0_4] : memref<32x64xf32, #tpu.memory_space<vmem>>, vector<32x64xf32>
    tpu.vector_store %arg4[%c0_3, %c0_4], %2 {strides = array<i32>} : memref<32x64xf32, #tpu.memory_space<vmem>>, vector<32x64xf32>,
    %cst_5 = arith.constant dense<0.000000e+00> : vector<64xf32>
    %4 = vector.multi_reduction <add>, %2, %cst_5 [0] : vector<32x64xf32> to vector<64xf32>
    %5 = vector.shape_cast %4 : vector<64xf32> to vector<1x64xf32>
    %6 = vector.shape_cast %5 : vector<1x64xf32> to vector<1x1x64xf32>
    %c0_6 = arith.constant 0 : index
    %c0_7 = arith.constant 0 : index
    %c0_8 = arith.constant 0 : index
    %7 = vector.load %arg5[%c0_6, %c0_7, %c0_8] : memref<1x1x64xf32, #tpu.memory_space<vmem>>, vector<1x1x64xf32>
    tpu.vector_store %arg5[%c0_6, %c0_7, %c0_8], %6 {strides = array<i32>} : memref<1x1x64xf32, #tpu.memory_space<vmem>>, vector<1x1x64xf32>,
    %8 = arith.mulf %2, %2 : vector<32x64xf32>
    %cst_9 = arith.constant dense<0.000000e+00> : vector<64xf32>
    %9 = vector.multi_reduction <add>, %8, %cst_9 [0] : vector<32x64xf32> to vector<64xf32>
    %10 = vector.shape_cast %9 : vector<64xf32> to vector<1x64xf32>
    %11 = vector.shape_cast %10 : vector<1x64xf32> to vector<1x1x64xf32>
    %c0_10 = arith.constant 0 : index
    %c0_11 = arith.constant 0 : index
    %c0_12 = arith.constant 0 : index
    %12 = vector.load %arg6[%c0_10, %c0_11, %c0_12] : memref<1x1x64xf32, #tpu.memory_space<vmem>>, vector<1x1x64xf32>
    tpu.vector_store %arg6[%c0_10, %c0_11, %c0_12], %11 {strides = array<i32>} : memref<1x1x64xf32, #tpu.memory_space<vmem>>, vector<1x1x64xf32>,
    return
  }
  func.func @transform_0(%arg0: i32, %arg1: i32) -> (i32, i32) {
    %c0_i32 = arith.constant 0 : i32
    %c0_i32_0 = arith.constant 0 : i32
    return %arg0, %c0_i32 : i32, i32
  }
  func.func @transform_1(%arg0: i32, %arg1: i32) -> (i32, i32) {
    %c0_i32 = arith.constant 0 : i32
    %c0_i32_0 = arith.constant 0 : i32
    return %c0_i32, %arg1 : i32, i32
  }
  func.func @transform_2(%arg0: i32, %arg1: i32) -> (i32, i32) {
    %c0_i32 = arith.constant 0 : i32
    return %arg0, %arg1 : i32, i32
  }
  func.func @transform_3(%arg0: i32, %arg1: i32) -> (i32, i32, i32) {
    %c0_i32 = arith.constant 0 : i32
    %c0_i32_0 = arith.constant 0 : i32
    return %arg0, %c0_i32, %arg1 : i32, i32, i32
  }
  func.func @transform_4(%arg0: i32, %arg1: i32) -> (i32, i32, i32) {
    %c0_i32 = arith.constant 0 : i32
    %c0_i32_0 = arith.constant 0 : i32
    return %arg0, %c0_i32, %arg1 : i32, i32, i32
  }
}

module attributes {stable_mosaic.version = 11 : i64} {
  func.func @_bn_relu_kernel(%arg0: i32, %arg1: i32, %arg2: memref<32x64xf32, #tpu.memory_space<vmem>>, %arg3: memref<1x64xf32, #tpu.memory_space<vmem>>, %arg4: memref<1x64xf32, #tpu.memory_space<vmem>>, %arg5: memref<32x64xbf16, #tpu.memory_space<vmem>>) attributes {dimension_semantics = [#tpu.dimension_semantics<parallel>, #tpu.dimension_semantics<parallel>], iteration_bounds = array<i64: 1, 1>, scalar_prefetch = 0 : i64, scratch_operands = 0 : i64, tpu.core_type = #tpu.core_type<tc>, window_params = [{transform_indices = @transform_0, window_bounds = array<i64: 32, 64>}, {transform_indices = @transform_1, window_bounds = array<i64: 1, 64>}, {transform_indices = @transform_2, window_bounds = array<i64: 1, 64>}, {transform_indices = @transform_3, window_bounds = array<i64: 32, 64>}]} {
    %c0 = arith.constant 0 : index
    %c0_0 = arith.constant 0 : index
    %0 = vector.load %arg2[%c0, %c0_0] : memref<32x64xf32, #tpu.memory_space<vmem>>, vector<32x64xf32>
    %c0_1 = arith.constant 0 : index
    %c0_2 = arith.constant 0 : index
    %1 = vector.load %arg3[%c0_1, %c0_2] : memref<1x64xf32, #tpu.memory_space<vmem>>, vector<1x64xf32>
    %2 = vector.broadcast %1 : vector<1x64xf32> to vector<32x64xf32>
    %3 = arith.mulf %0, %2 : vector<32x64xf32>
    %c0_3 = arith.constant 0 : index
    %c0_4 = arith.constant 0 : index
    %4 = vector.load %arg4[%c0_3, %c0_4] : memref<1x64xf32, #tpu.memory_space<vmem>>, vector<1x64xf32>
    %5 = vector.broadcast %4 : vector<1x64xf32> to vector<32x64xf32>
    %6 = arith.addf %3, %5 : vector<32x64xf32>
    %cst = arith.constant 0.000000e+00 : f32
    %7 = vector.broadcast %cst : f32 to vector<32x64xf32>
    %8 = arith.maximumf %6, %7 : vector<32x64xf32>
    %9 = arith.truncf %8 : vector<32x64xf32> to vector<32x64xbf16>
    %c0_5 = arith.constant 0 : index
    %c0_6 = arith.constant 0 : index
    %10 = vector.load %arg5[%c0_5, %c0_6] : memref<32x64xbf16, #tpu.memory_space<vmem>>, vector<32x64xbf16>
    tpu.vector_store %arg5[%c0_5, %c0_6], %9 {strides = array<i32>} : memref<32x64xbf16, #tpu.memory_space<vmem>>, vector<32x64xbf16>,
    return
  }
  func.func @transform_0(%arg0: i32, %arg1: i32) -> (i32, i32) {
    %c0_i32 = arith.constant 0 : i32
    return %arg0, %arg1 : i32, i32
  }
  func.func @transform_1(%arg0: i32, %arg1: i32) -> (i32, i32) {
    %c0_i32 = arith.constant 0 : i32
    %c0_i32_0 = arith.constant 0 : i32
    return %c0_i32, %arg1 : i32, i32
  }
  func.func @transform_2(%arg0: i32, %arg1: i32) -> (i32, i32) {
    %c0_i32 = arith.constant 0 : i32
    %c0_i32_0 = arith.constant 0 : i32
    return %c0_i32, %arg1 : i32, i32
  }
  func.func @transform_3(%arg0: i32, %arg1: i32) -> (i32, i32) {
    %c0_i32 = arith.constant 0 : i32
    return %arg0, %arg1 : i32, i32
  }
}

module attributes {stable_mosaic.version = 11 : i64} {
  func.func @_conv_scconv_kernel(%arg0: i32, %arg1: i32, %arg2: memref<32x576xbf16, #tpu.memory_space<vmem>>, %arg3: memref<576x64xbf16, #tpu.memory_space<vmem>>, %arg4: memref<32x32xbf16, #tpu.memory_space<vmem>>, %arg5: memref<32x64xbf16, #tpu.memory_space<vmem>>, %arg6: memref<32x64xf32, #tpu.memory_space<vmem>>, %arg7: memref<1x1x64xf32, #tpu.memory_space<vmem>>, %arg8: memref<1x1x64xf32, #tpu.memory_space<vmem>>) attributes {dimension_semantics = [#tpu.dimension_semantics<parallel>, #tpu.dimension_semantics<parallel>], iteration_bounds = array<i64: 1, 1>, scalar_prefetch = 0 : i64, scratch_operands = 0 : i64, tpu.core_type = #tpu.core_type<tc>, window_params = [{transform_indices = @transform_0, window_bounds = array<i64: 32, 576>}, {transform_indices = @transform_1, window_bounds = array<i64: 576, 64>}, {transform_indices = @transform_2, window_bounds = array<i64: 32, 32>}, {transform_indices = @transform_3, window_bounds = array<i64: 32, 64>}, {transform_indices = @transform_4, window_bounds = array<i64: 32, 64>}, {transform_indices = @transform_5, window_bounds = array<i64: 1, 1, 64>}, {transform_indices = @transform_6, window_bounds = array<i64: 1, 1, 64>}]} {
    %c0 = arith.constant 0 : index
    %c0_0 = arith.constant 0 : index
    %0 = vector.load %arg2[%c0, %c0_0] : memref<32x576xbf16, #tpu.memory_space<vmem>>, vector<32x576xbf16>
    %c0_1 = arith.constant 0 : index
    %c0_2 = arith.constant 0 : index
    %1 = vector.load %arg3[%c0_1, %c0_2] : memref<576x64xbf16, #tpu.memory_space<vmem>>, vector<576x64xbf16>
    %cst = arith.constant dense<0.000000e+00> : vector<32x64xf32>
    %2 = tpu.matmul %0, %1, %cst {dimension_numbers = #tpu.dot_dimension_numbers<[1], [0], [0], [1], [0, 0, 1, 1], [], []>} : vector<32x576xbf16>, vector<576x64xbf16>, vector<32x64xf32> -> vector<32x64xf32>
    %c0_3 = arith.constant 0 : index
    %c0_4 = arith.constant 0 : index
    %3 = vector.load %arg4[%c0_3, %c0_4] : memref<32x32xbf16, #tpu.memory_space<vmem>>, vector<32x32xbf16>
    %c0_5 = arith.constant 0 : index
    %c0_6 = arith.constant 0 : index
    %4 = vector.load %arg5[%c0_5, %c0_6] : memref<32x64xbf16, #tpu.memory_space<vmem>>, vector<32x64xbf16>
    %cst_7 = arith.constant dense<0.000000e+00> : vector<32x64xf32>
    %5 = tpu.matmul %3, %4, %cst_7 {dimension_numbers = #tpu.dot_dimension_numbers<[1], [0], [0], [1], [0, 0, 1, 1], [], []>} : vector<32x32xbf16>, vector<32x64xbf16>, vector<32x64xf32> -> vector<32x64xf32>
    %6 = arith.addf %2, %5 : vector<32x64xf32>
    %c0_8 = arith.constant 0 : index
    %c0_9 = arith.constant 0 : index
    %7 = vector.load %arg6[%c0_8, %c0_9] : memref<32x64xf32, #tpu.memory_space<vmem>>, vector<32x64xf32>
    tpu.vector_store %arg6[%c0_8, %c0_9], %6 {strides = array<i32>} : memref<32x64xf32, #tpu.memory_space<vmem>>, vector<32x64xf32>,
    %cst_10 = arith.constant dense<0.000000e+00> : vector<64xf32>
    %8 = vector.multi_reduction <add>, %6, %cst_10 [0] : vector<32x64xf32> to vector<64xf32>
    %9 = vector.shape_cast %8 : vector<64xf32> to vector<1x64xf32>
    %10 = vector.shape_cast %9 : vector<1x64xf32> to vector<1x1x64xf32>
    %c0_11 = arith.constant 0 : index
    %c0_12 = arith.constant 0 : index
    %c0_13 = arith.constant 0 : index
    %11 = vector.load %arg7[%c0_11, %c0_12, %c0_13] : memref<1x1x64xf32, #tpu.memory_space<vmem>>, vector<1x1x64xf32>
    tpu.vector_store %arg7[%c0_11, %c0_12, %c0_13], %10 {strides = array<i32>} : memref<1x1x64xf32, #tpu.memory_space<vmem>>, vector<1x1x64xf32>,
    %12 = arith.mulf %6, %6 : vector<32x64xf32>
    %cst_14 = arith.constant dense<0.000000e+00> : vector<64xf32>
    %13 = vector.multi_reduction <add>, %12, %cst_14 [0] : vector<32x64xf32> to vector<64xf32>
    %14 = vector.shape_cast %13 : vector<64xf32> to vector<1x64xf32>
    %15 = vector.shape_cast %14 : vector<1x64xf32> to vector<1x1x64xf32>
    %c0_15 = arith.constant 0 : index
    %c0_16 = arith.constant 0 : index
    %c0_17 = arith.constant 0 : index
    %16 = vector.load %arg8[%c0_15, %c0_16, %c0_17] : memref<1x1x64xf32, #tpu.memory_space<vmem>>, vector<1x1x64xf32>
    tpu.vector_store %arg8[%c0_15, %c0_16, %c0_17], %15 {strides = array<i32>} : memref<1x1x64xf32, #tpu.memory_space<vmem>>, vector<1x1x64xf32>,
    return
  }
  func.func @transform_0(%arg0: i32, %arg1: i32) -> (i32, i32) {
    %c0_i32 = arith.constant 0 : i32
    %c0_i32_0 = arith.constant 0 : i32
    return %arg0, %c0_i32 : i32, i32
  }
  func.func @transform_1(%arg0: i32, %arg1: i32) -> (i32, i32) {
    %c0_i32 = arith.constant 0 : i32
    %c0_i32_0 = arith.constant 0 : i32
    return %c0_i32, %arg1 : i32, i32
  }
  func.func @transform_2(%arg0: i32, %arg1: i32) -> (i32, i32) {
    %c0_i32 = arith.constant 0 : i32
    %c0_i32_0 = arith.constant 0 : i32
    return %arg0, %c0_i32 : i32, i32
  }
  func.func @transform_3(%arg0: i32, %arg1: i32) -> (i32, i32) {
    %c0_i32 = arith.constant 0 : i32
    %c0_i32_0 = arith.constant 0 : i32
    return %c0_i32, %arg1 : i32, i32
  }
  func.func @transform_4(%arg0: i32, %arg1: i32) -> (i32, i32) {
    %c0_i32 = arith.constant 0 : i32
    return %arg0, %arg1 : i32, i32
  }
  func.func @transform_5(%arg0: i32, %arg1: i32) -> (i32, i32, i32) {
    %c0_i32 = arith.constant 0 : i32
    %c0_i32_0 = arith.constant 0 : i32
    return %arg0, %c0_i32, %arg1 : i32, i32, i32
  }
  func.func @transform_6(%arg0: i32, %arg1: i32) -> (i32, i32, i32) {
    %c0_i32 = arith.constant 0 : i32
    %c0_i32_0 = arith.constant 0 : i32
    return %arg0, %c0_i32, %arg1 : i32, i32, i32
  }
}

module attributes {stable_mosaic.version = 11 : i64} {
  func.func @_bn_relu_kernel(%arg0: i32, %arg1: i32, %arg2: memref<8x128xf32, #tpu.memory_space<vmem>>, %arg3: memref<1x128xf32, #tpu.memory_space<vmem>>, %arg4: memref<1x128xf32, #tpu.memory_space<vmem>>, %arg5: memref<8x128xbf16, #tpu.memory_space<vmem>>) attributes {dimension_semantics = [#tpu.dimension_semantics<parallel>, #tpu.dimension_semantics<parallel>], iteration_bounds = array<i64: 1, 1>, scalar_prefetch = 0 : i64, scratch_operands = 0 : i64, tpu.core_type = #tpu.core_type<tc>, window_params = [{transform_indices = @transform_0, window_bounds = array<i64: 8, 128>}, {transform_indices = @transform_1, window_bounds = array<i64: 1, 128>}, {transform_indices = @transform_2, window_bounds = array<i64: 1, 128>}, {transform_indices = @transform_3, window_bounds = array<i64: 8, 128>}]} {
    %c0 = arith.constant 0 : index
    %c0_0 = arith.constant 0 : index
    %0 = vector.load %arg2[%c0, %c0_0] : memref<8x128xf32, #tpu.memory_space<vmem>>, vector<8x128xf32>
    %c0_1 = arith.constant 0 : index
    %c0_2 = arith.constant 0 : index
    %1 = vector.load %arg3[%c0_1, %c0_2] : memref<1x128xf32, #tpu.memory_space<vmem>>, vector<1x128xf32>
    %2 = vector.broadcast %1 : vector<1x128xf32> to vector<8x128xf32>
    %3 = arith.mulf %0, %2 : vector<8x128xf32>
    %c0_3 = arith.constant 0 : index
    %c0_4 = arith.constant 0 : index
    %4 = vector.load %arg4[%c0_3, %c0_4] : memref<1x128xf32, #tpu.memory_space<vmem>>, vector<1x128xf32>
    %5 = vector.broadcast %4 : vector<1x128xf32> to vector<8x128xf32>
    %6 = arith.addf %3, %5 : vector<8x128xf32>
    %cst = arith.constant 0.000000e+00 : f32
    %7 = vector.broadcast %cst : f32 to vector<8x128xf32>
    %8 = arith.maximumf %6, %7 : vector<8x128xf32>
    %9 = arith.truncf %8 : vector<8x128xf32> to vector<8x128xbf16>
    %c0_5 = arith.constant 0 : index
    %c0_6 = arith.constant 0 : index
    %10 = vector.load %arg5[%c0_5, %c0_6] : memref<8x128xbf16, #tpu.memory_space<vmem>>, vector<8x128xbf16>
    tpu.vector_store %arg5[%c0_5, %c0_6], %9 {strides = array<i32>} : memref<8x128xbf16, #tpu.memory_space<vmem>>, vector<8x128xbf16>,
    return
  }
  func.func @transform_0(%arg0: i32, %arg1: i32) -> (i32, i32) {
    %c0_i32 = arith.constant 0 : i32
    return %arg0, %arg1 : i32, i32
  }
  func.func @transform_1(%arg0: i32, %arg1: i32) -> (i32, i32) {
    %c0_i32 = arith.constant 0 : i32
    %c0_i32_0 = arith.constant 0 : i32
    return %c0_i32, %arg1 : i32, i32
  }
  func.func @transform_2(%arg0: i32, %arg1: i32) -> (i32, i32) {
    %c0_i32 = arith.constant 0 : i32
    %c0_i32_0 = arith.constant 0 : i32
    return %c0_i32, %arg1 : i32, i32
  }
  func.func @transform_3(%arg0: i32, %arg1: i32) -> (i32, i32) {
    %c0_i32 = arith.constant 0 : i32
    return %arg0, %arg1 : i32, i32
  }
}

module attributes {stable_mosaic.version = 11 : i64} {
  func.func @_conv_kernel(%arg0: i32, %arg1: i32, %arg2: memref<8x576xbf16, #tpu.memory_space<vmem>>, %arg3: memref<576x128xbf16, #tpu.memory_space<vmem>>, %arg4: memref<8x128xf32, #tpu.memory_space<vmem>>, %arg5: memref<1x1x128xf32, #tpu.memory_space<vmem>>, %arg6: memref<1x1x128xf32, #tpu.memory_space<vmem>>) attributes {dimension_semantics = [#tpu.dimension_semantics<parallel>, #tpu.dimension_semantics<parallel>], iteration_bounds = array<i64: 1, 1>, scalar_prefetch = 0 : i64, scratch_operands = 0 : i64, tpu.core_type = #tpu.core_type<tc>, window_params = [{transform_indices = @transform_0, window_bounds = array<i64: 8, 576>}, {transform_indices = @transform_1, window_bounds = array<i64: 576, 128>}, {transform_indices = @transform_2, window_bounds = array<i64: 8, 128>}, {transform_indices = @transform_3, window_bounds = array<i64: 1, 1, 128>}, {transform_indices = @transform_4, window_bounds = array<i64: 1, 1, 128>}]} {
    %c0 = arith.constant 0 : index
    %c0_0 = arith.constant 0 : index
    %0 = vector.load %arg2[%c0, %c0_0] : memref<8x576xbf16, #tpu.memory_space<vmem>>, vector<8x576xbf16>
    %c0_1 = arith.constant 0 : index
    %c0_2 = arith.constant 0 : index
    %1 = vector.load %arg3[%c0_1, %c0_2] : memref<576x128xbf16, #tpu.memory_space<vmem>>, vector<576x128xbf16>
    %cst = arith.constant dense<0.000000e+00> : vector<8x128xf32>
    %2 = tpu.matmul %0, %1, %cst {dimension_numbers = #tpu.dot_dimension_numbers<[1], [0], [0], [1], [0, 0, 1, 1], [], []>} : vector<8x576xbf16>, vector<576x128xbf16>, vector<8x128xf32> -> vector<8x128xf32>
    %c0_3 = arith.constant 0 : index
    %c0_4 = arith.constant 0 : index
    %3 = vector.load %arg4[%c0_3, %c0_4] : memref<8x128xf32, #tpu.memory_space<vmem>>, vector<8x128xf32>
    tpu.vector_store %arg4[%c0_3, %c0_4], %2 {strides = array<i32>} : memref<8x128xf32, #tpu.memory_space<vmem>>, vector<8x128xf32>,
    %cst_5 = arith.constant dense<0.000000e+00> : vector<128xf32>
    %4 = vector.multi_reduction <add>, %2, %cst_5 [0] : vector<8x128xf32> to vector<128xf32>
    %5 = vector.shape_cast %4 : vector<128xf32> to vector<1x128xf32>
    %6 = vector.shape_cast %5 : vector<1x128xf32> to vector<1x1x128xf32>
    %c0_6 = arith.constant 0 : index
    %c0_7 = arith.constant 0 : index
    %c0_8 = arith.constant 0 : index
    %7 = vector.load %arg5[%c0_6, %c0_7, %c0_8] : memref<1x1x128xf32, #tpu.memory_space<vmem>>, vector<1x1x128xf32>
    tpu.vector_store %arg5[%c0_6, %c0_7, %c0_8], %6 {strides = array<i32>} : memref<1x1x128xf32, #tpu.memory_space<vmem>>, vector<1x1x128xf32>,
    %8 = arith.mulf %2, %2 : vector<8x128xf32>
    %cst_9 = arith.constant dense<0.000000e+00> : vector<128xf32>
    %9 = vector.multi_reduction <add>, %8, %cst_9 [0] : vector<8x128xf32> to vector<128xf32>
    %10 = vector.shape_cast %9 : vector<128xf32> to vector<1x128xf32>
    %11 = vector.shape_cast %10 : vector<1x128xf32> to vector<1x1x128xf32>
    %c0_10 = arith.constant 0 : index
    %c0_11 = arith.constant 0 : index
    %c0_12 = arith.constant 0 : index
    %12 = vector.load %arg6[%c0_10, %c0_11, %c0_12] : memref<1x1x128xf32, #tpu.memory_space<vmem>>, vector<1x1x128xf32>
    tpu.vector_store %arg6[%c0_10, %c0_11, %c0_12], %11 {strides = array<i32>} : memref<1x1x128xf32, #tpu.memory_space<vmem>>, vector<1x1x128xf32>,
    return
  }
  func.func @transform_0(%arg0: i32, %arg1: i32) -> (i32, i32) {
    %c0_i32 = arith.constant 0 : i32
    %c0_i32_0 = arith.constant 0 : i32
    return %arg0, %c0_i32 : i32, i32
  }
  func.func @transform_1(%arg0: i32, %arg1: i32) -> (i32, i32) {
    %c0_i32 = arith.constant 0 : i32
    %c0_i32_0 = arith.constant 0 : i32
    return %c0_i32, %arg1 : i32, i32
  }
  func.func @transform_2(%arg0: i32, %arg1: i32) -> (i32, i32) {
    %c0_i32 = arith.constant 0 : i32
    return %arg0, %arg1 : i32, i32
  }
  func.func @transform_3(%arg0: i32, %arg1: i32) -> (i32, i32, i32) {
    %c0_i32 = arith.constant 0 : i32
    %c0_i32_0 = arith.constant 0 : i32
    return %arg0, %c0_i32, %arg1 : i32, i32, i32
  }
  func.func @transform_4(%arg0: i32, %arg1: i32) -> (i32, i32, i32) {
    %c0_i32 = arith.constant 0 : i32
    %c0_i32_0 = arith.constant 0 : i32
    return %arg0, %c0_i32, %arg1 : i32, i32, i32
  }
}

module attributes {stable_mosaic.version = 11 : i64} {
  func.func @_conv_scconv_kernel(%arg0: i32, %arg1: i32, %arg2: memref<8x1152xbf16, #tpu.memory_space<vmem>>, %arg3: memref<1152x128xbf16, #tpu.memory_space<vmem>>, %arg4: memref<8x64xbf16, #tpu.memory_space<vmem>>, %arg5: memref<64x128xbf16, #tpu.memory_space<vmem>>, %arg6: memref<8x128xf32, #tpu.memory_space<vmem>>, %arg7: memref<1x1x128xf32, #tpu.memory_space<vmem>>, %arg8: memref<1x1x128xf32, #tpu.memory_space<vmem>>) attributes {dimension_semantics = [#tpu.dimension_semantics<parallel>, #tpu.dimension_semantics<parallel>], iteration_bounds = array<i64: 1, 1>, scalar_prefetch = 0 : i64, scratch_operands = 0 : i64, tpu.core_type = #tpu.core_type<tc>, window_params = [{transform_indices = @transform_0, window_bounds = array<i64: 8, 1152>}, {transform_indices = @transform_1, window_bounds = array<i64: 1152, 128>}, {transform_indices = @transform_2, window_bounds = array<i64: 8, 64>}, {transform_indices = @transform_3, window_bounds = array<i64: 64, 128>}, {transform_indices = @transform_4, window_bounds = array<i64: 8, 128>}, {transform_indices = @transform_5, window_bounds = array<i64: 1, 1, 128>}, {transform_indices = @transform_6, window_bounds = array<i64: 1, 1, 128>}]} {
    %c0 = arith.constant 0 : index
    %c0_0 = arith.constant 0 : index
    %0 = vector.load %arg2[%c0, %c0_0] : memref<8x1152xbf16, #tpu.memory_space<vmem>>, vector<8x1152xbf16>
    %c0_1 = arith.constant 0 : index
    %c0_2 = arith.constant 0 : index
    %1 = vector.load %arg3[%c0_1, %c0_2] : memref<1152x128xbf16, #tpu.memory_space<vmem>>, vector<1152x128xbf16>
    %cst = arith.constant dense<0.000000e+00> : vector<8x128xf32>
    %2 = tpu.matmul %0, %1, %cst {dimension_numbers = #tpu.dot_dimension_numbers<[1], [0], [0], [1], [0, 0, 1, 1], [], []>} : vector<8x1152xbf16>, vector<1152x128xbf16>, vector<8x128xf32> -> vector<8x128xf32>
    %c0_3 = arith.constant 0 : index
    %c0_4 = arith.constant 0 : index
    %3 = vector.load %arg4[%c0_3, %c0_4] : memref<8x64xbf16, #tpu.memory_space<vmem>>, vector<8x64xbf16>
    %c0_5 = arith.constant 0 : index
    %c0_6 = arith.constant 0 : index
    %4 = vector.load %arg5[%c0_5, %c0_6] : memref<64x128xbf16, #tpu.memory_space<vmem>>, vector<64x128xbf16>
    %cst_7 = arith.constant dense<0.000000e+00> : vector<8x128xf32>
    %5 = tpu.matmul %3, %4, %cst_7 {dimension_numbers = #tpu.dot_dimension_numbers<[1], [0], [0], [1], [0, 0, 1, 1], [], []>} : vector<8x64xbf16>, vector<64x128xbf16>, vector<8x128xf32> -> vector<8x128xf32>
    %6 = arith.addf %2, %5 : vector<8x128xf32>
    %c0_8 = arith.constant 0 : index
    %c0_9 = arith.constant 0 : index
    %7 = vector.load %arg6[%c0_8, %c0_9] : memref<8x128xf32, #tpu.memory_space<vmem>>, vector<8x128xf32>
    tpu.vector_store %arg6[%c0_8, %c0_9], %6 {strides = array<i32>} : memref<8x128xf32, #tpu.memory_space<vmem>>, vector<8x128xf32>,
    %cst_10 = arith.constant dense<0.000000e+00> : vector<128xf32>
    %8 = vector.multi_reduction <add>, %6, %cst_10 [0] : vector<8x128xf32> to vector<128xf32>
    %9 = vector.shape_cast %8 : vector<128xf32> to vector<1x128xf32>
    %10 = vector.shape_cast %9 : vector<1x128xf32> to vector<1x1x128xf32>
    %c0_11 = arith.constant 0 : index
    %c0_12 = arith.constant 0 : index
    %c0_13 = arith.constant 0 : index
    %11 = vector.load %arg7[%c0_11, %c0_12, %c0_13] : memref<1x1x128xf32, #tpu.memory_space<vmem>>, vector<1x1x128xf32>
    tpu.vector_store %arg7[%c0_11, %c0_12, %c0_13], %10 {strides = array<i32>} : memref<1x1x128xf32, #tpu.memory_space<vmem>>, vector<1x1x128xf32>,
    %12 = arith.mulf %6, %6 : vector<8x128xf32>
    %cst_14 = arith.constant dense<0.000000e+00> : vector<128xf32>
    %13 = vector.multi_reduction <add>, %12, %cst_14 [0] : vector<8x128xf32> to vector<128xf32>
    %14 = vector.shape_cast %13 : vector<128xf32> to vector<1x128xf32>
    %15 = vector.shape_cast %14 : vector<1x128xf32> to vector<1x1x128xf32>
    %c0_15 = arith.constant 0 : index
    %c0_16 = arith.constant 0 : index
    %c0_17 = arith.constant 0 : index
    %16 = vector.load %arg8[%c0_15, %c0_16, %c0_17] : memref<1x1x128xf32, #tpu.memory_space<vmem>>, vector<1x1x128xf32>
    tpu.vector_store %arg8[%c0_15, %c0_16, %c0_17], %15 {strides = array<i32>} : memref<1x1x128xf32, #tpu.memory_space<vmem>>, vector<1x1x128xf32>,
    return
  }
  func.func @transform_0(%arg0: i32, %arg1: i32) -> (i32, i32) {
    %c0_i32 = arith.constant 0 : i32
    %c0_i32_0 = arith.constant 0 : i32
    return %arg0, %c0_i32 : i32, i32
  }
  func.func @transform_1(%arg0: i32, %arg1: i32) -> (i32, i32) {
    %c0_i32 = arith.constant 0 : i32
    %c0_i32_0 = arith.constant 0 : i32
    return %c0_i32, %arg1 : i32, i32
  }
  func.func @transform_2(%arg0: i32, %arg1: i32) -> (i32, i32) {
    %c0_i32 = arith.constant 0 : i32
    %c0_i32_0 = arith.constant 0 : i32
    return %arg0, %c0_i32 : i32, i32
  }
  func.func @transform_3(%arg0: i32, %arg1: i32) -> (i32, i32) {
    %c0_i32 = arith.constant 0 : i32
    %c0_i32_0 = arith.constant 0 : i32
    return %c0_i32, %arg1 : i32, i32
  }
  func.func @transform_4(%arg0: i32, %arg1: i32) -> (i32, i32) {
    %c0_i32 = arith.constant 0 : i32
    return %arg0, %arg1 : i32, i32
  }
  func.func @transform_5(%arg0: i32, %arg1: i32) -> (i32, i32, i32) {
    %c0_i32 = arith.constant 0 : i32
    %c0_i32_0 = arith.constant 0 : i32
    return %arg0, %c0_i32, %arg1 : i32, i32, i32
  }
  func.func @transform_6(%arg0: i32, %arg1: i32) -> (i32, i32, i32) {
    %c0_i32 = arith.constant 0 : i32
    %c0_i32_0 = arith.constant 0 : i32
    return %arg0, %c0_i32, %arg1 : i32, i32, i32
  }
}

module attributes {stable_mosaic.version = 11 : i64} {
  func.func @_bn_relu_pool_kernel(%arg0: i32, %arg1: memref<2x4x128xf32, #tpu.memory_space<vmem>>, %arg2: memref<1x1x128xf32, #tpu.memory_space<vmem>>, %arg3: memref<1x1x128xf32, #tpu.memory_space<vmem>>, %arg4: memref<2x128xf32, #tpu.memory_space<vmem>>) attributes {dimension_semantics = [#tpu.dimension_semantics<parallel>], iteration_bounds = array<i64: 1>, scalar_prefetch = 0 : i64, scratch_operands = 0 : i64, tpu.core_type = #tpu.core_type<tc>, window_params = [{transform_indices = @transform_0, window_bounds = array<i64: 2, 4, 128>}, {transform_indices = @transform_1, window_bounds = array<i64: 1, 1, 128>}, {transform_indices = @transform_2, window_bounds = array<i64: 1, 1, 128>}, {transform_indices = @transform_3, window_bounds = array<i64: 2, 128>}]} {
    %c0 = arith.constant 0 : index
    %c0_0 = arith.constant 0 : index
    %c0_1 = arith.constant 0 : index
    %0 = vector.load %arg1[%c0, %c0_0, %c0_1] : memref<2x4x128xf32, #tpu.memory_space<vmem>>, vector<2x4x128xf32>
    %c0_2 = arith.constant 0 : index
    %c0_3 = arith.constant 0 : index
    %c0_4 = arith.constant 0 : index
    %1 = vector.load %arg2[%c0_2, %c0_3, %c0_4] : memref<1x1x128xf32, #tpu.memory_space<vmem>>, vector<1x1x128xf32>
    %2 = vector.broadcast %1 : vector<1x1x128xf32> to vector<2x4x128xf32>
    %3 = arith.mulf %0, %2 : vector<2x4x128xf32>
    %c0_5 = arith.constant 0 : index
    %c0_6 = arith.constant 0 : index
    %c0_7 = arith.constant 0 : index
    %4 = vector.load %arg3[%c0_5, %c0_6, %c0_7] : memref<1x1x128xf32, #tpu.memory_space<vmem>>, vector<1x1x128xf32>
    %5 = vector.broadcast %4 : vector<1x1x128xf32> to vector<2x4x128xf32>
    %6 = arith.addf %3, %5 : vector<2x4x128xf32>
    %cst = arith.constant 0.000000e+00 : f32
    %7 = vector.broadcast %cst : f32 to vector<2x4x128xf32>
    %8 = arith.maximumf %6, %7 : vector<2x4x128xf32>
    %cst_8 = arith.constant dense<0.000000e+00> : vector<2x128xf32>
    %9 = vector.multi_reduction <add>, %8, %cst_8 [1] : vector<2x4x128xf32> to vector<2x128xf32>
    %cst_9 = arith.constant 2.500000e-01 : f32
    %10 = vector.broadcast %cst_9 : f32 to vector<2x128xf32>
    %11 = arith.mulf %9, %10 : vector<2x128xf32>
    %c0_10 = arith.constant 0 : index
    %c0_11 = arith.constant 0 : index
    %12 = vector.load %arg4[%c0_10, %c0_11] : memref<2x128xf32, #tpu.memory_space<vmem>>, vector<2x128xf32>
    tpu.vector_store %arg4[%c0_10, %c0_11], %11 {strides = array<i32>} : memref<2x128xf32, #tpu.memory_space<vmem>>, vector<2x128xf32>,
    return
  }
  func.func @transform_0(%arg0: i32) -> (i32, i32, i32) {
    %c0_i32 = arith.constant 0 : i32
    %c0_i32_0 = arith.constant 0 : i32
    %c0_i32_1 = arith.constant 0 : i32
    return %c0_i32, %c0_i32_0, %arg0 : i32, i32, i32
  }
  func.func @transform_1(%arg0: i32) -> (i32, i32, i32) {
    %c0_i32 = arith.constant 0 : i32
    %c0_i32_0 = arith.constant 0 : i32
    %c0_i32_1 = arith.constant 0 : i32
    return %c0_i32, %c0_i32_0, %arg0 : i32, i32, i32
  }
  func.func @transform_2(%arg0: i32) -> (i32, i32, i32) {
    %c0_i32 = arith.constant 0 : i32
    %c0_i32_0 = arith.constant 0 : i32
    %c0_i32_1 = arith.constant 0 : i32
    return %c0_i32, %c0_i32_0, %arg0 : i32, i32, i32
  }
  func.func @transform_3(%arg0: i32) -> (i32, i32) {
    %c0_i32 = arith.constant 0 : i32
    %c0_i32_0 = arith.constant 0 : i32
    return %c0_i32, %arg0 : i32, i32
  }
}

</mosaic_0001>

<bundles_post_ra>
// kernel: wide_resnet_forward.15
= control target key start
LH: loop header
LB: loop body
LE: loop exit
PB: predicated region body
PF: predicated region fallthrough
CT: control target
= control target key end

     0   :  { %s785_s12 = smov 0   ;;  %s787_s13 = smov 0   ;;  %s996_s0 = inlined_call_operand.vmem [shape: f32[512,16], index: 0, kind: input, shape index: {}]   ;;  %s997_s1 = inlined_call_operand.vmem [shape: f32[1,16], index: 1, kind: input, shape index: {}]   ;;  %s998_s2 = inlined_call_operand.vmem [shape: f32[1,16], index: 2, kind: input, shape index: {}]   ;;  %s999_s3 = inlined_call_operand.vmem [shape: bf16[512,16], index: 3, kind: output, shape index: {}]  }
   0x1   :  { %s789_s14 = smov 0  }
   0x2 LB: > { %s25_s15 = sadd.s32 1, %s759_s13  ;;  %p644_p0 = scmp.ge.s32.totalorder %s763_s14, 1  ;;  %s763_s14 = sphi %s789_s14, %s13_s14   ;;  %s759_s13 = sphi %s787_s13, %s1001_s13   ;;  %s755_s12 = sphi %s785_s12, %s1000_s12  }
   0x3   : > { %p27_p1 = scmp.ge.s32.totalorder %s25_s15, 2  ;;  %p173_p2 = scmp.lt.s32.totalorder %s763_s14, 3 }
   0x5   : > { %s1003_s15 = smov (%p27_p1, %s25_s15), 0  ;;  %p174_p3 = pnand %p644_p0, %p173_p2 }
   0x6   : > { %s645_s16 = sshll.u32 (!%p174_p3), %s755_s12, 5  ;;  %v809_v0 = vld [vmem:[%s997_s1] ss:$0 sm:$0xff] (!%p174_p3)  ;;  %vm503_vm0 = vcmask (!%p174_p3), 125952  }
   0x7   : > { %177 = sbr.rel (%p174_p3) target bundleno = 57 (0x39), region = 32  ;;  %p210_p4 = scmp.lt.s32.totalorder (!%p174_p3), %s645_s16, 63  ;;  %v819_v1 = vld [vmem:[%s998_s2] ss:$0 sm:$0xff] (!%p174_p3) }
   0xe   : > { %s1005_s16 = smov (!%p210_p4, %s645_s16), 63 }
   0xf   : > { %s646_s17 = sshll.u32 %s1005_s16, 3  ;;  %s648_s25 = sshll.u32 %s1005_s16, 2 }
  0x10   : > { %s814_s22 = scalar_lea.vmem %s996_s0, %s646_s17  ;;  %s848_s28 = scalar_lea.vmem %s999_s3, %s648_s25 }
  0x11   : > { %v233_v2 = vld [vmem:[%s814_s22] sm:$0xff]  ;;  %v234_v3 = vld [vmem:[%s814_s22 + $0x8] sm:$0xff]  ;;  %v235_v4 = vld [vmem:[%s814_s22 + $0x10] sm:$0xff] }
  0x12   : > { %v272_v5 = vmul.f32 %v809_v0, %v233_v2  ;;  %v273_v6 = vmul.f32 %v809_v0, %v234_v3  ;;  %v274_v7 = vmul.f32 %v809_v0, %v235_v4  ;;  %v236_v8 = vld [vmem:[%s814_s22 + $0x18] sm:$0xff]  ;;  %v237_v9 = vld [vmem:[%s814_s22 + $0x20] sm:$0xff]  ;;  %v238_v10 = vld [vmem:[%s814_s22 + $0x28] sm:$0xff] }
  0x13   : > { %v275_v11 = vmul.f32 %v809_v0, %v236_v8  ;;  %v276_v12 = vmul.f32 %v809_v0, %v237_v9  ;;  %v277_v13 = vmul.f32 %v809_v0, %v238_v10  ;;  %v239_v14 = vld [vmem:[%s814_s22 + $0x30] sm:$0xff]  ;;  %v240_v15 = vld [vmem:[%s814_s22 + $0x38] sm:$0xff]  ;;  %v241_v32 = vld [vmem:[%s814_s22 + $0x40] sm:$0xff] }
  0x14   : > { %v311_v16 = vadd.f32 %v819_v1, %v272_v5  ;;  %v312_v17 = vadd.f32 %v819_v1, %v273_v6  ;;  %v313_v18 = vadd.f32 %v819_v1, %v274_v7  ;;  %v278_v19 = vmul.f32 %v809_v0, %v239_v14  ;;  %v242_v33 = vld [vmem:[%s814_s22 + $0x48] sm:$0xff]  ;;  %v243_v34 = vld [vmem:[%s814_s22 + $0x50] sm:$0xff]  ;;  %v244_v39 = vld [vmem:[%s814_s22 + $0x58] sm:$0xff] }
  0x15   : > { %v314_v20 = vadd.f32 %v819_v1, %v275_v11  ;;  %v315_v21 = vadd.f32 %v819_v1, %v276_v12  ;;  %v316_v22 = vadd.f32 %v819_v1, %v277_v13  ;;  %v279_v23 = vmul.f32 %v809_v0, %v240_v15  ;;  %v245_v40 = vld [vmem:[%s814_s22 + $0x60] sm:$0xff]  ;;  %v246_v41 = vld [vmem:[%s814_s22 + $0x68] sm:$0xff]  ;;  %v247_v46 = vld [vmem:[%s814_s22 + $0x70] sm:$0xff] }
  0x16   : > { %v343_v24 = vmax.f32 %v311_v16, 0.0  ;;  %v344_v25 = vmax.f32 %v312_v17, 0.0  ;;  %v345_v26 = vmax.f32 %v313_v18, 0.0  ;;  %v317_v27 = vadd.f32 %v819_v1, %v278_v19  ;;  %v248_v51 = vld [vmem:[%s814_s22 + $0x78] sm:$0xff]  ;;  %v249_v10 = vld [vmem:[%s814_s22 + $0x80] sm:$0xff]  ;;  %v250_v11 = vld [vmem:[%s814_s22 + $0x88] sm:$0xff] }
  0x17   : > { %v346_v28 = vmax.f32 %v314_v20, 0.0  ;;  %v347_v29 = vmax.f32 %v315_v21, 0.0  ;;  %v348_v30 = vmax.f32 %v316_v22, 0.0  ;;  %v318_v31 = vadd.f32 %v819_v1, %v279_v23  ;;  %v251_v12 = vld [vmem:[%s814_s22 + $0x90] sm:$0xff]  ;;  %v252_v17 = vld [vmem:[%s814_s22 + $0x98] sm:$0xff]  ;;  %v253_v18 = vld [vmem:[%s814_s22 + $0xa0] sm:$0xff] }
  0x18   : > { %v685_v35 = vpack.c.bf16 %v343_v24, %v343_v24  ;;  %v686_v36 = vpack.c.bf16 %v344_v25, %v344_v25  ;;  %v687_v37 = vpack.c.bf16 %v345_v26, %v345_v26  ;;  %v349_v38 = vmax.f32 %v317_v27, 0.0  ;;  %v254_v19 = vld [vmem:[%s814_s22 + $0xa8] sm:$0xff]  ;;  %v255_v24 = vld [vmem:[%s814_s22 + $0xb0] sm:$0xff] }
  0x19   : > { %v688_v42 = vpack.c.bf16 %v346_v28, %v346_v28  ;;  %v689_v43 = vpack.c.bf16 %v347_v29, %v347_v29  ;;  %v690_v44 = vpack.c.bf16 %v348_v30, %v348_v30  ;;  %v350_v45 = vmax.f32 %v318_v31, 0.0  ;;  %v256_v29 = vld [vmem:[%s814_s22 + $0xb8] sm:$0xff] }
  0x1a   : > { %504 = vst.msk [vmem:[%s848_s28] sm:$0xf] %vm503_vm0, %v685_v35  ;;  %505 = vst.msk [vmem:[%s848_s28 + $0x4] sm:$0xf] %vm503_vm0, %v686_v36  ;;  %v691_v47 = vpack.c.bf16 %v349_v38, %v349_v38  ;;  %v280_v48 = vmul.f32 %v809_v0, %v241_v32  ;;  %v281_v49 = vmul.f32 %v809_v0, %v242_v33 }
  0x1b   : > { %506 = vst.msk [vmem:[%s848_s28 + $0x8] sm:$0xf] %vm503_vm0, %v687_v37  ;;  %v282_v50 = vmul.f32 %v809_v0, %v243_v34  ;;  %507 = vst.msk [vmem:[%s848_s28 + $0xc] sm:$0xf] %vm503_vm0, %v688_v42  ;;  %v692_v52 = vpack.c.bf16 %v350_v45, %v350_v45  ;;  %v283_v53 = vmul.f32 %v809_v0, %v244_v39 }
  0x1c   : > { %508 = vst.msk [vmem:[%s848_s28 + $0x10] sm:$0xf] %vm503_vm0, %v689_v43  ;;  %509 = vst.msk [vmem:[%s848_s28 + $0x14] sm:$0xf] %vm503_vm0, %v690_v44  ;;  %v284_v54 = vmul.f32 %v809_v0, %v245_v40  ;;  %v285_v55 = vmul.f32 %v809_v0, %v246_v41  ;;  %v319_v56 = vadd.f32 %v819_v1, %v280_v48 }
  0x1d   : > { %510 = vst.msk [vmem:[%s848_s28 + $0x18] sm:$0xf] %vm503_vm0, %v691_v47  ;;  %v320_v57 = vadd.f32 %v819_v1, %v281_v49  ;;  %v321_v58 = vadd.f32 %v819_v1, %v282_v50  ;;  %v286_v59 = vmul.f32 %v809_v0, %v247_v46  ;;  %511 = vst.msk [vmem:[%s848_s28 + $0x1c] sm:$0xf] %vm503_vm0, %v692_v52  ;;  %v257_v50 = vld [vmem:[%s814_s22 + $0xc0] sm:$0xff]  ;;  %v259_v52 = vld [vmem:[%s814_s22 + $0xd0] sm:$0xff] }
  0x1e   : > { %v322_v60 = vadd.f32 %v819_v1, %v283_v53  ;;  %v323_v61 = vadd.f32 %v819_v1, %v284_v54  ;;  %v324_v62 = vadd.f32 %v819_v1, %v285_v55  ;;  %v287_v63 = vmul.f32 %v809_v0, %v248_v51  ;;  %v258_v51 = vld [vmem:[%s814_s22 + $0xc8] sm:$0xff] }
  0x1f   : > { %v351_v2 = vmax.f32 %v319_v56, 0.0  ;;  %v352_v3 = vmax.f32 %v320_v57, 0.0  ;;  %v353_v4 = vmax.f32 %v321_v58, 0.0  ;;  %v325_v5 = vadd.f32 %v819_v1, %v286_v59  ;;  %v260_v57 = vld [vmem:[%s814_s22 + $0xd8] sm:$0xff]  ;;  %v261_v58 = vld [vmem:[%s814_s22 + $0xe0] sm:$0xff]  ;;  %v262_v59 = vld [vmem:[%s814_s22 + $0xe8] sm:$0xff] }
  0x20   : > { %v354_v6 = vmax.f32 %v322_v60, 0.0  ;;  %v355_v7 = vmax.f32 %v323_v61, 0.0  ;;  %v356_v8 = vmax.f32 %v324_v62, 0.0  ;;  %v326_v9 = vadd.f32 %v819_v1, %v287_v63 }
  0x21   : > { %v693_v13 = vpack.c.bf16 %v351_v2, %v351_v2  ;;  %v694_v14 = vpack.c.bf16 %v352_v3, %v352_v3  ;;  %v695_v15 = vpack.c.bf16 %v353_v4, %v353_v4  ;;  %v357_v16 = vmax.f32 %v325_v5, 0.0  ;;  %v263_v2 = vld [vmem:[%s814_s22 + $0xf0] sm:$0xff] }
  0x22   : > { %v696_v20 = vpack.c.bf16 %v354_v6, %v354_v6  ;;  %v697_v21 = vpack.c.bf16 %v355_v7, %v355_v7  ;;  %v698_v22 = vpack.c.bf16 %v356_v8, %v356_v8  ;;  %v358_v23 = vmax.f32 %v326_v9, 0.0  ;;  %v264_v7 = vld [vmem:[%s814_s22 + $0xf8] sm:$0xff] }
  0x23   : > { %512 = vst.msk [vmem:[%s848_s28 + $0x20] sm:$0xf] %vm503_vm0, %v693_v13  ;;  %513 = vst.msk [vmem:[%s848_s28 + $0x24] sm:$0xf] %vm503_vm0, %v694_v14  ;;  %v699_v25 = vpack.c.bf16 %v357_v16, %v357_v16  ;;  %v288_v26 = vmul.f32 %v809_v0, %v249_v10  ;;  %v289_v27 = vmul.f32 %v809_v0, %v250_v11 }
  0x24   : > { %514 = vst.msk [vmem:[%s848_s28 + $0x28] sm:$0xf] %vm503_vm0, %v695_v15  ;;  %v290_v28 = vmul.f32 %v809_v0, %v251_v12  ;;  %515 = vst.msk [vmem:[%s848_s28 + $0x2c] sm:$0xf] %vm503_vm0, %v696_v20  ;;  %v700_v30 = vpack.c.bf16 %v358_v23, %v358_v23  ;;  %v291_v31 = vmul.f32 %v809_v0, %v252_v17 }
  0x25   : > { %516 = vst.msk [vmem:[%s848_s28 + $0x30] sm:$0xf] %vm503_vm0, %v697_v21  ;;  %517 = vst.msk [vmem:[%s848_s28 + $0x34] sm:$0xf] %vm503_vm0, %v698_v22  ;;  %v292_v32 = vmul.f32 %v809_v0, %v253_v18  ;;  %v293_v33 = vmul.f32 %v809_v0, %v254_v19  ;;  %v327_v34 = vadd.f32 %v819_v1, %v288_v26 }
  0x26   : > { %518 = vst.msk [vmem:[%s848_s28 + $0x38] sm:$0xf] %vm503_vm0, %v699_v25  ;;  %v328_v35 = vadd.f32 %v819_v1, %v289_v27  ;;  %v329_v36 = vadd.f32 %v819_v1, %v290_v28  ;;  %v294_v37 = vmul.f32 %v809_v0, %v255_v24  ;;  %519 = vst.msk [vmem:[%s848_s28 + $0x3c] sm:$0xf] %vm503_vm0, %v700_v30 }
  0x27   : > { %v330_v38 = vadd.f32 %v819_v1, %v291_v31  ;;  %v331_v39 = vadd.f32 %v819_v1, %v292_v32  ;;  %v332_v40 = vadd.f32 %v819_v1, %v293_v33  ;;  %v295_v41 = vmul.f32 %v809_v0, %v256_v29 }
  0x28   : > { %v359_v42 = vmax.f32 %v327_v34, 0.0  ;;  %v360_v43 = vmax.f32 %v328_v35, 0.0  ;;  %v361_v44 = vmax.f32 %v329_v36, 0.0  ;;  %v333_v45 = vadd.f32 %v819_v1, %v294_v37 }
  0x29   : > { %v362_v46 = vmax.f32 %v330_v38, 0.0  ;;  %v363_v47 = vmax.f32 %v331_v39, 0.0  ;;  %v364_v48 = vmax.f32 %v332_v40, 0.0  ;;  %v334_v49 = vadd.f32 %v819_v1, %v295_v41 }
  0x2a   : > { %v701_v53 = vpack.c.bf16 %v359_v42, %v359_v42  ;;  %v702_v54 = vpack.c.bf16 %v360_v43, %v360_v43  ;;  %v703_v55 = vpack.c.bf16 %v361_v44, %v361_v44  ;;  %v365_v56 = vmax.f32 %v333_v45, 0.0 }
  0x2b   : > { %v704_v60 = vpack.c.bf16 %v362_v46, %v362_v46  ;;  %v705_v61 = vpack.c.bf16 %v363_v47, %v363_v47  ;;  %v706_v62 = vpack.c.bf16 %v364_v48, %v364_v48  ;;  %v366_v63 = vmax.f32 %v334_v49, 0.0 }
  0x2c   : > { %520 = vst.msk [vmem:[%s848_s28 + $0x40] sm:$0xf] %vm503_vm0, %v701_v53  ;;  %521 = vst.msk [vmem:[%s848_s28 + $0x44] sm:$0xf] %vm503_vm0, %v702_v54  ;;  %v707_v3 = vpack.c.bf16 %v365_v56, %v365_v56  ;;  %v296_v4 = vmul.f32 %v809_v0, %v257_v50  ;;  %v297_v5 = vmul.f32 %v809_v0, %v258_v51 }
  0x2d   : > { %522 = vst.msk [vmem:[%s848_s28 + $0x48] sm:$0xf] %vm503_vm0, %v703_v55  ;;  %v298_v6 = vmul.f32 %v809_v0, %v259_v52  ;;  %523 = vst.msk [vmem:[%s848_s28 + $0x4c] sm:$0xf] %vm503_vm0, %v704_v60  ;;  %v708_v8 = vpack.c.bf16 %v366_v63, %v366_v63  ;;  %v299_v9 = vmul.f32 %v809_v0, %v260_v57 }
  0x2e   : > { %524 = vst.msk [vmem:[%s848_s28 + $0x50] sm:$0xf] %vm503_vm0, %v705_v61  ;;  %525 = vst.msk [vmem:[%s848_s28 + $0x54] sm:$0xf] %vm503_vm0, %v706_v62  ;;  %v300_v10 = vmul.f32 %v809_v0, %v261_v58  ;;  %v301_v11 = vmul.f32 %v809_v0, %v262_v59  ;;  %v335_v12 = vadd.f32 %v819_v1, %v296_v4 }
  0x2f   : > { %526 = vst.msk [vmem:[%s848_s28 + $0x58] sm:$0xf] %vm503_vm0, %v707_v3  ;;  %v336_v13 = vadd.f32 %v819_v1, %v297_v5  ;;  %v337_v14 = vadd.f32 %v819_v1, %v298_v6  ;;  %v302_v15 = vmul.f32 %v809_v0, %v263_v2  ;;  %527 = vst.msk [vmem:[%s848_s28 + $0x5c] sm:$0xf] %vm503_vm0, %v708_v8 }
  0x30   : > { %v338_v16 = vadd.f32 %v819_v1, %v299_v9  ;;  %v339_v17 = vadd.f32 %v819_v1, %v300_v10  ;;  %v340_v18 = vadd.f32 %v819_v1, %v301_v11  ;;  %v303_v19 = vmul.f32 %v809_v0, %v264_v7 }
  0x31   : > { %v367_v20 = vmax.f32 %v335_v12, 0.0  ;;  %v368_v21 = vmax.f32 %v336_v13, 0.0  ;;  %v369_v22 = vmax.f32 %v337_v14, 0.0  ;;  %v341_v23 = vadd.f32 %v819_v1, %v302_v15 }
  0x32   : > { %v370_v24 = vmax.f32 %v338_v16, 0.0  ;;  %v371_v25 = vmax.f32 %v339_v17, 0.0  ;;  %v372_v26 = vmax.f32 %v340_v18, 0.0  ;;  %v342_v27 = vadd.f32 %v819_v1, %v303_v19 }
  0x33   : > { %v709_v28 = vpack.c.bf16 %v367_v20, %v367_v20  ;;  %v710_v29 = vpack.c.bf16 %v368_v21, %v368_v21  ;;  %v711_v0 = vpack.c.bf16 %v369_v22, %v369_v22  ;;  %v373_v30 = vmax.f32 %v341_v23, 0.0 }
  0x34   : > { %v712_v31 = vpack.c.bf16 %v370_v24, %v370_v24  ;;  %v713_v32 = vpack.c.bf16 %v371_v25, %v371_v25  ;;  %v714_v33 = vpack.c.bf16 %v372_v26, %v372_v26  ;;  %v374_v34 = vmax.f32 %v342_v27, 0.0 }
  0x35   : > { %528 = vst.msk [vmem:[%s848_s28 + $0x60] sm:$0xf] %vm503_vm0, %v709_v28  ;;  %529 = vst.msk [vmem:[%s848_s28 + $0x64] sm:$0xf] %vm503_vm0, %v710_v29  ;;  %v715_v35 = vpack.c.bf16 %v373_v30, %v373_v30 }
  0x36   : > { %530 = vst.msk [vmem:[%s848_s28 + $0x68] sm:$0xf] %vm503_vm0, %v711_v0  ;;  %531 = vst.msk [vmem:[%s848_s28 + $0x6c] sm:$0xf] %vm503_vm0, %v712_v31  ;;  %v716_v1 = vpack.c.bf16 %v374_v34, %v374_v34 }
  0x37   : > { %532 = vst.msk [vmem:[%s848_s28 + $0x70] sm:$0xf] %vm503_vm0, %v713_v32  ;;  %533 = vst.msk [vmem:[%s848_s28 + $0x74] sm:$0xf] %vm503_vm0, %v714_v33 }
  0x38   : > { %534 = vst.msk [vmem:[%s848_s28 + $0x78] sm:$0xf] %vm503_vm0, %v715_v35  ;;  %535 = vst.msk [vmem:[%s848_s28 + $0x7c] sm:$0xf] %vm503_vm0, %v716_v1 }
  0x39 PF: > { %s13_s14 = sadd.s32 1, %s763_s14   ;;  %s1000_s12 = smov %s759_s13 }
  0x3a   : > { %p10_p5 = scmp.ge.s32.totalorder %s13_s14, 4   ;;  %s1001_s13 = smov %s1003_s15 }
  0x3c   :  { %12 = sbr.rel (!%p10_p5) target bundleno = 2 (0x2), region = 68 }

// kernel: wide_resnet_forward.14
= control target key start
LH: loop header
LB: loop body
LE: loop exit
PB: predicated region body
PF: predicated region fallthrough
CT: control target
= control target key end

     0   :  { %s1171_s15 = smov 0   ;;  %s1173_s16 = smov 0   ;;  %s1488_s0 = inlined_call_operand.vmem [shape: bf16[512,32], index: 0, kind: input, shape index: {}]   ;;  %s1489_s1 = inlined_call_operand.vmem [shape: bf16[32,16], index: 1, kind: input, shape index: {}]   ;;  %s1490_s2 = inlined_call_operand.vmem [shape: f32[512,16], index: 2, kind: output, shape index: {0}]   ;;  %s1491_s3 = inlined_call_operand.vmem [shape: f32[2,1,16], index: 3, kind: output, shape index: {1}]   ;;  %s1492_s4 = inlined_call_operand.vmem [shape: f32[2,1,16], index: 4, kind: output, shape index: {2}]  }
   0x1   :  { %s1175_s17 = smov 0  }
   0x2 LB: > { %s27_s18 = sadd.s32 1, %s1140_s16  ;;  %p981_p0 = scmp.ge.s32.totalorder %s1144_s17, 1  ;;  %s1144_s17 = sphi %s1175_s17, %s15_s17   ;;  %s1140_s16 = sphi %s1173_s16, %s1494_s16   ;;  %s1136_s15 = sphi %s1171_s15, %s1493_s15  }
   0x3   : > { %p29_p1 = scmp.ge.s32.totalorder %s27_s18, 2  ;;  %p195_p2 = scmp.lt.s32.totalorder %s1144_s17, 3 }
   0x5   : > { %s1496_s18 = smov (%p29_p1, %s27_s18), 0  ;;  %p196_p3 = pnand %p981_p0, %p195_p2 }
   0x6   : > { %v1104_v0 = vld [vmem:[%s1489_s1] sm:$0xff] (!%p196_p3)   ;;  %s982_s21 = sshll.u32 (!%p196_p3), %s1136_s15, 5  ;;  %v1105_v1 = vld [vmem:[%s1489_s1 + $0x8] sm:$0xff] (!%p196_p3)   ;;  %vm400_vm0 = vcmask (!%p196_p3), 261120   ;;  %vm610_vm1 = vcmask (!%p196_p3), 130048   ;;  %p259_p5 = scmp.lt.s32.totalorder (!%p196_p3), %s1136_s15, 1 }
   0x7   : > { %199 = sbr.rel (%p196_p3) target bundleno = 312 (0x138), region = 28  ;;  %p241_p4 = scmp.lt.s32.totalorder (!%p196_p3), %s982_s21, 63  ;;  %1040 = vmatprep.subr.bf16.mxu0 (!%p196_p3), %v1104_v0  ;;  %1076 = vmatprep.subr.bf16.mxu1 (!%p196_p3), %v1104_v0  ;;  %vm712_vm2 = vcmask (!%p196_p3), 122880  }
   0x8   : > { %1041 = vmatpush3.bf16.msra.mxu0 (!%p196_p3), %v1104_v0  ;;  %1078 = vmatpush3.bf16.msra.mxu1 (!%p196_p3), %v1104_v0 }
   0x9   : > { %1042 = vmatprep.subr.bf16.mxu0 (!%p196_p3), %v1105_v1  ;;  %1077 = vmatprep.subr.bf16.mxu1 (!%p196_p3), %v1105_v1 }
   0xc   : > { %1043 = vmatpush3.bf16.msra.mxu0 (!%p196_p3), %v1105_v1  ;;  %1079 = vmatpush3.bf16.msra.mxu1 (!%p196_p3), %v1105_v1 }
   0xe   : > { %s1498_s21 = smov (!%p241_p4, %s982_s21), 63  ;;  %s1500_s15 = smov (!%p259_p5, %s1136_s15), 1 }
   0xf   : > { %s983_s24 = sshll.u32 %s1498_s21, 2  ;;  %s985_s28 = sshll.u32 %s1498_s21, 3 }
  0x10   : > { %s1204_s27 = scalar_lea.vmem %s1488_s0, %s983_s24  ;;  %s1242_s5 = scalar_lea.vmem %s1490_s2, %s985_s28 }
  0x11   : > { %v1106_v2 = vld [vmem:[%s1204_s27] sm:$0xff]   ;;  %v1107_v3 = vld [vmem:[%s1204_s27 + $0x8] sm:$0xff]   ;;  %v1108_v4 = vld [vmem:[%s1204_s27 + $0x10] sm:$0xff]   ;;  %s264_s8 = scalar_lea.vmem %s1491_s3, %s1500_s15  ;;  %s270_s11 = scalar_lea.vmem %s1492_s4, %s1500_s15 }
  0x12   : > { %1044 = vmatprep.mubr.msk.bf16.mxu0 %vm400_vm0, %v1106_v2  ;;  %v1109_v5 = vld [vmem:[%s1204_s27 + $0x18] sm:$0xff]   ;;  %v1110_v6 = vld [vmem:[%s1204_s27 + $0x20] sm:$0xff]   ;;  %v1115_v8 = vld [vmem:[%s1204_s27 + $0x48] sm:$0xff]  }
  0x13   : > { %1045 = vmatmul.mubr.msk.bf16.vlgmr.msra.gmra.mrb[0].mxu0 %vm400_vm0, %v1107_v3  ;;  %v1114_v7 = vld [vmem:[%s1204_s27 + $0x40] sm:$0xff]   ;;  %v1116_v9 = vld [vmem:[%s1204_s27 + $0x50] sm:$0xff]   ;;  %v1111_v10 = vld [vmem:[%s1204_s27 + $0x28] sm:$0xff]  }
  0x14   : > { %1048 = vmatprep.mubr.msk.bf16.mxu0 %vm400_vm0, %v1108_v4  ;;  %1060 = vmatprep.mubr.msk.bf16.mxu1 %vm400_vm0, %v1114_v7  ;;  %v1117_v11 = vld [vmem:[%s1204_s27 + $0x58] sm:$0xff]   ;;  %v1112_v12 = vld [vmem:[%s1204_s27 + $0x30] sm:$0xff]   ;;  %v1118_v13 = vld [vmem:[%s1204_s27 + $0x60] sm:$0xff]  }
  0x15   : > { %1061 = vmatmul.mubr.msk.bf16.vlgmr.msra.gmra.mrb[0].mxu1 %vm400_vm0, %v1115_v8  ;;  %v1113_v14 = vld [vmem:[%s1204_s27 + $0x38] sm:$0xff]   ;;  %v1119_v15 = vld [vmem:[%s1204_s27 + $0x68] sm:$0xff]   ;;  %v1120_v16 = vld [vmem:[%s1204_s27 + $0x70] sm:$0xff]  }
  0x16   : > { %1064 = vmatprep.mubr.msk.bf16.mxu1 %vm400_vm0, %v1116_v9  ;;  %v1121_v17 = vld [vmem:[%s1204_s27 + $0x78] sm:$0xff]  }
  0x1b   : > { %1049 = vmatmul.mubr.msk.bf16.gmra.mrb[4].mxu0 %vm400_vm0, %v1109_v5 }
  0x1c   : > { %1052 = vmatprep.mubr.msk.bf16.mxu0 %vm400_vm0, %v1110_v6 }
  0x1d   : > { %1065 = vmatmul.mubr.msk.bf16.gmra.mrb[4].mxu1 %vm400_vm0, %v1117_v11 }
  0x1e   : > { %1068 = vmatprep.mubr.msk.bf16.mxu1 %vm400_vm0, %v1118_v13 }
  0x23   : > { %1053 = vmatmul.mubr.msk.bf16.gmra.mrb[8].mxu0 %vm400_vm0, %v1111_v10 }
  0x24   : > { %1056 = vmatprep.mubr.msk.bf16.mxu0 %vm400_vm0, %v1112_v12 }
  0x25   : > { %1069 = vmatmul.mubr.msk.bf16.gmra.mrb[8].mxu1 %vm400_vm0, %v1119_v15 }
  0x26   : > { %1072 = vmatprep.mubr.msk.bf16.mxu1 %vm400_vm0, %v1120_v16 }
  0x2b   : > { %1057 = vmatmul.mubr.msk.bf16.gmra.mrb[12].mxu0 %vm400_vm0, %v1113_v14 }
  0x2d   : > { %1073 = vmatmul.mubr.msk.bf16.gmra.mrb[12].mxu1 %vm400_vm0, %v1121_v17 }
  0xe6   : > { %v1046_v18 = vpop.f32.mrb[0].mxu0 }
  0xe7   : > { %613 = vst.msk [vmem:[%s1242_s5 + $0x10] sm:$0xff] %vm610_vm1, %v1046_v18  ;;  %v483_v19 = vpop.f32.mrb[1].mxu0  ;;  %v716_v23 = vmul.f32 %v1046_v18, %v1046_v18  ;;  %v646_v28 = vsel %vm610_vm1, %v1046_v18, 0.0 }
  0xe8   : > { %611 = vst.msk [vmem:[%s1242_s5] sm:$0xff] %vm610_vm1, %v483_v19  ;;  %v714_v20 = vmul.f32 %v483_v19, %v483_v19  ;;  %v1047_v21 = vpop.f32.mrb[2].mxu0  ;;  %v643_v24 = vsel %vm610_vm1, %v483_v19, 0.0  ;;  %v1259_v37 = vpop.f32.mrb[0].mxu1 }
  0xe9   : > { %614 = vst.msk [vmem:[%s1242_s5 + $0x18] sm:$0xff] %vm610_vm1, %v1047_v21  ;;  %v486_v22 = vpop.f32.mrb[3].mxu0  ;;  %v717_v30 = vmul.f32 %v1047_v21, %v1047_v21  ;;  %v749_v34 = vsel %vm610_vm1, %v716_v23, 0.0  ;;  %v648_v35 = vsel %vm610_vm1, %v1047_v21, 0.0  ;;  %629 = vst.msk [vmem:[%s1242_s5 + $0x90] sm:$0xff] %vm610_vm1, %v1259_v37  ;;  %v1266_v41 = vpop.f32.mrb[1].mxu1 }
  0xea   : > { %612 = vst.msk [vmem:[%s1242_s5 + $0x8] sm:$0xff] %vm610_vm1, %v486_v22  ;;  %v644_v25 = vsel %vm610_vm1, %v486_v22, 0.0  ;;  %v715_v26 = vmul.f32 %v486_v22, %v486_v22  ;;  %v746_v29 = vsel %vm610_vm1, %v714_v20, 0.0  ;;  %627 = vst.msk [vmem:[%s1242_s5 + $0x80] sm:$0xff] %vm610_vm1, %v1266_v41  ;;  %v1275_v46 = vpop.f32.mrb[2].mxu1 }
  0xeb   : > { %v645_v27 = vadd.f32 %v644_v25, %v643_v24  ;;  %v751_v42 = vsel %vm610_vm1, %v717_v30, 0.0  ;;  %630 = vst.msk [vmem:[%s1242_s5 + $0x98] sm:$0xff] %vm610_vm1, %v1275_v46  ;;  %v1282_v50 = vpop.f32.mrb[3].mxu1 }
  0xec   : > { %v747_v31 = vsel %vm610_vm1, %v715_v26, 0.0  ;;  %628 = vst.msk [vmem:[%s1242_s5 + $0x88] sm:$0xff] %vm610_vm1, %v1282_v50 }
  0xed   : > { %v647_v32 = vadd.f32 %v646_v28, %v645_v27  ;;  %v748_v33 = vadd.f32 %v747_v31, %v746_v29 }
  0xee   : > { %v1050_v36 = vpop.f32.mrb[4].mxu0 }
  0xef   : > { %v750_v38 = vadd.f32 %v749_v34, %v748_v33  ;;  %617 = vst.msk [vmem:[%s1242_s5 + $0x30] sm:$0xff] %vm610_vm1, %v1050_v36  ;;  %v499_v39 = vpop.f32.mrb[5].mxu0  ;;  %v649_v40 = vadd.f32 %v648_v35, %v647_v32  ;;  %v720_v51 = vmul.f32 %v1050_v36, %v1050_v36  ;;  %v654_v57 = vsel %vm610_vm1, %v1050_v36, 0.0 }
  0xf0   : > { %615 = vst.msk [vmem:[%s1242_s5 + $0x20] sm:$0xff] %vm610_vm1, %v499_v39  ;;  %v650_v43 = vsel %vm610_vm1, %v499_v39, 0.0  ;;  %v718_v44 = vmul.f32 %v499_v39, %v499_v39  ;;  %v1051_v45 = vpop.f32.mrb[6].mxu0  ;;  %v1295_v1 = vpop.f32.mrb[4].mxu1 }
  0xf1   : > { %v651_v47 = vadd.f32 %v650_v43, %v649_v40  ;;  %v752_v48 = vadd.f32 %v751_v42, %v750_v38  ;;  %618 = vst.msk [vmem:[%s1242_s5 + $0x38] sm:$0xff] %vm610_vm1, %v1051_v45  ;;  %v502_v49 = vpop.f32.mrb[7].mxu0  ;;  %v721_v58 = vmul.f32 %v1051_v45, %v1051_v45  ;;  %v757_v62 = vsel %vm610_vm1, %v720_v51, 0.0  ;;  %633 = vst.msk [vmem:[%s1242_s5 + $0xb0] sm:$0xff] %vm610_vm1, %v1295_v1  ;;  %v1302_v5 = vpop.f32.mrb[5].mxu1 }
  0xf2   : > { %v753_v52 = vsel %vm610_vm1, %v718_v44, 0.0  ;;  %616 = vst.msk [vmem:[%s1242_s5 + $0x28] sm:$0xff] %vm610_vm1, %v502_v49  ;;  %v652_v53 = vsel %vm610_vm1, %v502_v49, 0.0  ;;  %v719_v54 = vmul.f32 %v502_v49, %v502_v49  ;;  %v656_v63 = vsel %vm610_vm1, %v1051_v45, 0.0  ;;  %631 = vst.msk [vmem:[%s1242_s5 + $0xa0] sm:$0xff] %vm610_vm1, %v1302_v5  ;;  %v1311_v10 = vpop.f32.mrb[6].mxu1 }
  0xf3   : > { %v754_v55 = vadd.f32 %v753_v52, %v752_v48  ;;  %v653_v56 = vadd.f32 %v652_v53, %v651_v47  ;;  %v759_v6 = vsel %vm610_vm1, %v721_v58, 0.0  ;;  %634 = vst.msk [vmem:[%s1242_s5 + $0xb8] sm:$0xff] %vm610_vm1, %v1311_v10  ;;  %v1318_v14 = vpop.f32.mrb[7].mxu1 }
  0xf4   : > { %v755_v59 = vsel %vm610_vm1, %v719_v54, 0.0  ;;  %632 = vst.msk [vmem:[%s1242_s5 + $0xa8] sm:$0xff] %vm610_vm1, %v1318_v14 }
  0xf5   : > { %v655_v60 = vadd.f32 %v654_v57, %v653_v56  ;;  %v756_v61 = vadd.f32 %v755_v59, %v754_v55  ;;  %v730_v56 = vmul.f32 %v1266_v41, %v1266_v41 }
  0xf6   : > { %v1054_v0 = vpop.f32.mrb[8].mxu0 }
  0xf7   : > { %v758_v2 = vadd.f32 %v757_v62, %v756_v61  ;;  %621 = vst.msk [vmem:[%s1242_s5 + $0x50] sm:$0xff] %vm610_vm1, %v1054_v0  ;;  %v515_v3 = vpop.f32.mrb[9].mxu0  ;;  %v657_v4 = vadd.f32 %v656_v63, %v655_v60  ;;  %v724_v15 = vmul.f32 %v1054_v0, %v1054_v0  ;;  %v662_v21 = vsel %vm610_vm1, %v1054_v0, 0.0 }
  0xf8   : > { %619 = vst.msk [vmem:[%s1242_s5 + $0x40] sm:$0xff] %vm610_vm1, %v515_v3  ;;  %v658_v7 = vsel %vm610_vm1, %v515_v3, 0.0  ;;  %v722_v8 = vmul.f32 %v515_v3, %v515_v3  ;;  %v1055_v9 = vpop.f32.mrb[10].mxu0  ;;  %v1331_v29 = vpop.f32.mrb[8].mxu1  ;;  %v674_v61 = vsel %vm610_vm1, %v1266_v41, 0.0 }
  0xf9   : > { %v659_v11 = vadd.f32 %v658_v7, %v657_v4  ;;  %v760_v12 = vadd.f32 %v759_v6, %v758_v2  ;;  %622 = vst.msk [vmem:[%s1242_s5 + $0x58] sm:$0xff] %vm610_vm1, %v1055_v9  ;;  %v518_v13 = vpop.f32.mrb[11].mxu0  ;;  %v725_v22 = vmul.f32 %v1055_v9, %v1055_v9  ;;  %v765_v26 = vsel %vm610_vm1, %v724_v15, 0.0  ;;  %637 = vst.msk [vmem:[%s1242_s5 + $0xd0] sm:$0xff] %vm610_vm1, %v1331_v29  ;;  %v1338_v33 = vpop.f32.mrb[9].mxu1 }
  0xfa   : > { %v761_v16 = vsel %vm610_vm1, %v722_v8, 0.0  ;;  %620 = vst.msk [vmem:[%s1242_s5 + $0x48] sm:$0xff] %vm610_vm1, %v518_v13  ;;  %v660_v17 = vsel %vm610_vm1, %v518_v13, 0.0  ;;  %v723_v18 = vmul.f32 %v518_v13, %v518_v13  ;;  %v664_v27 = vsel %vm610_vm1, %v1055_v9, 0.0  ;;  %635 = vst.msk [vmem:[%s1242_s5 + $0xc0] sm:$0xff] %vm610_vm1, %v1338_v33  ;;  %v1347_v39 = vpop.f32.mrb[10].mxu1 }
  0xfb   : > { %v762_v19 = vadd.f32 %v761_v16, %v760_v12  ;;  %v661_v20 = vadd.f32 %v660_v17, %v659_v11  ;;  %v767_v34 = vsel %vm610_vm1, %v725_v22, 0.0  ;;  %638 = vst.msk [vmem:[%s1242_s5 + $0xd8] sm:$0xff] %vm610_vm1, %v1347_v39  ;;  %v1354_v44 = vpop.f32.mrb[11].mxu1  ;;  %v777_v4 = vsel %vm610_vm1, %v730_v56, 0.0 }
  0xfc   : > { %v763_v23 = vsel %vm610_vm1, %v723_v18, 0.0  ;;  %636 = vst.msk [vmem:[%s1242_s5 + $0xc8] sm:$0xff] %vm610_vm1, %v1354_v44  ;;  %v731_v6 = vmul.f32 %v1282_v50, %v1282_v50  ;;  %v732_v11 = vmul.f32 %v1259_v37, %v1259_v37  ;;  %v676_v12 = vsel %vm610_vm1, %v1282_v50, 0.0 }
  0xfd   : > { %v663_v24 = vadd.f32 %v662_v21, %v661_v20  ;;  %v764_v25 = vadd.f32 %v763_v23, %v762_v19  ;;  %v678_v15 = vsel %vm610_vm1, %v1259_v37, 0.0  ;;  %v733_v18 = vmul.f32 %v1275_v46, %v1275_v46 }
  0xfe   : > { %v1058_v28 = vpop.f32.mrb[12].mxu0  ;;  %v779_v19 = vsel %vm610_vm1, %v731_v6, 0.0  ;;  %v734_v20 = vmul.f32 %v1302_v5, %v1302_v5  ;;  %v781_v23 = vsel %vm610_vm1, %v732_v11, 0.0  ;;  %v680_v37 = vsel %vm610_vm1, %v1275_v46, 0.0 }
  0xff   : > { %v766_v30 = vadd.f32 %v765_v26, %v764_v25  ;;  %625 = vst.msk [vmem:[%s1242_s5 + $0x70] sm:$0xff] %vm610_vm1, %v1058_v28  ;;  %v531_v31 = vpop.f32.mrb[13].mxu0  ;;  %v665_v32 = vadd.f32 %v664_v27, %v663_v24  ;;  %v728_v45 = vmul.f32 %v1058_v28, %v1058_v28  ;;  %v670_v53 = vsel %vm610_vm1, %v1058_v28, 0.0 }
 0x100   : > { %623 = vst.msk [vmem:[%s1242_s5 + $0x60] sm:$0xff] %vm610_vm1, %v531_v31  ;;  %v666_v35 = vsel %vm610_vm1, %v531_v31, 0.0  ;;  %v726_v36 = vmul.f32 %v531_v31, %v531_v31  ;;  %v1059_v38 = vpop.f32.mrb[14].mxu0  ;;  %v1371_v62 = vpop.f32.mrb[12].mxu1  ;;  %v682_v24 = vsel %vm610_vm1, %v1302_v5, 0.0  ;;  %v783_v27 = vsel %vm610_vm1, %v733_v18, 0.0 }
 0x101   : > { %v667_v40 = vadd.f32 %v666_v35, %v665_v32  ;;  %v768_v42 = vadd.f32 %v767_v34, %v766_v30  ;;  %626 = vst.msk [vmem:[%s1242_s5 + $0x78] sm:$0xff] %vm610_vm1, %v1059_v38  ;;  %v534_v43 = vpop.f32.mrb[15].mxu0  ;;  %v729_v54 = vmul.f32 %v1059_v38, %v1059_v38  ;;  %v773_v59 = vsel %vm610_vm1, %v728_v45, 0.0  ;;  %641 = vst.msk [vmem:[%s1242_s5 + $0xf0] sm:$0xff] %vm610_vm1, %v1371_v62  ;;  %v1376_v2 = vpop.f32.mrb[13].mxu1 }
 0x102   : > { %v769_v47 = vsel %vm610_vm1, %v726_v36, 0.0  ;;  %624 = vst.msk [vmem:[%s1242_s5 + $0x68] sm:$0xff] %vm610_vm1, %v534_v43  ;;  %v668_v48 = vsel %vm610_vm1, %v534_v43, 0.0  ;;  %v727_v49 = vmul.f32 %v534_v43, %v534_v43  ;;  %v672_v60 = vsel %vm610_vm1, %v1059_v38, 0.0  ;;  %639 = vst.msk [vmem:[%s1242_s5 + $0xe0] sm:$0xff] %vm610_vm1, %v1376_v2  ;;  %v1385_v41 = vpop.f32.mrb[14].mxu1 }
 0x103   : > { %v770_v51 = vadd.f32 %v769_v47, %v768_v42  ;;  %v669_v52 = vadd.f32 %v668_v48, %v667_v40  ;;  %v775_v3 = vsel %vm610_vm1, %v729_v54, 0.0  ;;  %642 = vst.msk [vmem:[%s1242_s5 + $0xf8] sm:$0xff] %vm610_vm1, %v1385_v41  ;;  %v1390_v9 = vpop.f32.mrb[15].mxu1  ;;  %v745_v13 = vmul.f32 %v1385_v41, %v1385_v41 }
 0x104   : > { %v771_v55 = vsel %vm610_vm1, %v727_v49, 0.0  ;;  %640 = vst.msk [vmem:[%s1242_s5 + $0xe8] sm:$0xff] %vm610_vm1, %v1390_v9  ;;  %v785_v28 = vsel %vm610_vm1, %v734_v20, 0.0  ;;  %v735_v30 = vmul.f32 %v1318_v14, %v1318_v14  ;;  %v736_v34 = vmul.f32 %v1295_v1, %v1295_v1 }
 0x105   : > { %v671_v57 = vadd.f32 %v670_v53, %v669_v52  ;;  %v772_v58 = vadd.f32 %v771_v55, %v770_v51  ;;  %v1409_v50 = vsel %vm610_vm1, %v745_v13, 0.0  ;;  %v684_v46 = vsel %vm610_vm1, %v1318_v14, 0.0 }
 0x106   : > { %v686_v5 = vsel %vm610_vm1, %v1295_v1, 0.0  ;;  %v737_v38 = vmul.f32 %v1311_v10, %v1311_v10  ;;  %v787_v40 = vsel %vm610_vm1, %v735_v30, 0.0  ;;  %v738_v42 = vmul.f32 %v1338_v33, %v1338_v33 }
 0x107   : > { %v774_v63 = vadd.f32 %v773_v59, %v772_v58  ;;  %v673_v0 = vadd.f32 %v672_v60, %v671_v57  ;;  %v789_v47 = vsel %vm610_vm1, %v736_v34, 0.0  ;;  %v688_v14 = vsel %vm610_vm1, %v1311_v10, 0.0 }
 0x108   : > { %v690_v48 = vsel %vm610_vm1, %v1338_v33, 0.0  ;;  %v791_v51 = vsel %vm610_vm1, %v737_v38, 0.0  ;;  %v793_v52 = vsel %vm610_vm1, %v738_v42, 0.0  ;;  %v739_v53 = vmul.f32 %v1354_v44, %v1354_v44 }
 0x109   : > { %v675_v7 = vadd.f32 %v674_v61, %v673_v0  ;;  %v776_v8 = vadd.f32 %v775_v3, %v774_v63  ;;  %v740_v56 = vmul.f32 %v1331_v29, %v1331_v29  ;;  %v692_v10 = vsel %vm610_vm1, %v1354_v44, 0.0 }
 0x10a   : > { %v694_v33 = vsel %vm610_vm1, %v1331_v29, 0.0  ;;  %v741_v59 = vmul.f32 %v1347_v39, %v1347_v39  ;;  %v795_v60 = vsel %vm610_vm1, %v739_v53, 0.0  ;;  %v742_v61 = vmul.f32 %v1376_v2, %v1376_v2 }
 0x10b   : > { %v778_v16 = vadd.f32 %v777_v4, %v776_v8  ;;  %v677_v17 = vadd.f32 %v676_v12, %v675_v7  ;;  %v797_v3 = vsel %vm610_vm1, %v740_v56, 0.0  ;;  %v696_v44 = vsel %vm610_vm1, %v1347_v39, 0.0 }
 0x10c   : > { %v698_v4 = vsel %vm610_vm1, %v1376_v2, 0.0  ;;  %v799_v7 = vsel %vm610_vm1, %v741_v59, 0.0  ;;  %v801_v8 = vsel %vm610_vm1, %v742_v61, 0.0  ;;  %v743_v11 = vmul.f32 %v1390_v9, %v1390_v9 }
 0x10d   : > { %v679_v21 = vadd.f32 %v678_v15, %v677_v17  ;;  %v780_v22 = vadd.f32 %v779_v19, %v778_v16  ;;  %v744_v15 = vmul.f32 %v1371_v62, %v1371_v62  ;;  %v700_v39 = vsel %vm610_vm1, %v1390_v9, 0.0 }
 0x10e   : > { %v702_v17 = vsel %vm610_vm1, %v1371_v62, 0.0  ;;  %v803_v18 = vsel %vm610_vm1, %v743_v11, 0.0 }
 0x10f   : > { %v782_v25 = vadd.f32 %v781_v23, %v780_v22  ;;  %v681_v26 = vadd.f32 %v680_v37, %v679_v21  ;;  %v805_v21 = vsel %vm610_vm1, %v744_v15, 0.0  ;;  %v704_v22 = vsel %vm610_vm1, %v1385_v41, 0.0 }
 0x111   : > { %v683_v31 = vadd.f32 %v682_v24, %v681_v26  ;;  %v784_v32 = vadd.f32 %v783_v27, %v782_v25 }
 0x113   : > { %v786_v35 = vadd.f32 %v785_v28, %v784_v32  ;;  %v685_v36 = vadd.f32 %v684_v46, %v683_v31 }
 0x115   : > { %v687_v43 = vadd.f32 %v686_v5, %v685_v36  ;;  %v788_v45 = vadd.f32 %v787_v40, %v786_v35 }
 0x117   : > { %v790_v49 = vadd.f32 %v789_v47, %v788_v45  ;;  %v689_v1 = vadd.f32 %v688_v14, %v687_v43 }
 0x119   : > { %v691_v54 = vadd.f32 %v690_v48, %v689_v1  ;;  %v792_v55 = vadd.f32 %v791_v51, %v790_v49 }
 0x11b   : > { %v794_v57 = vadd.f32 %v793_v52, %v792_v55  ;;  %v693_v58 = vadd.f32 %v692_v10, %v691_v54 }
 0x11d   : > { %v695_v63 = vadd.f32 %v694_v33, %v693_v58  ;;  %v796_v0 = vadd.f32 %v795_v60, %v794_v57 }
 0x11f   : > { %v798_v6 = vadd.f32 %v797_v3, %v796_v0  ;;  %v697_v29 = vadd.f32 %v696_v44, %v695_v63 }
 0x121   : > { %v699_v12 = vadd.f32 %v698_v4, %v697_v29  ;;  %v800_v13 = vadd.f32 %v799_v7, %v798_v6 }
 0x123   : > { %v802_v16 = vadd.f32 %v801_v8, %v800_v13  ;;  %v701_v2 = vadd.f32 %v700_v39, %v699_v12 }
 0x125   : > { %v703_v19 = vadd.f32 %v702_v17, %v701_v2  ;;  %v804_v20 = vadd.f32 %v803_v18, %v802_v16 }
 0x127   : > { %v705_v23 = vadd.f32 %v704_v22, %v703_v19  ;;  %v806_v37 = vadd.f32 %v805_v21, %v804_v20 }
 0x129   : > { %v706_v24 = vrot.slane %v705_v23, 4  ;;  %v808_v9 = vadd.f32 %v1409_v50, %v806_v37 }
 0x12b   : > { %v707_v25 = vadd.f32 %v706_v24, %v705_v23  ;;  %v809_v26 = vrot.slane %v808_v9, 4 }
 0x12d   : > { %v708_v27 = vrot.slane %v707_v25, 2  ;;  %v810_v28 = vadd.f32 %v809_v26, %v808_v9 }
 0x12f   : > { %v709_v62 = vadd.f32 %v708_v27, %v707_v25  ;;  %v811_v30 = vrot.slane %v810_v28, 2 }
 0x131   : > { %v710_v31 = vrot.slane %v709_v62, 1  ;;  %v812_v32 = vadd.f32 %v811_v30, %v810_v28 }
 0x133   : > { %v711_v41 = vadd.f32 %v710_v31, %v709_v62  ;;  %v813_v34 = vrot.slane %v812_v32, 1 }
 0x135   : > { %713 = vst.msk [vmem:[%s264_s8] sm:$0x1] %vm712_vm2, %v711_v41  ;;  %v814_v50 = vadd.f32 %v813_v34, %v812_v32 }
 0x137   : > { %815 = vst.msk [vmem:[%s270_s11] sm:$0x1] %vm712_vm2, %v814_v50 }
 0x138 PF: > { %s15_s17 = sadd.s32 1, %s1144_s17   ;;  %s1493_s15 = smov %s1140_s16 }
 0x139   : > { %p12_p6 = scmp.ge.s32.totalorder %s15_s17, 4   ;;  %s1494_s16 = smov %s1496_s18 }
 0x13b   :  { %14 = sbr.rel (!%p12_p6) target bundleno = 2 (0x2), region = 85 }

// kernel: wide_resnet_forward.17
= control target key start
LH: loop header
LB: loop body
LE: loop exit
PB: predicated region body
PF: predicated region fallthrough
CT: control target
= control target key end

     0   :  { %vm156_vm0 = vcmask 257024   ;;  %s385_s0 = inlined_call_operand.vmem [shape: f32[128,32], index: 0, kind: input, shape index: {}]   ;;  %s386_s1 = inlined_call_operand.vmem [shape: f32[1,32], index: 1, kind: input, shape index: {}]   ;;  %s387_s2 = inlined_call_operand.vmem [shape: f32[1,32], index: 2, kind: input, shape index: {}]   ;;  %s388_s3 = inlined_call_operand.vmem [shape: bf16[128,32], index: 3, kind: output, shape index: {}]  }
   0x1   :  { %v14_v0 = vld [vmem:[%s385_s0] sm:$0xff]  ;;  %v15_v4 = vld [vmem:[%s385_s0 + $0x8] sm:$0xff]  ;;  %v16_v5 = vld [vmem:[%s385_s0 + $0x10] sm:$0xff] }
   0x2   :  { %v237_v1 = vld [vmem:[%s386_s1] ss:$0 sm:$0xff]  ;;  %v17_v6 = vld [vmem:[%s385_s0 + $0x18] sm:$0xff]  ;;  %v19_v11 = vld [vmem:[%s385_s0 + $0x28] sm:$0xff] }
   0x3   :  { %v242_v2 = vld [vmem:[%s387_s2] ss:$0 sm:$0xff]  ;;  %v37_v3 = vmul.f32 %v237_v1, %v14_v0  ;;  %v38_v7 = vmul.f32 %v237_v1, %v15_v4  ;;  %v39_v8 = vmul.f32 %v237_v1, %v16_v5  ;;  %v40_v9 = vmul.f32 %v237_v1, %v17_v6  ;;  %v20_v12 = vld [vmem:[%s385_s0 + $0x30] sm:$0xff]  ;;  %v21_v17 = vld [vmem:[%s385_s0 + $0x38] sm:$0xff] }
   0x4   :  { %v18_v10 = vld [vmem:[%s385_s0 + $0x20] sm:$0xff]  ;;  %v42_v15 = vmul.f32 %v237_v1, %v19_v11  ;;  %v43_v16 = vmul.f32 %v237_v1, %v20_v12  ;;  %v44_v21 = vmul.f32 %v237_v1, %v21_v17  ;;  %v23_v35 = vld [vmem:[%s385_s0 + $0x48] sm:$0xff]  ;;  %v24_v36 = vld [vmem:[%s385_s0 + $0x50] sm:$0xff] }
   0x5   :  { %v60_v13 = vadd.f32 %v242_v2, %v37_v3  ;;  %v41_v14 = vmul.f32 %v237_v1, %v18_v10  ;;  %v61_v18 = vadd.f32 %v242_v2, %v38_v7  ;;  %v62_v19 = vadd.f32 %v242_v2, %v39_v8  ;;  %v22_v30 = vld [vmem:[%s385_s0 + $0x40] sm:$0xff]  ;;  %v25_v37 = vld [vmem:[%s385_s0 + $0x58] sm:$0xff]  ;;  %v27_v43 = vld [vmem:[%s385_s0 + $0x68] sm:$0xff] }
   0x6   :  { %v63_v20 = vadd.f32 %v242_v2, %v40_v9  ;;  %v65_v24 = vadd.f32 %v242_v2, %v42_v15  ;;  %v66_v25 = vadd.f32 %v242_v2, %v43_v16  ;;  %v67_v29 = vadd.f32 %v242_v2, %v44_v21  ;;  %v26_v42 = vld [vmem:[%s385_s0 + $0x60] sm:$0xff]  ;;  %v28_v44 = vld [vmem:[%s385_s0 + $0x70] sm:$0xff]  ;;  %v29_v49 = vld [vmem:[%s385_s0 + $0x78] sm:$0xff] }
   0x7   :  { %v76_v22 = vmax.f32 %v60_v13, 0.0  ;;  %v64_v23 = vadd.f32 %v242_v2, %v41_v14  ;;  %v77_v26 = vmax.f32 %v61_v18, 0.0  ;;  %v78_v27 = vmax.f32 %v62_v19, 0.0 }
   0x8   :  { %v79_v28 = vmax.f32 %v63_v20, 0.0  ;;  %v81_v33 = vmax.f32 %v65_v24, 0.0  ;;  %v82_v34 = vmax.f32 %v66_v25, 0.0  ;;  %v83_v41 = vmax.f32 %v67_v29, 0.0 }
   0x9   :  { %v195_v31 = vpack.c.bf16 %v76_v22, %v76_v22  ;;  %v80_v32 = vmax.f32 %v64_v23, 0.0  ;;  %v196_v38 = vpack.c.bf16 %v77_v26, %v77_v26  ;;  %v197_v39 = vpack.c.bf16 %v78_v27, %v78_v27 }
   0xa   :  { %v198_v40 = vpack.c.bf16 %v79_v28, %v79_v28  ;;  %v200_v46 = vpack.c.bf16 %v81_v33, %v81_v33  ;;  %v201_v47 = vpack.c.bf16 %v82_v34, %v82_v34  ;;  %v45_v48 = vmul.f32 %v237_v1, %v22_v30 }
   0xb   :  { %157 = vst.msk [vmem:[%s388_s3] sm:$0xf] %vm156_vm0, %v195_v31  ;;  %v199_v45 = vpack.c.bf16 %v80_v32, %v80_v32  ;;  %158 = vst.msk [vmem:[%s388_s3 + $0x4] sm:$0xf] %vm156_vm0, %v196_v38  ;;  %v202_v50 = vpack.c.bf16 %v83_v41, %v83_v41  ;;  %v46_v51 = vmul.f32 %v237_v1, %v23_v35 }
   0xc   :  { %159 = vst.msk [vmem:[%s388_s3 + $0x8] sm:$0xf] %vm156_vm0, %v197_v39  ;;  %160 = vst.msk [vmem:[%s388_s3 + $0xc] sm:$0xf] %vm156_vm0, %v198_v40  ;;  %v47_v52 = vmul.f32 %v237_v1, %v24_v36  ;;  %v48_v53 = vmul.f32 %v237_v1, %v25_v37  ;;  %v68_v54 = vadd.f32 %v242_v2, %v45_v48 }
   0xd   :  { %161 = vst.msk [vmem:[%s388_s3 + $0x10] sm:$0xf] %vm156_vm0, %v199_v45  ;;  %162 = vst.msk [vmem:[%s388_s3 + $0x14] sm:$0xf] %vm156_vm0, %v200_v46  ;;  %v49_v55 = vmul.f32 %v237_v1, %v26_v42  ;;  %v50_v56 = vmul.f32 %v237_v1, %v27_v43  ;;  %v51_v57 = vmul.f32 %v237_v1, %v28_v44 }
   0xe   :  { %163 = vst.msk [vmem:[%s388_s3 + $0x18] sm:$0xf] %vm156_vm0, %v201_v47  ;;  %164 = vst.msk [vmem:[%s388_s3 + $0x1c] sm:$0xf] %vm156_vm0, %v202_v50  ;;  %v69_v58 = vadd.f32 %v242_v2, %v46_v51  ;;  %v70_v59 = vadd.f32 %v242_v2, %v47_v52  ;;  %v71_v60 = vadd.f32 %v242_v2, %v48_v53  ;;  %v84_v62 = vmax.f32 %v68_v54, 0.0 }
   0xf   :  { %v52_v61 = vmul.f32 %v237_v1, %v29_v49  ;;  %v72_v63 = vadd.f32 %v242_v2, %v49_v55  ;;  %v73_v0 = vadd.f32 %v242_v2, %v50_v56  ;;  %v74_v3 = vadd.f32 %v242_v2, %v51_v57 }
  0x10   :  { %v85_v4 = vmax.f32 %v69_v58, 0.0  ;;  %v86_v5 = vmax.f32 %v70_v59, 0.0  ;;  %v87_v6 = vmax.f32 %v71_v60, 0.0  ;;  %v203_v8 = vpack.c.bf16 %v84_v62, %v84_v62 }
  0x11   :  { %v75_v7 = vadd.f32 %v242_v2, %v52_v61  ;;  %v88_v9 = vmax.f32 %v72_v63, 0.0  ;;  %v89_v10 = vmax.f32 %v73_v0, 0.0  ;;  %v90_v11 = vmax.f32 %v74_v3, 0.0 }
  0x12   :  { %v204_v12 = vpack.c.bf16 %v85_v4, %v85_v4  ;;  %v205_v13 = vpack.c.bf16 %v86_v5, %v86_v5  ;;  %v206_v14 = vpack.c.bf16 %v87_v6, %v87_v6  ;;  %165 = vst.msk [vmem:[%s388_s3 + $0x20] sm:$0xf] %vm156_vm0, %v203_v8 }
  0x13   :  { %v91_v1 = vmax.f32 %v75_v7, 0.0  ;;  %v207_v15 = vpack.c.bf16 %v88_v9, %v88_v9  ;;  %v208_v16 = vpack.c.bf16 %v89_v10, %v89_v10  ;;  %v209_v17 = vpack.c.bf16 %v90_v11, %v90_v11 }
  0x14   :  { %166 = vst.msk [vmem:[%s388_s3 + $0x24] sm:$0xf] %vm156_vm0, %v204_v12  ;;  %167 = vst.msk [vmem:[%s388_s3 + $0x28] sm:$0xf] %vm156_vm0, %v205_v13 }
  0x15   :  { %168 = vst.msk [vmem:[%s388_s3 + $0x2c] sm:$0xf] %vm156_vm0, %v206_v14  ;;  %v210_v2 = vpack.c.bf16 %v91_v1, %v91_v1  ;;  %169 = vst.msk [vmem:[%s388_s3 + $0x30] sm:$0xf] %vm156_vm0, %v207_v15 }
  0x16   :  { %170 = vst.msk [vmem:[%s388_s3 + $0x34] sm:$0xf] %vm156_vm0, %v208_v16  ;;  %171 = vst.msk [vmem:[%s388_s3 + $0x38] sm:$0xf] %vm156_vm0, %v209_v17 }
  0x17   :  { %172 = vst.msk [vmem:[%s388_s3 + $0x3c] sm:$0xf] %vm156_vm0, %v210_v2 }

// kernel: wide_resnet_forward.16
= control target key start
LH: loop header
LB: loop body
LE: loop exit
PB: predicated region body
PF: predicated region fallthrough
CT: control target
= control target key end

     0   :  { %v504_v0 = vmov 0   ;;  %vm175_vm0 = vcmask 130048   ;;  %vm297_vm1 = vcmask 261120   ;;  %vm351_vm2 = vcmask 253952   ;;  %s745_s1 = inlined_call_operand.vmem [shape: bf16[144,32], index: 1, kind: input, shape index: {}]   ;;  %s746_s0 = inlined_call_operand.vmem [shape: bf16[128,144], index: 0, kind: input, shape index: {}]   ;;  %s747_s2 = inlined_call_operand.vmem [shape: f32[128,32], index: 2, kind: output, shape index: {0}]   ;;  %s748_s3 = inlined_call_operand.vmem [shape: f32[1,1,32], index: 3, kind: output, shape index: {1}]   ;;  %s749_s4 = inlined_call_operand.vmem [shape: f32[1,1,32], index: 4, kind: output, shape index: {2}]  }
   0x1   :  { %200 = vmatprep.subr.bf16.mxu0 %v504_v0  ;;  %v471_v1 = vld [vmem:[%s745_s1] sm:$0xff]   ;;  %452 = vmatprep.subr.bf16.mxu1 %v504_v0  ;;  %v472_v2 = vld [vmem:[%s745_s1 + $0x8] sm:$0xff]   ;;  %v473_v3 = vld [vmem:[%s745_s1 + $0x10] sm:$0xff]  }
   0x2   :  { %201 = vmatpush1.bf16.msra.mxu0 %v471_v1  ;;  %461 = vmatpush1.bf16.msra.mxu1 %v471_v1  ;;  %v474_v4 = vld [vmem:[%s745_s1 + $0x18] sm:$0xff]   ;;  %v482_v5 = vld [vmem:[%s746_s0 + $0x4] ss:$8 sps:$4 sm:$0xff]   ;;  %v477_v9 = vld [vmem:[%s745_s1 + $0x30] sm:$0xff]  }
   0x3   :  { %202 = vmatprep.subr.bf16.mxu0 %v504_v0  ;;  %453 = vmatprep.subr.bf16.mxu1 %v504_v0  ;;  %v488_v6 = vld [vmem:[%s746_s0 + $0x44] ss:$8 sps:$4 sm:$0xff]   ;;  %v478_v10 = vld [vmem:[%s745_s1 + $0x38] sm:$0xff]   ;;  %v480_v12 = vld [vmem:[%s746_s0] ss:$8 sps:$4 sm:$0xff]  }
   0x4   :  { %444 = vmatprep.mubr.msk.bf16.mxu0 %vm175_vm0, %v482_v5  ;;  %v475_v7 = vld [vmem:[%s745_s1 + $0x20] sm:$0xff]   ;;  %448 = vmatprep.mubr.msk.bf16.mxu1 %vm175_vm0, %v488_v6  ;;  %v476_v8 = vld [vmem:[%s745_s1 + $0x28] sm:$0xff]   ;;  %v483_v14 = vld [vmem:[%s746_s0 + $0x14] ss:$8 sps:$4 sm:$0xff]  }
   0x5   :  { %v479_v11 = vld [vmem:[%s745_s1 + $0x40] sm:$0xff]   ;;  %v492_v15 = vld [vmem:[%s746_s0 + $0x54] ss:$8 sps:$4 sm:$0xff]   ;;  %v485_v16 = vld [vmem:[%s746_s0 + $0x10] ss:$8 sps:$4 sm:$0xff]  }
   0x6   :  { %203 = vmatpush1.bf16.msra.mxu0 %v472_v2  ;;  %462 = vmatpush1.bf16.msra.mxu1 %v472_v2  ;;  %v486_v13 = vld [vmem:[%s746_s0 + $0x40] ss:$8 sps:$4 sm:$0xff]   ;;  %v494_v17 = vld [vmem:[%s746_s0 + $0x50] ss:$8 sps:$4 sm:$0xff]   ;;  %v489_v18 = vld [vmem:[%s746_s0 + $0x24] ss:$8 sps:$4 sm:$0xff]  }
   0x7   :  { %204 = vmatprep.subr.bf16.mxu0 %v504_v0  ;;  %454 = vmatprep.subr.bf16.mxu1 %v504_v0  ;;  %v498_v19 = vld [vmem:[%s746_s0 + $0x64] ss:$8 sps:$4 sm:$0xff]   ;;  %v491_v20 = vld [vmem:[%s746_s0 + $0x20] ss:$8 sps:$4 sm:$0xff]   ;;  %v495_v22 = vld [vmem:[%s746_s0 + $0x34] ss:$8 sps:$4 sm:$0xff]  }
   0x8   :  { %v500_v21 = vld [vmem:[%s746_s0 + $0x60] ss:$8 sps:$4 sm:$0xff]   ;;  %v501_v23 = vld [vmem:[%s746_s0 + $0x74] ss:$8 sps:$4 sm:$0xff]   ;;  %v497_v24 = vld [vmem:[%s746_s0 + $0x30] ss:$8 sps:$4 sm:$0xff]  }
   0x9   :  { %v503_v25 = vld [vmem:[%s746_s0 + $0x70] ss:$8 sps:$4 sm:$0xff]  }
   0xa   :  { %205 = vmatpush1.bf16.msra.mxu0 %v473_v3  ;;  %463 = vmatpush1.bf16.msra.mxu1 %v473_v3 }
   0xb   :  { %206 = vmatprep.subr.bf16.mxu0 %v504_v0  ;;  %455 = vmatprep.subr.bf16.mxu1 %v504_v0 }
   0xe   :  { %207 = vmatpush1.bf16.msra.mxu0 %v474_v4  ;;  %464 = vmatpush1.bf16.msra.mxu1 %v474_v4 }
   0xf   :  { %208 = vmatprep.subr.bf16.mxu0 %v504_v0  ;;  %456 = vmatprep.subr.bf16.mxu1 %v504_v0 }
  0x12   :  { %209 = vmatpush1.bf16.msra.mxu0 %v475_v7  ;;  %465 = vmatpush1.bf16.msra.mxu1 %v475_v7 }
  0x13   :  { %210 = vmatprep.subr.bf16.mxu0 %v504_v0  ;;  %457 = vmatprep.subr.bf16.mxu1 %v504_v0 }
  0x16   :  { %211 = vmatpush1.bf16.msra.mxu0 %v476_v8  ;;  %466 = vmatpush1.bf16.msra.mxu1 %v476_v8 }
  0x17   :  { %212 = vmatprep.subr.bf16.mxu0 %v504_v0  ;;  %458 = vmatprep.subr.bf16.mxu1 %v504_v0 }
  0x1a   :  { %213 = vmatpush1.bf16.msra.mxu0 %v477_v9  ;;  %467 = vmatpush1.bf16.msra.mxu1 %v477_v9 }
  0x1b   :  { %214 = vmatprep.subr.bf16.mxu0 %v504_v0  ;;  %459 = vmatprep.subr.bf16.mxu1 %v504_v0 }
  0x1e   :  { %215 = vmatpush1.bf16.msra.mxu0 %v478_v10  ;;  %468 = vmatpush1.bf16.msra.mxu1 %v478_v10 }
  0x1f   :  { %216 = vmatprep.subr.bf16.mxu0 %v504_v0  ;;  %460 = vmatprep.subr.bf16.mxu1 %v504_v0 }
  0x22   :  { %217 = vmatpush1.bf16.msra.mxu0 %v479_v11  ;;  %469 = vmatpush1.bf16.msra.mxu1 %v479_v11 }
  0x25   :  { %233 = vmatmul.mubr.bf16.vlgmr.msra.gmra.mrb[0].mxu0 %v480_v12  ;;  %265 = vmatmul.mubr.bf16.vlgmr.msra.gmra.mrb[0].mxu1 %v486_v13 }
  0x26   :  { %445 = vmatprep.mubr.msk.bf16.mxu0 %vm175_vm0, %v483_v14  ;;  %449 = vmatprep.mubr.msk.bf16.mxu1 %vm175_vm0, %v492_v15 }
  0x2d   :  { %241 = vmatmul.mubr.bf16.gmra.mrb[4].mxu0 %v485_v16  ;;  %273 = vmatmul.mubr.bf16.gmra.mrb[4].mxu1 %v494_v17 }
  0x2e   :  { %446 = vmatprep.mubr.msk.bf16.mxu0 %vm175_vm0, %v489_v18  ;;  %450 = vmatprep.mubr.msk.bf16.mxu1 %vm175_vm0, %v498_v19 }
  0x35   :  { %249 = vmatmul.mubr.bf16.gmra.mrb[8].mxu0 %v491_v20  ;;  %281 = vmatmul.mubr.bf16.gmra.mrb[8].mxu1 %v500_v21 }
  0x36   :  { %447 = vmatprep.mubr.msk.bf16.mxu0 %vm175_vm0, %v495_v22  ;;  %451 = vmatprep.mubr.msk.bf16.mxu1 %vm175_vm0, %v501_v23 }
  0x3d   :  { %257 = vmatmul.mubr.bf16.gmra.mrb[12].mxu0 %v497_v24  ;;  %289 = vmatmul.mubr.bf16.gmra.mrb[12].mxu1 %v503_v25 }
  0xf8   :  { %v234_v26 = vpop.f32.mrb[0].mxu0  ;;  %v613_v27 = vpop.f32.mrb[0].mxu1 }
  0xf9   :  { %298 = vst.msk [vmem:[%s747_s2] sm:$0xff] %vm297_vm1, %v234_v26  ;;  %v353_v28 = vmul.f32 %v234_v26, %v234_v26  ;;  %v236_v29 = vpop.f32.mrb[1].mxu0  ;;  %306 = vst.msk [vmem:[%s747_s2 + $0x40] sm:$0xff] %vm297_vm1, %v613_v27  ;;  %v268_v30 = vpop.f32.mrb[1].mxu1  ;;  %v314_v33 = vsel %vm297_vm1, %v234_v26, 0.0  ;;  %v361_v23 = vmul.f32 %v613_v27, %v613_v27 }
  0xfa   :  { %v237_v31 = vpop.f32.mrb[2].mxu0  ;;  %v624_v32 = vpop.f32.mrb[2].mxu1 }
  0xfb   :  { %299 = vst.msk [vmem:[%s747_s2 + $0x8] sm:$0xff] %vm297_vm1, %v237_v31  ;;  %v315_v34 = vsel %vm297_vm1, %v237_v31, 0.0  ;;  %v354_v35 = vmul.f32 %v237_v31, %v237_v31  ;;  %v239_v36 = vpop.f32.mrb[3].mxu0  ;;  %307 = vst.msk [vmem:[%s747_s2 + $0x48] sm:$0xff] %vm297_vm1, %v624_v32  ;;  %v271_v37 = vpop.f32.mrb[3].mxu1  ;;  %v369_v39 = vsel %vm297_vm1, %v353_v28, 0.0 }
  0xfc   :  { %v316_v38 = vadd.f32 %v315_v34, %v314_v33  ;;  %v329_v33 = vsel %vm297_vm1, %v613_v27, 0.0  ;;  %v362_v34 = vmul.f32 %v624_v32, %v624_v32 }
  0xfd   :  { %v370_v40 = vsel %vm297_vm1, %v354_v35, 0.0 }
  0xfe   :  { %v371_v41 = vadd.f32 %v370_v40, %v369_v39  ;;  %v331_v39 = vsel %vm297_vm1, %v624_v32, 0.0 }
 0x100   :  { %v242_v42 = vpop.f32.mrb[4].mxu0  ;;  %v639_v43 = vpop.f32.mrb[4].mxu1 }
 0x101   :  { %300 = vst.msk [vmem:[%s747_s2 + $0x10] sm:$0xff] %vm297_vm1, %v242_v42  ;;  %v317_v44 = vsel %vm297_vm1, %v242_v42, 0.0  ;;  %v355_v45 = vmul.f32 %v242_v42, %v242_v42  ;;  %v244_v46 = vpop.f32.mrb[5].mxu0  ;;  %308 = vst.msk [vmem:[%s747_s2 + $0x50] sm:$0xff] %vm297_vm1, %v639_v43  ;;  %v276_v47 = vpop.f32.mrb[5].mxu1  ;;  %v363_v40 = vmul.f32 %v639_v43, %v639_v43  ;;  %v333_v27 = vsel %vm297_vm1, %v639_v43, 0.0 }
 0x102   :  { %v318_v48 = vadd.f32 %v317_v44, %v316_v38  ;;  %v245_v49 = vpop.f32.mrb[6].mxu0  ;;  %v651_v50 = vpop.f32.mrb[6].mxu1  ;;  %v384_v38 = vsel %vm297_vm1, %v361_v23, 0.0  ;;  %v386_v44 = vsel %vm297_vm1, %v362_v34, 0.0 }
 0x103   :  { %v372_v51 = vsel %vm297_vm1, %v355_v45, 0.0  ;;  %301 = vst.msk [vmem:[%s747_s2 + $0x18] sm:$0xff] %vm297_vm1, %v245_v49  ;;  %v319_v52 = vsel %vm297_vm1, %v245_v49, 0.0  ;;  %v356_v53 = vmul.f32 %v245_v49, %v245_v49  ;;  %v247_v54 = vpop.f32.mrb[7].mxu0  ;;  %309 = vst.msk [vmem:[%s747_s2 + $0x58] sm:$0xff] %vm297_vm1, %v651_v50  ;;  %v279_v55 = vpop.f32.mrb[7].mxu1  ;;  %v364_v45 = vmul.f32 %v651_v50, %v651_v50 }
 0x104   :  { %v373_v56 = vadd.f32 %v372_v51, %v371_v41  ;;  %v320_v57 = vadd.f32 %v319_v52, %v318_v48  ;;  %v388_v48 = vsel %vm297_vm1, %v363_v40, 0.0  ;;  %v335_v32 = vsel %vm297_vm1, %v651_v50, 0.0 }
 0x105   :  { %v374_v58 = vsel %vm297_vm1, %v356_v53, 0.0  ;;  %v390_v53 = vsel %vm297_vm1, %v364_v45, 0.0 }
 0x106   :  { %v375_v59 = vadd.f32 %v374_v58, %v373_v56 }
 0x108   :  { %v250_v60 = vpop.f32.mrb[8].mxu0  ;;  %v665_v61 = vpop.f32.mrb[8].mxu1 }
 0x109   :  { %302 = vst.msk [vmem:[%s747_s2 + $0x20] sm:$0xff] %vm297_vm1, %v250_v60  ;;  %v321_v62 = vsel %vm297_vm1, %v250_v60, 0.0  ;;  %v357_v63 = vmul.f32 %v250_v60, %v250_v60  ;;  %v252_v0 = vpop.f32.mrb[9].mxu0  ;;  %310 = vst.msk [vmem:[%s747_s2 + $0x60] sm:$0xff] %vm297_vm1, %v665_v61  ;;  %v284_v1 = vpop.f32.mrb[9].mxu1  ;;  %v365_v49 = vmul.f32 %v665_v61, %v665_v61  ;;  %v337_v43 = vsel %vm297_vm1, %v665_v61, 0.0 }
 0x10a   :  { %v322_v2 = vadd.f32 %v321_v62, %v320_v57  ;;  %v253_v3 = vpop.f32.mrb[10].mxu0  ;;  %v285_v4 = vpop.f32.mrb[10].mxu1 }
 0x10b   :  { %v376_v5 = vsel %vm297_vm1, %v357_v63, 0.0  ;;  %303 = vst.msk [vmem:[%s747_s2 + $0x28] sm:$0xff] %vm297_vm1, %v253_v3  ;;  %v323_v6 = vsel %vm297_vm1, %v253_v3, 0.0  ;;  %v358_v7 = vmul.f32 %v253_v3, %v253_v3  ;;  %v255_v8 = vpop.f32.mrb[11].mxu0  ;;  %311 = vst.msk [vmem:[%s747_s2 + $0x68] sm:$0xff] %vm297_vm1, %v285_v4  ;;  %v287_v9 = vpop.f32.mrb[11].mxu1  ;;  %v366_v54 = vmul.f32 %v285_v4, %v285_v4 }
 0x10c   :  { %v377_v10 = vadd.f32 %v376_v5, %v375_v59  ;;  %v324_v11 = vadd.f32 %v323_v6, %v322_v2  ;;  %v392_v58 = vsel %vm297_vm1, %v365_v49, 0.0  ;;  %v339_v59 = vsel %vm297_vm1, %v285_v4, 0.0 }
 0x10d   :  { %v378_v12 = vsel %vm297_vm1, %v358_v7, 0.0  ;;  %v394_v63 = vsel %vm297_vm1, %v366_v54, 0.0 }
 0x10e   :  { %v379_v13 = vadd.f32 %v378_v12, %v377_v10 }
 0x110   :  { %v258_v14 = vpop.f32.mrb[12].mxu0  ;;  %v290_v15 = vpop.f32.mrb[12].mxu1 }
 0x111   :  { %304 = vst.msk [vmem:[%s747_s2 + $0x30] sm:$0xff] %vm297_vm1, %v258_v14  ;;  %v325_v16 = vsel %vm297_vm1, %v258_v14, 0.0  ;;  %v359_v17 = vmul.f32 %v258_v14, %v258_v14  ;;  %v260_v18 = vpop.f32.mrb[13].mxu0  ;;  %312 = vst.msk [vmem:[%s747_s2 + $0x70] sm:$0xff] %vm297_vm1, %v290_v15  ;;  %v292_v19 = vpop.f32.mrb[13].mxu1  ;;  %v367_v55 = vmul.f32 %v290_v15, %v290_v15  ;;  %v341_v50 = vsel %vm297_vm1, %v290_v15, 0.0 }
 0x112   :  { %v326_v20 = vadd.f32 %v325_v16, %v324_v11  ;;  %v261_v21 = vpop.f32.mrb[14].mxu0  ;;  %v293_v22 = vpop.f32.mrb[14].mxu1 }
 0x113   :  { %v380_v24 = vsel %vm297_vm1, %v359_v17, 0.0  ;;  %305 = vst.msk [vmem:[%s747_s2 + $0x38] sm:$0xff] %vm297_vm1, %v261_v21  ;;  %v327_v25 = vsel %vm297_vm1, %v261_v21, 0.0  ;;  %v360_v26 = vmul.f32 %v261_v21, %v261_v21  ;;  %v263_v28 = vpop.f32.mrb[15].mxu0  ;;  %313 = vst.msk [vmem:[%s747_s2 + $0x78] sm:$0xff] %vm297_vm1, %v293_v22  ;;  %v295_v29 = vpop.f32.mrb[15].mxu1  ;;  %v368_v1 = vmul.f32 %v293_v22, %v293_v22 }
 0x114   :  { %v381_v30 = vadd.f32 %v380_v24, %v379_v13  ;;  %v328_v31 = vadd.f32 %v327_v25, %v326_v20  ;;  %v396_v0 = vsel %vm297_vm1, %v367_v55, 0.0  ;;  %v343_v61 = vsel %vm297_vm1, %v293_v22, 0.0 }
 0x115   :  { %v382_v35 = vsel %vm297_vm1, %v360_v26, 0.0  ;;  %v398_v7 = vsel %vm297_vm1, %v368_v1, 0.0 }
 0x116   :  { %v330_v36 = vadd.f32 %v329_v33, %v328_v31  ;;  %v383_v37 = vadd.f32 %v382_v35, %v381_v30 }
 0x118   :  { %v332_v41 = vadd.f32 %v331_v39, %v330_v36  ;;  %v385_v42 = vadd.f32 %v384_v38, %v383_v37 }
 0x11a   :  { %v387_v46 = vadd.f32 %v386_v44, %v385_v42  ;;  %v334_v47 = vadd.f32 %v333_v27, %v332_v41 }
 0x11c   :  { %v336_v51 = vadd.f32 %v335_v32, %v334_v47  ;;  %v389_v52 = vadd.f32 %v388_v48, %v387_v46 }
 0x11e   :  { %v338_v56 = vadd.f32 %v337_v43, %v336_v51  ;;  %v391_v57 = vadd.f32 %v390_v53, %v389_v52 }
 0x120   :  { %v393_v60 = vadd.f32 %v392_v58, %v391_v57  ;;  %v340_v62 = vadd.f32 %v339_v59, %v338_v56 }
 0x122   :  { %v395_v2 = vadd.f32 %v394_v63, %v393_v60  ;;  %v342_v3 = vadd.f32 %v341_v50, %v340_v62 }
 0x124   :  { %v397_v5 = vadd.f32 %v396_v0, %v395_v2  ;;  %v344_v6 = vadd.f32 %v343_v61, %v342_v3 }
 0x126   :  { %v345_v8 = vrot.slane %v344_v6, 4  ;;  %v399_v9 = vadd.f32 %v398_v7, %v397_v5 }
 0x128   :  { %v346_v4 = vadd.f32 %v345_v8, %v344_v6  ;;  %v400_v10 = vrot.slane %v399_v9, 4 }
 0x12a   :  { %v347_v11 = vrot.slane %v346_v4, 2  ;;  %v401_v12 = vadd.f32 %v400_v10, %v399_v9 }
 0x12c   :  { %v348_v13 = vadd.f32 %v347_v11, %v346_v4  ;;  %v402_v14 = vrot.slane %v401_v12, 2 }
 0x12e   :  { %v349_v15 = vrot.slane %v348_v13, 1  ;;  %v403_v16 = vadd.f32 %v402_v14, %v401_v12 }
 0x130   :  { %v350_v17 = vadd.f32 %v349_v15, %v348_v13  ;;  %v404_v18 = vrot.slane %v403_v16, 1 }
 0x132   :  { %352 = vst.msk [vmem:[%s748_s3] sm:$0x1] %vm351_vm2, %v350_v17  ;;  %v405_v19 = vadd.f32 %v404_v18, %v403_v16 }
 0x134   :  { %406 = vst.msk [vmem:[%s749_s4] sm:$0x1] %vm351_vm2, %v405_v19 }

// kernel: wide_resnet_forward.18
= control target key start
LH: loop header
LB: loop body
LE: loop exit
PB: predicated region body
PF: predicated region fallthrough
CT: control target
= control target key end

     0   :  { %vm153_vm0 = vcmask 130048   ;;  %vm503_vm1 = vcmask 261120   ;;  %vm775_vm2 = vcmask 253952   ;;  %s1444_s3 = inlined_call_operand.vmem [shape: bf16[16,32], index: 3, kind: input, shape index: {}]   ;;  %s1445_s1 = inlined_call_operand.vmem [shape: bf16[288,32], index: 1, kind: input, shape index: {}]   ;;  %s1446_s2 = inlined_call_operand.vmem [shape: bf16[128,16], index: 2, kind: input, shape index: {}]   ;;  %s1447_s0 = inlined_call_operand.vmem [shape: bf16[128,288], index: 0, kind: input, shape index: {}]   ;;  %s1448_s4 = inlined_call_operand.vmem [shape: f32[128,32], index: 4, kind: output, shape index: {0}]   ;;  %s1449_s5 = inlined_call_operand.vmem [shape: f32[1,1,32], index: 5, kind: output, shape index: {1}]   ;;  %s1450_s6 = inlined_call_operand.vmem [shape: f32[1,1,32], index: 6, kind: output, shape index: {2}]  }
   0x1   :  { %v1079_v0 = vld [vmem:[%s1444_s3] sm:$0xff]   ;;  %v1083_v4 = vld [vmem:[%s1446_s2 + $0x8] sm:$0xff]   ;;  %v1086_v7 = vld [vmem:[%s1445_s1 + $0x50] sm:$0xff]  }
   0x2   :  { %v1080_v1 = vld [vmem:[%s1445_s1 + $0x40] sm:$0xff]   ;;  %993 = vmatprep.subr.bf16.mxu0 %v1079_v0  ;;  %v1084_v5 = vld [vmem:[%s1445_s1 + $0x48] sm:$0xff]   ;;  %v1087_v8 = vld [vmem:[%s1445_s1 + $0x10] sm:$0xff]  }
   0x3   :  { %v1081_v2 = vld [vmem:[%s1445_s1] sm:$0xff]   ;;  %1031 = vmatprep.subr.bf16.mxu1 %v1080_v1  ;;  %994 = vmatpush3.bf16.msra.mxu0 %v1079_v0  ;;  %v1085_v6 = vld [vmem:[%s1445_s1 + $0x8] sm:$0xff]   ;;  %v1088_v9 = vld [vmem:[%s1446_s2 + $0x10] sm:$0xff]  }
   0x4   :  { %v1082_v3 = vld [vmem:[%s1446_s2] sm:$0xff]   ;;  %1039 = vmatpush3.bf16.msra.mxu1 %v1081_v2  ;;  %919 = vmatprep.subr.bf16.mxu0 %v1080_v1  ;;  %v1089_v10 = vld [vmem:[%s1446_s2 + $0x18] sm:$0xff]   ;;  %v1096_v16 = vld [vmem:[%s1445_s1 + $0x68] sm:$0xff]  }
   0x5   :  { %995 = vmatprep.mubr.msk.bf16.mxu0 %vm153_vm0, %v1082_v3  ;;  %1032 = vmatprep.subr.bf16.mxu1 %v1084_v5  ;;  %v1090_v11 = vld [vmem:[%s1445_s1 + $0x58] sm:$0xff]   ;;  %v1092_v13 = vld [vmem:[%s1445_s1 + $0x60] sm:$0xff]   ;;  %v1095_v17 = vld [vmem:[%s1446_s2 + $0x28] sm:$0xff]  }
   0x6   :  { %996 = vmatmul.mubr.msk.bf16.vlgmr.msra.gmra.mrb[0].mxu0 %vm153_vm0, %v1083_v4  ;;  %v1091_v12 = vld [vmem:[%s1445_s1 + $0x18] sm:$0xff]   ;;  %v1094_v14 = vld [vmem:[%s1446_s2 + $0x20] sm:$0xff]   ;;  %v1097_v18 = vld [vmem:[%s1445_s1 + $0x28] sm:$0xff]  }
   0x7   :  { %920 = vmatpush3.bf16.msra.mxu0 %v1081_v2  ;;  %999 = vmatprep.mubr.msk.bf16.mxu0 %vm153_vm0, %v1088_v9  ;;  %v1093_v15 = vld [vmem:[%s1445_s1 + $0x20] sm:$0xff]   ;;  %v1098_v19 = vld [vmem:[%s1445_s1 + $0x70] sm:$0xff]   ;;  %v1101_v22 = vld [vmem:[%s1446_s2 + $0x38] sm:$0xff]  }
   0x8   :  { %1040 = vmatpush3.bf16.msra.mxu1 %v1085_v6  ;;  %921 = vmatprep.subr.bf16.mxu0 %v1084_v5  ;;  %v1100_v20 = vld [vmem:[%s1446_s2 + $0x30] sm:$0xff]   ;;  %v1102_v23 = vld [vmem:[%s1445_s1 + $0x78] sm:$0xff]   ;;  %v1110_v28 = vld [vmem:[%s1445_s1 + $0x80] sm:$0xff]  }
   0x9   :  { %1033 = vmatprep.subr.bf16.mxu1 %v1086_v7  ;;  %v1099_v21 = vld [vmem:[%s1445_s1 + $0x30] sm:$0xff]   ;;  %v1106_v24 = vld [vmem:[%s1447_s0 + $0x1c] ss:$12 sps:$4 sm:$0xff]   ;;  %v1104_v27 = vld [vmem:[%s1447_s0 + $0x18] ss:$12 sps:$4 sm:$0xff]  }
   0xa   :  { %v1109_v25 = vld [vmem:[%s1447_s0 + $0x4] ss:$12 sps:$4 sm:$0xff]   ;;  %v1103_v26 = vld [vmem:[%s1445_s1 + $0x38] sm:$0xff]   ;;  %568 = vmatprep.mubr.bf16.mxu1 %v1106_v24  ;;  %v1111_v29 = vld [vmem:[%s1447_s0 + $0x34] ss:$12 sps:$4 sm:$0xff]  }
   0xb   :  { %922 = vmatpush3.bf16.msra.mxu0 %v1085_v6  ;;  %v1107_v30 = vld [vmem:[%s1447_s0] ss:$12 sps:$4 sm:$0xff]   ;;  %v1115_v31 = vld [vmem:[%s1447_s0 + $0x8] ss:$12 sps:$4 sm:$0xff]   ;;  %v1113_v33 = vld [vmem:[%s1447_s0 + $0x30] ss:$12 sps:$4 sm:$0xff]  }
   0xc   :  { %1041 = vmatpush3.bf16.msra.mxu1 %v1087_v8  ;;  %923 = vmatprep.subr.bf16.mxu0 %v1086_v7  ;;  %v1114_v32 = vld [vmem:[%s1445_s1 + $0x88] sm:$0xff]   ;;  %v1120_v36 = vld [vmem:[%s1447_s0 + $0x38] ss:$12 sps:$4 sm:$0xff]   ;;  %v1121_v39 = vld [vmem:[%s1447_s0 + $0x50] ss:$12 sps:$4 sm:$0xff]  }
   0xd   :  { %1034 = vmatprep.subr.bf16.mxu1 %v1090_v11  ;;  %v1117_v34 = vld [vmem:[%s1447_s0 + $0x4c] ss:$12 sps:$4 sm:$0xff]   ;;  %v1119_v37 = vld [vmem:[%s1447_s0 + $0x48] ss:$12 sps:$4 sm:$0xff]   ;;  %v1122_v38 = vld [vmem:[%s1447_s0 + $0x64] ss:$12 sps:$4 sm:$0xff]  }
   0xe   :  { %1000 = vmatmul.mubr.msk.bf16.gmra.mrb[4].mxu0 %vm153_vm0, %v1089_v10  ;;  %v1116_v35 = vld [vmem:[%s1447_s0 + $0x20] ss:$12 sps:$4 sm:$0xff]   ;;  %v1125_v40 = vld [vmem:[%s1447_s0 + $0x68] ss:$12 sps:$4 sm:$0xff]   ;;  %v1130_v44 = vld [vmem:[%s1447_s0 + $0x98] ss:$12 sps:$4 sm:$0xff]  }
   0xf   :  { %924 = vmatpush3.bf16.msra.mxu0 %v1087_v8  ;;  %1003 = vmatprep.mubr.msk.bf16.mxu0 %vm153_vm0, %v1094_v14  ;;  %v1124_v41 = vld [vmem:[%s1447_s0 + $0x60] ss:$12 sps:$4 sm:$0xff]   ;;  %v1127_v42 = vld [vmem:[%s1447_s0 + $0x7c] ss:$12 sps:$4 sm:$0xff]   ;;  %v1129_v45 = vld [vmem:[%s1447_s0 + $0x78] ss:$12 sps:$4 sm:$0xff]  }
  0x10   :  { %1042 = vmatpush3.bf16.msra.mxu1 %v1091_v12  ;;  %925 = vmatprep.subr.bf16.mxu0 %v1090_v11  ;;  %v1126_v43 = vld [vmem:[%s1447_s0 + $0x80] ss:$12 sps:$4 sm:$0xff]   ;;  %v1131_v47 = vld [vmem:[%s1447_s0 + $0xb0] ss:$12 sps:$4 sm:$0xff]   ;;  %v1137_v50 = vld [vmem:[%s1447_s0 + $0xa8] ss:$12 sps:$4 sm:$0xff]  }
  0x11   :  { %1035 = vmatprep.subr.bf16.mxu1 %v1092_v13  ;;  %v1132_v46 = vld [vmem:[%s1447_s0 + $0x94] ss:$12 sps:$4 sm:$0xff]   ;;  %v1134_v48 = vld [vmem:[%s1447_s0 + $0x90] ss:$12 sps:$4 sm:$0xff]   ;;  %v1135_v49 = vld [vmem:[%s1447_s0 + $0xac] ss:$12 sps:$4 sm:$0xff]  }
  0x13   :  { %926 = vmatpush3.bf16.msra.mxu0 %v1091_v12 }
  0x14   :  { %1043 = vmatpush3.bf16.msra.mxu1 %v1093_v15  ;;  %927 = vmatprep.subr.bf16.mxu0 %v1092_v13 }
  0x15   :  { %1036 = vmatprep.subr.bf16.mxu1 %v1096_v16 }
  0x16   :  { %1004 = vmatmul.mubr.msk.bf16.gmra.mrb[8].mxu0 %vm153_vm0, %v1095_v17 }
  0x17   :  { %928 = vmatpush3.bf16.msra.mxu0 %v1093_v15  ;;  %1007 = vmatprep.mubr.msk.bf16.mxu0 %vm153_vm0, %v1100_v20 }
  0x18   :  { %1044 = vmatpush3.bf16.msra.mxu1 %v1097_v18  ;;  %929 = vmatprep.subr.bf16.mxu0 %v1096_v16 }
  0x19   :  { %1037 = vmatprep.subr.bf16.mxu1 %v1098_v19 }
  0x1b   :  { %930 = vmatpush3.bf16.msra.mxu0 %v1097_v18 }
  0x1c   :  { %1045 = vmatpush3.bf16.msra.mxu1 %v1099_v21  ;;  %931 = vmatprep.subr.bf16.mxu0 %v1098_v19 }
  0x1d   :  { %1038 = vmatprep.subr.bf16.mxu1 %v1102_v23 }
  0x1e   :  { %1008 = vmatmul.mubr.msk.bf16.gmra.mrb[12].mxu0 %vm153_vm0, %v1101_v22 }
  0x1f   :  { %932 = vmatpush3.bf16.msra.mxu0 %v1099_v21  ;;  %560 = vmatprep.mubr.bf16.mxu0 %v1109_v25 }
  0x20   :  { %1046 = vmatpush3.bf16.msra.mxu1 %v1103_v26  ;;  %933 = vmatprep.subr.bf16.mxu0 %v1102_v23 }
  0x23   :  { %569 = vmatmul.mubr.bf16.vlgmr.msra.gmra.mrb[0].mxu1 %v1104_v27  ;;  %934 = vmatpush3.bf16.msra.mxu0 %v1103_v26 }
  0x24   :  { %1011 = vmatprep.subr.bf16.mxu0 %v1110_v28  ;;  %576 = vmatprep.mubr.bf16.mxu1 %v1111_v29 }
  0x26   :  { %561 = vmatmul.mubr.bf16.vlgmr.msra.gmra.mrb[16].mxu0 %v1107_v30 }
  0x27   :  { %1012 = vmatpush3.bf16.msra.mxu0 %v1110_v28  ;;  %1015 = vmatprep.mubr.msk.bf16.mxu0 %vm503_vm1, %v1115_v31 }
  0x28   :  { %1013 = vmatprep.subr.bf16.mxu0 %v1114_v32 }
  0x2b   :  { %577 = vmatmul.mubr.bf16.gmra.mrb[4].mxu1 %v1113_v33  ;;  %1014 = vmatpush3.bf16.msra.mxu0 %v1114_v32 }
  0x2c   :  { %584 = vmatprep.mubr.bf16.mxu1 %v1117_v34 }
  0x2e   :  { %1016 = vmatmul.mubr.msk.bf16.vlgmr.msra.gmra.mrb[0].mxu0 %vm503_vm1, %v1116_v35 }
  0x2f   :  { %1019 = vmatprep.mubr.msk.bf16.mxu0 %vm503_vm1, %v1120_v36 }
  0x33   :  { %585 = vmatmul.mubr.bf16.gmra.mrb[8].mxu1 %v1119_v37 }
  0x34   :  { %592 = vmatprep.mubr.bf16.mxu1 %v1122_v38 }
  0x36   :  { %1020 = vmatmul.mubr.msk.bf16.gmra.mrb[4].mxu0 %vm503_vm1, %v1121_v39 }
  0x37   :  { %1023 = vmatprep.mubr.msk.bf16.mxu0 %vm503_vm1, %v1125_v40 }
  0x3b   :  { %593 = vmatmul.mubr.bf16.gmra.mrb[12].mxu1 %v1124_v41 }
  0x3c   :  { %600 = vmatprep.mubr.bf16.mxu1 %v1127_v42 }
  0x3e   :  { %1024 = vmatmul.mubr.msk.bf16.gmra.mrb[8].mxu0 %vm503_vm1, %v1126_v43 }
  0x3f   :  { %1027 = vmatprep.mubr.msk.bf16.mxu0 %vm503_vm1, %v1130_v44 }
  0x43   :  { %601 = vmatmul.mubr.bf16.gmra.mrb[16].mxu1 %v1129_v45 }
  0x44   :  { %608 = vmatprep.mubr.bf16.mxu1 %v1132_v46 }
  0x46   :  { %1028 = vmatmul.mubr.msk.bf16.gmra.mrb[12].mxu0 %vm503_vm1, %v1131_v47 }
  0x4b   :  { %609 = vmatmul.mubr.bf16.gmra.mrb[20].mxu1 %v1134_v48 }
  0x4c   :  { %616 = vmatprep.mubr.bf16.mxu1 %v1135_v49 }
  0x53   :  { %617 = vmatmul.mubr.bf16.gmra.mrb[24].mxu1 %v1137_v50 }
  0xf6   :  { %v941_v51 = vpop.f32.mrb[0].mxu1 }
  0xf7   :  { %v942_v52 = vpop.f32.mrb[1].mxu1 }
  0xf8   :  { %v943_v53 = vadd.f32 %v942_v52, %v941_v51  ;;  %v944_v54 = vpop.f32.mrb[2].mxu1 }
  0xf9   :  { %v945_v55 = vpop.f32.mrb[3].mxu1  ;;  %v935_v56 = vpop.f32.mrb[16].mxu0 }
  0xfa   :  { %v946_v57 = vadd.f32 %v945_v55, %v944_v54  ;;  %v936_v58 = vpop.f32.mrb[17].mxu0 }
  0xfb   :  { %v937_v59 = vadd.f32 %v936_v58, %v935_v56  ;;  %v938_v60 = vpop.f32.mrb[18].mxu0 }
  0xfc   :  { %v939_v61 = vpop.f32.mrb[19].mxu0 }
  0xfd   :  { %v940_v62 = vadd.f32 %v939_v61, %v938_v60 }
  0xfe   :  { %v947_v63 = vpop.f32.mrb[4].mxu1 }
  0xff   :  { %v948_v0 = vpop.f32.mrb[5].mxu1 }
 0x100   :  { %v949_v1 = vadd.f32 %v948_v0, %v947_v63  ;;  %v950_v2 = vpop.f32.mrb[6].mxu1 }
 0x101   :  { %v951_v3 = vpop.f32.mrb[7].mxu1  ;;  %v1017_v4 = vpop.f32.mrb[0].mxu0 }
 0x102   :  { %v952_v5 = vadd.f32 %v951_v3, %v950_v2  ;;  %v1047_v6 = vadd.f32 %v1017_v4, %v943_v53  ;;  %v659_v7 = vpop.f32.mrb[1].mxu0 }
 0x103   :  { %v1048_v8 = vadd.f32 %v937_v59, %v659_v7  ;;  %v1018_v9 = vpop.f32.mrb[2].mxu0 }
 0x104   :  { %724 = vst.msk [vmem:[%s1448_s4 + $0x10] sm:$0xff] %vm503_vm1, %v1047_v6  ;;  %v1049_v10 = vadd.f32 %v1018_v9, %v946_v57  ;;  %v662_v11 = vpop.f32.mrb[3].mxu0  ;;  %v779_v15 = vmul.f32 %v1047_v6, %v1047_v6  ;;  %v741_v24 = vsel %vm503_vm1, %v1047_v6, 0.0 }
 0x105   :  { %722 = vst.msk [vmem:[%s1448_s4] sm:$0xff] %vm503_vm1, %v1048_v8  ;;  %v777_v12 = vmul.f32 %v1048_v8, %v1048_v8  ;;  %v1050_v13 = vadd.f32 %v940_v62, %v662_v11  ;;  %v738_v16 = vsel %vm503_vm1, %v1048_v8, 0.0 }
 0x106   :  { %725 = vst.msk [vmem:[%s1448_s4 + $0x18] sm:$0xff] %vm503_vm1, %v1049_v10  ;;  %v953_v14 = vpop.f32.mrb[8].mxu1  ;;  %v780_v20 = vmul.f32 %v1049_v10, %v1049_v10  ;;  %v796_v34 = vsel %vm503_vm1, %v779_v15, 0.0  ;;  %v743_v35 = vsel %vm503_vm1, %v1049_v10, 0.0 }
 0x107   :  { %723 = vst.msk [vmem:[%s1448_s4 + $0x8] sm:$0xff] %vm503_vm1, %v1050_v13  ;;  %v739_v17 = vsel %vm503_vm1, %v1050_v13, 0.0  ;;  %v778_v18 = vmul.f32 %v1050_v13, %v1050_v13  ;;  %v954_v19 = vpop.f32.mrb[9].mxu1  ;;  %v793_v25 = vsel %vm503_vm1, %v777_v12, 0.0 }
 0x108   :  { %v740_v21 = vadd.f32 %v739_v17, %v738_v16  ;;  %v955_v22 = vadd.f32 %v954_v19, %v953_v14  ;;  %v956_v23 = vpop.f32.mrb[10].mxu1  ;;  %v798_v38 = vsel %vm503_vm1, %v780_v20, 0.0 }
 0x109   :  { %v794_v26 = vsel %vm503_vm1, %v778_v18, 0.0  ;;  %v957_v27 = vpop.f32.mrb[11].mxu1  ;;  %v1021_v28 = vpop.f32.mrb[4].mxu0 }
 0x10a   :  { %v742_v29 = vadd.f32 %v741_v24, %v740_v21  ;;  %v795_v30 = vadd.f32 %v794_v26, %v793_v25  ;;  %v958_v31 = vadd.f32 %v957_v27, %v956_v23  ;;  %v1051_v32 = vadd.f32 %v1021_v28, %v955_v22  ;;  %v675_v33 = vpop.f32.mrb[5].mxu0 }
 0x10b   :  { %v1052_v36 = vadd.f32 %v949_v1, %v675_v33  ;;  %v1022_v37 = vpop.f32.mrb[6].mxu0 }
 0x10c   :  { %v797_v39 = vadd.f32 %v796_v34, %v795_v30  ;;  %728 = vst.msk [vmem:[%s1448_s4 + $0x30] sm:$0xff] %vm503_vm1, %v1051_v32  ;;  %v744_v40 = vadd.f32 %v743_v35, %v742_v29  ;;  %v678_v41 = vpop.f32.mrb[7].mxu0  ;;  %v1053_v44 = vadd.f32 %v1022_v37, %v958_v31  ;;  %v783_v49 = vmul.f32 %v1051_v32, %v1051_v32 }
 0x10d   :  { %726 = vst.msk [vmem:[%s1448_s4 + $0x20] sm:$0xff] %vm503_vm1, %v1052_v36  ;;  %v745_v42 = vsel %vm503_vm1, %v1052_v36, 0.0  ;;  %v781_v43 = vmul.f32 %v1052_v36, %v1052_v36  ;;  %v1054_v45 = vadd.f32 %v952_v5, %v678_v41  ;;  %v749_v58 = vsel %vm503_vm1, %v1051_v32, 0.0 }
 0x10e   :  { %v746_v46 = vadd.f32 %v745_v42, %v744_v40  ;;  %v799_v47 = vadd.f32 %v798_v38, %v797_v39  ;;  %v959_v48 = vpop.f32.mrb[12].mxu1  ;;  %729 = vst.msk [vmem:[%s1448_s4 + $0x38] sm:$0xff] %vm503_vm1, %v1053_v44  ;;  %v784_v61 = vmul.f32 %v1053_v44, %v1053_v44  ;;  %v751_v2 = vsel %vm503_vm1, %v1053_v44, 0.0 }
 0x10f   :  { %v800_v50 = vsel %vm503_vm1, %v781_v43, 0.0  ;;  %727 = vst.msk [vmem:[%s1448_s4 + $0x28] sm:$0xff] %vm503_vm1, %v1054_v45  ;;  %v747_v51 = vsel %vm503_vm1, %v1054_v45, 0.0  ;;  %v960_v52 = vpop.f32.mrb[13].mxu1  ;;  %v782_v55 = vmul.f32 %v1054_v45, %v1054_v45  ;;  %v804_v6 = vsel %vm503_vm1, %v783_v49, 0.0 }
 0x110   :  { %v801_v53 = vadd.f32 %v800_v50, %v799_v47  ;;  %v748_v54 = vadd.f32 %v747_v51, %v746_v46  ;;  %v961_v56 = vadd.f32 %v960_v52, %v959_v48  ;;  %v962_v57 = vpop.f32.mrb[14].mxu1  ;;  %v806_v13 = vsel %vm503_vm1, %v784_v61, 0.0 }
 0x111   :  { %v963_v59 = vpop.f32.mrb[15].mxu1  ;;  %v1025_v60 = vpop.f32.mrb[8].mxu0  ;;  %v802_v63 = vsel %vm503_vm1, %v782_v55, 0.0 }
 0x112   :  { %v750_v62 = vadd.f32 %v749_v58, %v748_v54  ;;  %v964_v0 = vadd.f32 %v963_v59, %v962_v57  ;;  %v691_v1 = vpop.f32.mrb[9].mxu0  ;;  %v803_v3 = vadd.f32 %v802_v63, %v801_v53 }
 0x113   :  { %v1056_v4 = vadd.f32 %v961_v56, %v691_v1  ;;  %v1026_v5 = vpop.f32.mrb[10].mxu0 }
 0x114   :  { %v752_v7 = vadd.f32 %v751_v2, %v750_v62  ;;  %v694_v8 = vpop.f32.mrb[11].mxu0  ;;  %v805_v9 = vadd.f32 %v804_v6, %v803_v3 }
 0x115   :  { %730 = vst.msk [vmem:[%s1448_s4 + $0x40] sm:$0xff] %vm503_vm1, %v1056_v4  ;;  %v753_v10 = vsel %vm503_vm1, %v1056_v4, 0.0  ;;  %v785_v11 = vmul.f32 %v1056_v4, %v1056_v4  ;;  %v1058_v12 = vadd.f32 %v964_v0, %v694_v8 }
 0x116   :  { %v754_v14 = vadd.f32 %v753_v10, %v752_v7  ;;  %v965_v15 = vpop.f32.mrb[16].mxu1  ;;  %v807_v16 = vadd.f32 %v806_v13, %v805_v9 }
 0x117   :  { %v808_v17 = vsel %vm503_vm1, %v785_v11, 0.0  ;;  %731 = vst.msk [vmem:[%s1448_s4 + $0x48] sm:$0xff] %vm503_vm1, %v1058_v12  ;;  %v755_v18 = vsel %vm503_vm1, %v1058_v12, 0.0  ;;  %v786_v19 = vmul.f32 %v1058_v12, %v1058_v12  ;;  %v966_v20 = vpop.f32.mrb[17].mxu1 }
 0x118   :  { %v756_v21 = vadd.f32 %v755_v18, %v754_v14  ;;  %v967_v22 = vadd.f32 %v966_v20, %v965_v15  ;;  %v968_v23 = vpop.f32.mrb[18].mxu1  ;;  %v809_v24 = vadd.f32 %v808_v17, %v807_v16 }
 0x119   :  { %v810_v25 = vsel %vm503_vm1, %v786_v19, 0.0  ;;  %v969_v26 = vpop.f32.mrb[19].mxu1  ;;  %v1029_v27 = vpop.f32.mrb[12].mxu0 }
 0x11a   :  { %v1055_v28 = vadd.f32 %v1025_v60, %v967_v22  ;;  %v970_v29 = vadd.f32 %v969_v26, %v968_v23  ;;  %v707_v30 = vpop.f32.mrb[13].mxu0  ;;  %v811_v31 = vadd.f32 %v810_v25, %v809_v24 }
 0x11b   :  { %v1030_v32 = vpop.f32.mrb[14].mxu0 }
 0x11c   :  { %732 = vst.msk [vmem:[%s1448_s4 + $0x50] sm:$0xff] %vm503_vm1, %v1055_v28  ;;  %v757_v33 = vsel %vm503_vm1, %v1055_v28, 0.0  ;;  %v787_v34 = vmul.f32 %v1055_v28, %v1055_v28  ;;  %v1057_v35 = vadd.f32 %v1026_v5, %v970_v29  ;;  %v710_v36 = vpop.f32.mrb[15].mxu0 }
 0x11d   :  { %v758_v37 = vadd.f32 %v757_v33, %v756_v21 }
 0x11e   :  { %v812_v38 = vsel %vm503_vm1, %v787_v34, 0.0  ;;  %733 = vst.msk [vmem:[%s1448_s4 + $0x58] sm:$0xff] %vm503_vm1, %v1057_v35  ;;  %v759_v39 = vsel %vm503_vm1, %v1057_v35, 0.0  ;;  %v788_v40 = vmul.f32 %v1057_v35, %v1057_v35  ;;  %v971_v41 = vpop.f32.mrb[20].mxu1 }
 0x11f   :  { %v813_v42 = vadd.f32 %v812_v38, %v811_v31  ;;  %v760_v43 = vadd.f32 %v759_v39, %v758_v37  ;;  %v972_v44 = vpop.f32.mrb[21].mxu1 }
 0x120   :  { %v814_v45 = vsel %vm503_vm1, %v788_v40, 0.0  ;;  %v973_v46 = vadd.f32 %v972_v44, %v971_v41  ;;  %v974_v47 = vpop.f32.mrb[22].mxu1 }
 0x121   :  { %v815_v48 = vadd.f32 %v814_v45, %v813_v42  ;;  %v975_v49 = vpop.f32.mrb[23].mxu1 }
 0x122   :  { %v1060_v50 = vadd.f32 %v973_v46, %v707_v30  ;;  %v976_v51 = vadd.f32 %v975_v49, %v974_v47 }
 0x124   :  { %734 = vst.msk [vmem:[%s1448_s4 + $0x60] sm:$0xff] %vm503_vm1, %v1060_v50  ;;  %v761_v52 = vsel %vm503_vm1, %v1060_v50, 0.0  ;;  %v789_v53 = vmul.f32 %v1060_v50, %v1060_v50  ;;  %v1062_v54 = vadd.f32 %v976_v51, %v710_v36 }
 0x125   :  { %v762_v55 = vadd.f32 %v761_v52, %v760_v43 }
 0x126   :  { %v816_v56 = vsel %vm503_vm1, %v789_v53, 0.0  ;;  %735 = vst.msk [vmem:[%s1448_s4 + $0x68] sm:$0xff] %vm503_vm1, %v1062_v54  ;;  %v763_v57 = vsel %vm503_vm1, %v1062_v54, 0.0  ;;  %v790_v58 = vmul.f32 %v1062_v54, %v1062_v54  ;;  %v977_v59 = vpop.f32.mrb[24].mxu1 }
 0x127   :  { %v817_v60 = vadd.f32 %v816_v56, %v815_v48  ;;  %v764_v61 = vadd.f32 %v763_v57, %v762_v55  ;;  %v978_v62 = vpop.f32.mrb[25].mxu1 }
 0x128   :  { %v818_v63 = vsel %vm503_vm1, %v790_v58, 0.0  ;;  %v979_v0 = vadd.f32 %v978_v62, %v977_v59  ;;  %v980_v1 = vpop.f32.mrb[26].mxu1 }
 0x129   :  { %v819_v2 = vadd.f32 %v818_v63, %v817_v60  ;;  %v981_v3 = vpop.f32.mrb[27].mxu1 }
 0x12a   :  { %v1059_v4 = vadd.f32 %v1029_v27, %v979_v0  ;;  %v982_v5 = vadd.f32 %v981_v3, %v980_v1 }
 0x12c   :  { %736 = vst.msk [vmem:[%s1448_s4 + $0x70] sm:$0xff] %vm503_vm1, %v1059_v4  ;;  %v765_v6 = vsel %vm503_vm1, %v1059_v4, 0.0  ;;  %v791_v7 = vmul.f32 %v1059_v4, %v1059_v4  ;;  %v1061_v8 = vadd.f32 %v1030_v32, %v982_v5 }
 0x12d   :  { %v766_v9 = vadd.f32 %v765_v6, %v764_v61 }
 0x12e   :  { %v820_v10 = vsel %vm503_vm1, %v791_v7, 0.0  ;;  %737 = vst.msk [vmem:[%s1448_s4 + $0x78] sm:$0xff] %vm503_vm1, %v1061_v8  ;;  %v767_v11 = vsel %vm503_vm1, %v1061_v8, 0.0  ;;  %v792_v12 = vmul.f32 %v1061_v8, %v1061_v8 }
 0x12f   :  { %v821_v13 = vadd.f32 %v820_v10, %v819_v2  ;;  %v768_v14 = vadd.f32 %v767_v11, %v766_v9 }
 0x130   :  { %v822_v15 = vsel %vm503_vm1, %v792_v12, 0.0 }
 0x131   :  { %v769_v16 = vrot.slane %v768_v14, 4  ;;  %v823_v17 = vadd.f32 %v822_v15, %v821_v13 }
 0x133   :  { %v770_v18 = vadd.f32 %v769_v16, %v768_v14  ;;  %v824_v19 = vrot.slane %v823_v17, 4 }
 0x135   :  { %v771_v20 = vrot.slane %v770_v18, 2  ;;  %v825_v21 = vadd.f32 %v824_v19, %v823_v17 }
 0x137   :  { %v772_v22 = vadd.f32 %v771_v20, %v770_v18  ;;  %v826_v23 = vrot.slane %v825_v21, 2 }
 0x139   :  { %v773_v24 = vrot.slane %v772_v22, 1  ;;  %v827_v25 = vadd.f32 %v826_v23, %v825_v21 }
 0x13b   :  { %v774_v26 = vadd.f32 %v773_v24, %v772_v22  ;;  %v828_v27 = vrot.slane %v827_v25, 1 }
 0x13d   :  { %776 = vst.msk [vmem:[%s1449_s5] sm:$0x1] %vm775_vm2, %v774_v26  ;;  %v829_v28 = vadd.f32 %v828_v27, %v827_v25 }
 0x13f   :  { %830 = vst.msk [vmem:[%s1450_s6] sm:$0x1] %vm775_vm2, %v829_v28 }

// kernel: wide_resnet_forward.20
= control target key start
LH: loop header
LB: loop body
LE: loop exit
PB: predicated region body
PF: predicated region fallthrough
CT: control target
= control target key end

     0   :  { %vm197_vm0 = vcmask 261120   ;;  %vm302_vm1 = vcmask 523264   ;;  %vm320_vm2 = vcmask 516096   ;;  %s571_s1 = inlined_call_operand.vmem [shape: bf16[288,64], index: 1, kind: input, shape index: {}]   ;;  %s572_s0 = inlined_call_operand.vmem [shape: bf16[32,288], index: 0, kind: input, shape index: {}]   ;;  %s573_s2 = inlined_call_operand.vmem [shape: f32[32,64], index: 2, kind: output, shape index: {0}]   ;;  %s574_s3 = inlined_call_operand.vmem [shape: f32[1,1,64], index: 3, kind: output, shape index: {1}]   ;;  %s575_s4 = inlined_call_operand.vmem [shape: f32[1,1,64], index: 4, kind: output, shape index: {2}]  }
   0x1   :  { %v418_v0 = vld [vmem:[%s571_s1 + $0x40] sm:$0xff]   ;;  %v420_v2 = vld [vmem:[%s571_s1 + $0x48] sm:$0xff]   ;;  %v422_v4 = vld [vmem:[%s571_s1 + $0x50] sm:$0xff]  }
   0x2   :  { %v419_v1 = vld [vmem:[%s571_s1] sm:$0xff]   ;;  %378 = vmatprep.subr.bf16.mxu0 %v418_v0  ;;  %v421_v3 = vld [vmem:[%s571_s1 + $0x8] sm:$0xff]   ;;  %v423_v5 = vld [vmem:[%s571_s1 + $0x10] sm:$0xff]  }
   0x3   :  { %379 = vmatpush3.bf16.msra.mxu0 %v419_v1  ;;  %v424_v6 = vld [vmem:[%s571_s1 + $0x58] sm:$0xff]   ;;  %v426_v8 = vld [vmem:[%s571_s1 + $0x60] sm:$0xff]   ;;  %v428_v11 = vld [vmem:[%s571_s1 + $0x68] sm:$0xff]  }
   0x4   :  { %380 = vmatprep.subr.bf16.mxu0 %v420_v2  ;;  %v425_v7 = vld [vmem:[%s571_s1 + $0x18] sm:$0xff]   ;;  %v432_v9 = vld [vmem:[%s571_s1 + $0x80] sm:$0xff]   ;;  %v429_v12 = vld [vmem:[%s571_s1 + $0x28] sm:$0xff]  }
   0x5   :  { %v427_v10 = vld [vmem:[%s571_s1 + $0x20] sm:$0xff]   ;;  %410 = vmatprep.subr.bf16.mxu1 %v432_v9  ;;  %v435_v13 = vld [vmem:[%s571_s1 + $0x88] sm:$0xff]   ;;  %v430_v14 = vld [vmem:[%s571_s1 + $0x70] sm:$0xff]  }
   0x6   :  { %411 = vmatpush3.bf16.msra.mxu1 %v432_v9  ;;  %v438_v15 = vld [vmem:[%s572_s0 + $0x4] ss:$12 sps:$4 sm:$0xff]   ;;  %v439_v16 = vld [vmem:[%s572_s0 + $0x8] ss:$12 sps:$4 sm:$0xff]   ;;  %v440_v17 = vld [vmem:[%s572_s0 + $0x20] ss:$12 sps:$4 sm:$0xff]  }
   0x7   :  { %381 = vmatpush3.bf16.msra.mxu0 %v421_v3  ;;  %412 = vmatprep.subr.bf16.mxu1 %v435_v13  ;;  %v431_v18 = vld [vmem:[%s571_s1 + $0x30] sm:$0xff]   ;;  %v433_v19 = vld [vmem:[%s571_s1 + $0x78] sm:$0xff]   ;;  %v436_v21 = vld [vmem:[%s572_s0] ss:$12 sps:$4 sm:$0xff]  }
   0x8   :  { %382 = vmatprep.subr.bf16.mxu0 %v422_v4  ;;  %236 = vmatprep.mubr.bf16.mxu0 %v438_v15  ;;  %v434_v20 = vld [vmem:[%s571_s1 + $0x38] sm:$0xff]  }
   0x9   :  { %414 = vmatprep.mubr.msk.bf16.mxu1 %vm197_vm0, %v439_v16  ;;  %v441_v22 = vld [vmem:[%s572_s0 + $0x1c] ss:$12 sps:$4 sm:$0xff]   ;;  %v443_v23 = vld [vmem:[%s572_s0 + $0x18] ss:$12 sps:$4 sm:$0xff]  }
   0xa   :  { %413 = vmatpush3.bf16.msra.mxu1 %v435_v13 }
   0xb   :  { %383 = vmatpush3.bf16.msra.mxu0 %v423_v5 }
   0xc   :  { %384 = vmatprep.subr.bf16.mxu0 %v424_v6 }
   0xd   :  { %415 = vmatmul.mubr.msk.bf16.vlgmr.msra.gmra.mrb[0].mxu1 %vm197_vm0, %v440_v17 }
   0xf   :  { %385 = vmatpush3.bf16.msra.mxu0 %v425_v7 }
  0x10   :  { %386 = vmatprep.subr.bf16.mxu0 %v426_v8 }
  0x13   :  { %387 = vmatpush3.bf16.msra.mxu0 %v427_v10 }
  0x14   :  { %388 = vmatprep.subr.bf16.mxu0 %v428_v11 }
  0x17   :  { %389 = vmatpush3.bf16.msra.mxu0 %v429_v12 }
  0x18   :  { %390 = vmatprep.subr.bf16.mxu0 %v430_v14 }
  0x1b   :  { %391 = vmatpush3.bf16.msra.mxu0 %v431_v18 }
  0x1c   :  { %392 = vmatprep.subr.bf16.mxu0 %v433_v19 }
  0x1f   :  { %393 = vmatpush3.bf16.msra.mxu0 %v434_v20 }
  0x22   :  { %237 = vmatmul.mubr.bf16.vlgmr.msra.gmra.mrb[0].mxu0 %v436_v21 }
  0x23   :  { %244 = vmatprep.mubr.bf16.mxu0 %v441_v22 }
  0x2a   :  { %245 = vmatmul.mubr.bf16.gmra.mrb[4].mxu0 %v443_v23 }
  0xe0   :  { %v416_v24 = vpop.f32.mrb[0].mxu1 }
  0xe1   :  { %v287_v25 = vpop.f32.mrb[1].mxu1 }
  0xe2   :  { %v417_v26 = vpop.f32.mrb[2].mxu1 }
  0xe3   :  { %v290_v27 = vpop.f32.mrb[3].mxu1 }
  0xf5   :  { %v394_v28 = vpop.f32.mrb[0].mxu0 }
  0xf6   :  { %v395_v29 = vpop.f32.mrb[1].mxu0 }
  0xf7   :  { %v396_v30 = vadd.f32 %v395_v29, %v394_v28  ;;  %v397_v31 = vpop.f32.mrb[2].mxu0 }
  0xf8   :  { %v398_v32 = vpop.f32.mrb[3].mxu0 }
  0xf9   :  { %v399_v33 = vadd.f32 %v398_v32, %v397_v31  ;;  %v288_v34 = vadd.f32 %v396_v30, %v287_v25 }
  0xfb   :  { %303 = vst.msk [vmem:[%s573_s2] sm:$0xff] %vm302_vm1, %v288_v34  ;;  %v322_v35 = vmul.f32 %v288_v34, %v288_v34  ;;  %v291_v36 = vadd.f32 %v399_v33, %v290_v27  ;;  %v307_v37 = vsel %vm302_vm1, %v288_v34, 0.0 }
  0xfd   :  { %304 = vst.msk [vmem:[%s573_s2 + $0x8] sm:$0xff] %vm302_vm1, %v291_v36  ;;  %v308_v38 = vsel %vm302_vm1, %v291_v36, 0.0  ;;  %v323_v39 = vmul.f32 %v291_v36, %v291_v36  ;;  %v400_v40 = vpop.f32.mrb[4].mxu0  ;;  %v326_v43 = vsel %vm302_vm1, %v322_v35, 0.0 }
  0xfe   :  { %v309_v41 = vadd.f32 %v308_v38, %v307_v37  ;;  %v401_v42 = vpop.f32.mrb[5].mxu0 }
  0xff   :  { %v327_v44 = vsel %vm302_vm1, %v323_v39, 0.0  ;;  %v402_v45 = vadd.f32 %v401_v42, %v400_v40  ;;  %v403_v46 = vpop.f32.mrb[6].mxu0 }
 0x100   :  { %v328_v47 = vadd.f32 %v327_v44, %v326_v43  ;;  %v404_v48 = vpop.f32.mrb[7].mxu0 }
 0x101   :  { %v296_v49 = vadd.f32 %v416_v24, %v402_v45  ;;  %v405_v50 = vadd.f32 %v404_v48, %v403_v46 }
 0x103   :  { %305 = vst.msk [vmem:[%s573_s2 + $0x10] sm:$0xff] %vm302_vm1, %v296_v49  ;;  %v310_v51 = vsel %vm302_vm1, %v296_v49, 0.0  ;;  %v324_v52 = vmul.f32 %v296_v49, %v296_v49  ;;  %v299_v53 = vadd.f32 %v417_v26, %v405_v50 }
 0x104   :  { %v311_v54 = vadd.f32 %v310_v51, %v309_v41 }
 0x105   :  { %v329_v55 = vsel %vm302_vm1, %v324_v52, 0.0  ;;  %306 = vst.msk [vmem:[%s573_s2 + $0x18] sm:$0xff] %vm302_vm1, %v299_v53  ;;  %v312_v56 = vsel %vm302_vm1, %v299_v53, 0.0  ;;  %v325_v57 = vmul.f32 %v299_v53, %v299_v53 }
 0x106   :  { %v330_v58 = vadd.f32 %v329_v55, %v328_v47  ;;  %v313_v59 = vadd.f32 %v312_v56, %v311_v54 }
 0x107   :  { %v331_v60 = vsel %vm302_vm1, %v325_v57, 0.0 }
 0x108   :  { %v314_v61 = vrot.slane %v313_v59, 4  ;;  %v332_v62 = vadd.f32 %v331_v60, %v330_v58 }
 0x10a   :  { %v315_v63 = vadd.f32 %v314_v61, %v313_v59  ;;  %v333_v0 = vrot.slane %v332_v62, 4 }
 0x10c   :  { %v316_v1 = vrot.slane %v315_v63, 2  ;;  %v334_v2 = vadd.f32 %v333_v0, %v332_v62 }
 0x10e   :  { %v317_v3 = vadd.f32 %v316_v1, %v315_v63  ;;  %v335_v4 = vrot.slane %v334_v2, 2 }
 0x110   :  { %v318_v5 = vrot.slane %v317_v3, 1  ;;  %v336_v6 = vadd.f32 %v335_v4, %v334_v2 }
 0x112   :  { %v319_v7 = vadd.f32 %v318_v5, %v317_v3  ;;  %v337_v8 = vrot.slane %v336_v6, 1 }
 0x114   :  { %321 = vst.msk [vmem:[%s574_s3] sm:$0x1] %vm320_vm2, %v319_v7  ;;  %v338_v9 = vadd.f32 %v337_v8, %v336_v6 }
 0x116   :  { %339 = vst.msk [vmem:[%s575_s4] sm:$0x1] %vm320_vm2, %v338_v9 }

// kernel: wide_resnet_forward.21
= control target key start
LH: loop header
LB: loop body
LE: loop exit
PB: predicated region body
PF: predicated region fallthrough
CT: control target
= control target key end

     0   :  { %vm60_vm0 = vcmask 519168   ;;  %s129_s0 = inlined_call_operand.vmem [shape: f32[32,64], index: 0, kind: input, shape index: {}]   ;;  %s130_s1 = inlined_call_operand.vmem [shape: f32[1,64], index: 1, kind: input, shape index: {}]   ;;  %s131_s2 = inlined_call_operand.vmem [shape: f32[1,64], index: 2, kind: input, shape index: {}]   ;;  %s132_s3 = inlined_call_operand.vmem [shape: bf16[32,64], index: 3, kind: output, shape index: {}]  }
   0x1   :  { %v14_v0 = vld [vmem:[%s129_s0] sm:$0xff]  ;;  %v15_v4 = vld [vmem:[%s129_s0 + $0x8] sm:$0xff]  ;;  %v16_v5 = vld [vmem:[%s129_s0 + $0x10] sm:$0xff] }
   0x2   :  { %v69_v1 = vld [vmem:[%s130_s1] ss:$0 sm:$0xff]  ;;  %v17_v6 = vld [vmem:[%s129_s0 + $0x18] sm:$0xff] }
   0x3   :  { %v70_v2 = vld [vmem:[%s131_s2] ss:$0 sm:$0xff]  ;;  %v25_v3 = vmul.f32 %v69_v1, %v14_v0  ;;  %v26_v7 = vmul.f32 %v69_v1, %v15_v4  ;;  %v27_v8 = vmul.f32 %v69_v1, %v16_v5  ;;  %v28_v9 = vmul.f32 %v69_v1, %v17_v6 }
   0x5   :  { %v36_v10 = vadd.f32 %v70_v2, %v25_v3  ;;  %v37_v11 = vadd.f32 %v70_v2, %v26_v7  ;;  %v38_v12 = vadd.f32 %v70_v2, %v27_v8  ;;  %v39_v13 = vadd.f32 %v70_v2, %v28_v9 }
   0x7   :  { %v40_v14 = vmax.f32 %v36_v10, 0.0  ;;  %v41_v15 = vmax.f32 %v37_v11, 0.0  ;;  %v42_v16 = vmax.f32 %v38_v12, 0.0  ;;  %v43_v17 = vmax.f32 %v39_v13, 0.0 }
   0x9   :  { %v75_v18 = vpack.c.bf16 %v40_v14, %v40_v14  ;;  %v76_v19 = vpack.c.bf16 %v41_v15, %v41_v15  ;;  %v77_v20 = vpack.c.bf16 %v42_v16, %v42_v16  ;;  %v78_v21 = vpack.c.bf16 %v43_v17, %v43_v17 }
   0xb   :  { %61 = vst.msk [vmem:[%s132_s3] sm:$0xf] %vm60_vm0, %v75_v18  ;;  %62 = vst.msk [vmem:[%s132_s3 + $0x4] sm:$0xf] %vm60_vm0, %v76_v19 }
   0xc   :  { %63 = vst.msk [vmem:[%s132_s3 + $0x8] sm:$0xf] %vm60_vm0, %v77_v20  ;;  %64 = vst.msk [vmem:[%s132_s3 + $0xc] sm:$0xf] %vm60_vm0, %v78_v21 }

// kernel: wide_resnet_forward.25
= control target key start
LH: loop header
LB: loop body
LE: loop exit
PB: predicated region body
PF: predicated region fallthrough
CT: control target
= control target key end

     0   :  { %s72_s0 = inlined_call_operand.vmem [shape: f32[8,128], index: 0, kind: input, shape index: {}]   ;;  %s73_s1 = inlined_call_operand.vmem [shape: f32[1,128], index: 1, kind: input, shape index: {}]   ;;  %s74_s2 = inlined_call_operand.vmem [shape: f32[1,128], index: 2, kind: input, shape index: {}]   ;;  %s75_s3 = inlined_call_operand.vmem [shape: bf16[8,128], index: 3, kind: output, shape index: {}]  }
   0x1   :  { %v14_v0 = vld [vmem:[%s72_s0] sm:$0xff] }
   0x2   :  { %v38_v1 = vld [vmem:[%s73_s1] ss:$0 sm:$0xff] }
   0x3   :  { %v39_v2 = vld [vmem:[%s74_s2] ss:$0 sm:$0xff]  ;;  %v22_v3 = vmul.f32 %v38_v1, %v14_v0 }
   0x5   :  { %v30_v4 = vadd.f32 %v39_v2, %v22_v3 }
   0x7   :  { %v31_v5 = vmax.f32 %v30_v4, 0.0 }
   0x9   :  { %v32_v6 = vpack.c.bf16 %v31_v5, %v31_v5 }
   0xb   :  { %33 = vst [vmem:[%s75_s3] sm:$0xf] %v32_v6 }

// kernel: wide_resnet_forward.22
= control target key start
LH: loop header
LB: loop body
LE: loop exit
PB: predicated region body
PF: predicated region fallthrough
CT: control target
= control target key end

     0   :  { %vm135_vm0 = vcmask 261120   ;;  %vm457_vm1 = vcmask 523264   ;;  %vm628_vm2 = vcmask 516096   ;;  %s1083_s3 = inlined_call_operand.vmem [shape: bf16[32,64], index: 3, kind: input, shape index: {}]   ;;  %s1084_s1 = inlined_call_operand.vmem [shape: bf16[576,64], index: 1, kind: input, shape index: {}]   ;;  %s1085_s2 = inlined_call_operand.vmem [shape: bf16[32,32], index: 2, kind: input, shape index: {}]   ;;  %s1086_s0 = inlined_call_operand.vmem [shape: bf16[32,576], index: 0, kind: input, shape index: {}]   ;;  %s1087_s4 = inlined_call_operand.vmem [shape: f32[32,64], index: 4, kind: output, shape index: {0}]   ;;  %s1088_s5 = inlined_call_operand.vmem [shape: f32[1,1,64], index: 5, kind: output, shape index: {1}]   ;;  %s1089_s6 = inlined_call_operand.vmem [shape: f32[1,1,64], index: 6, kind: output, shape index: {2}]  }
   0x1   :  { %v812_v0 = vld [vmem:[%s1083_s3] sm:$0xff]   ;;  %v815_v3 = vld [vmem:[%s1083_s3 + $0x8] sm:$0xff]   ;;  %v821_v9 = vld [vmem:[%s1084_s1 + $0xd0] sm:$0xff]  }
   0x2   :  { %v813_v1 = vld [vmem:[%s1084_s1 + $0xc0] sm:$0xff]   ;;  %780 = vmatprep.subr.bf16.mxu1 %v812_v0  ;;  %v816_v4 = vld [vmem:[%s1084_s1 + $0xc8] sm:$0xff]   ;;  %v823_v11 = vld [vmem:[%s1084_s1 + $0x90] sm:$0xff]  }
   0x3   :  { %v814_v2 = vld [vmem:[%s1084_s1 + $0x80] sm:$0xff]   ;;  %746 = vmatprep.subr.bf16.mxu0 %v813_v1  ;;  %781 = vmatpush3.bf16.msra.mxu1 %v812_v0  ;;  %v817_v5 = vld [vmem:[%s1084_s1 + $0x88] sm:$0xff]   ;;  %v825_v13 = vld [vmem:[%s1084_s1 + $0xd8] sm:$0xff]  }
   0x4   :  { %747 = vmatpush3.bf16.msra.mxu0 %v814_v2  ;;  %782 = vmatprep.subr.bf16.mxu1 %v815_v3  ;;  %v818_v6 = vld [vmem:[%s1085_s2] sm:$0xff]   ;;  %v819_v7 = vld [vmem:[%s1085_s2 + $0x8] sm:$0xff]   ;;  %v827_v15 = vld [vmem:[%s1084_s1 + $0x98] sm:$0xff]  }
   0x5   :  { %748 = vmatprep.subr.bf16.mxu0 %v816_v4  ;;  %784 = vmatprep.mubr.msk.bf16.mxu1 %vm135_vm0, %v818_v6  ;;  %v820_v8 = vld [vmem:[%s1084_s1 + $0x40] sm:$0xff]   ;;  %v824_v12 = vld [vmem:[%s1084_s1 + $0x48] sm:$0xff]   ;;  %v828_v16 = vld [vmem:[%s1084_s1 + $0x50] sm:$0xff]  }
   0x6   :  { %v822_v10 = vld [vmem:[%s1084_s1] sm:$0xff]   ;;  %v826_v14 = vld [vmem:[%s1084_s1 + $0x8] sm:$0xff]   ;;  %v830_v18 = vld [vmem:[%s1084_s1 + $0x10] sm:$0xff]  }
   0x7   :  { %783 = vmatpush3.bf16.msra.mxu1 %v815_v3  ;;  %v829_v17 = vld [vmem:[%s1084_s1 + $0xe0] sm:$0xff]   ;;  %v832_v20 = vld [vmem:[%s1084_s1 + $0x58] sm:$0xff]   ;;  %v833_v21 = vld [vmem:[%s1084_s1 + $0xe8] sm:$0xff]  }
   0x8   :  { %749 = vmatpush3.bf16.msra.mxu0 %v817_v5  ;;  %718 = vmatprep.subr.bf16.mxu1 %v820_v8  ;;  %v831_v19 = vld [vmem:[%s1084_s1 + $0xa0] sm:$0xff]   ;;  %v834_v22 = vld [vmem:[%s1084_s1 + $0x18] sm:$0xff]   ;;  %v835_v23 = vld [vmem:[%s1084_s1 + $0xa8] sm:$0xff]  }
   0x9   :  { %750 = vmatprep.subr.bf16.mxu0 %v821_v9  ;;  %v836_v24 = vld [vmem:[%s1084_s1 + $0x60] sm:$0xff]   ;;  %v837_v25 = vld [vmem:[%s1084_s1 + $0xf0] sm:$0xff]   ;;  %v840_v28 = vld [vmem:[%s1084_s1 + $0x68] sm:$0xff]  }
   0xa   :  { %785 = vmatmul.mubr.msk.bf16.vlgmr.msra.gmra.mrb[0].mxu1 %vm135_vm0, %v819_v7  ;;  %v838_v26 = vld [vmem:[%s1084_s1 + $0x20] sm:$0xff]   ;;  %v839_v27 = vld [vmem:[%s1084_s1 + $0xb0] sm:$0xff]   ;;  %v841_v29 = vld [vmem:[%s1084_s1 + $0xf8] sm:$0xff]  }
   0xb   :  { %719 = vmatpush3.bf16.msra.mxu1 %v822_v10  ;;  %v842_v30 = vld [vmem:[%s1084_s1 + $0x28] sm:$0xff]   ;;  %v843_v31 = vld [vmem:[%s1084_s1 + $0xb8] sm:$0xff]   ;;  %v847_v34 = vld [vmem:[%s1084_s1 + $0x70] sm:$0xff]  }
   0xc   :  { %751 = vmatpush3.bf16.msra.mxu0 %v823_v11  ;;  %720 = vmatprep.subr.bf16.mxu1 %v824_v12  ;;  %v844_v32 = vld [vmem:[%s1086_s0 + $0x8] ss:$20 sps:$4 sm:$0xff]   ;;  %v846_v33 = vld [vmem:[%s1086_s0 + $0xc] ss:$20 sps:$4 sm:$0xff]   ;;  %v849_v36 = vld [vmem:[%s1084_s1 + $0x30] sm:$0xff]  }
   0xd   :  { %752 = vmatprep.subr.bf16.mxu0 %v825_v13  ;;  %545 = vmatprep.mubr.bf16.mxu0 %v846_v33  ;;  %v848_v35 = vld [vmem:[%s1084_s1 + $0x100] sm:$0xff]   ;;  %v850_v37 = vld [vmem:[%s1084_s1 + $0x78] sm:$0xff]   ;;  %v851_v38 = vld [vmem:[%s1084_s1 + $0x108] sm:$0xff]  }
   0xe   :  { %v852_v39 = vld [vmem:[%s1084_s1 + $0x38] sm:$0xff]   ;;  %v853_v40 = vld [vmem:[%s1086_s0] ss:$20 sps:$4 sm:$0xff]   ;;  %v858_v43 = vld [vmem:[%s1086_s0 + $0x30] ss:$20 sps:$4 sm:$0xff]  }
   0xf   :  { %721 = vmatpush3.bf16.msra.mxu1 %v826_v14  ;;  %v855_v41 = vld [vmem:[%s1086_s0 + $0x4] ss:$20 sps:$4 sm:$0xff]   ;;  %v856_v42 = vld [vmem:[%s1086_s0 + $0x34] ss:$20 sps:$4 sm:$0xff]   ;;  %v861_v46 = vld [vmem:[%s1086_s0 + $0x2c] ss:$20 sps:$4 sm:$0xff]  }
  0x10   :  { %753 = vmatpush3.bf16.msra.mxu0 %v827_v15  ;;  %722 = vmatprep.subr.bf16.mxu1 %v828_v16  ;;  %v859_v44 = vld [vmem:[%s1084_s1 + $0x110] sm:$0xff]   ;;  %v860_v45 = vld [vmem:[%s1084_s1 + $0x118] sm:$0xff]  }
  0x11   :  { %754 = vmatprep.subr.bf16.mxu0 %v829_v17  ;;  %496 = vmatprep.mubr.bf16.mxu1 %v855_v41  ;;  %v863_v47 = vld [vmem:[%s1086_s0 + $0x10] ss:$20 sps:$4 sm:$0xff]   ;;  %v864_v48 = vld [vmem:[%s1086_s0 + $0x28] ss:$20 sps:$4 sm:$0xff]   ;;  %v865_v49 = vld [vmem:[%s1086_s0 + $0x38] ss:$20 sps:$4 sm:$0xff]  }
  0x13   :  { %723 = vmatpush3.bf16.msra.mxu1 %v830_v18 }
  0x14   :  { %755 = vmatpush3.bf16.msra.mxu0 %v831_v19  ;;  %724 = vmatprep.subr.bf16.mxu1 %v832_v20 }
  0x15   :  { %756 = vmatprep.subr.bf16.mxu0 %v833_v21 }
  0x17   :  { %725 = vmatpush3.bf16.msra.mxu1 %v834_v22 }
  0x18   :  { %757 = vmatpush3.bf16.msra.mxu0 %v835_v23  ;;  %726 = vmatprep.subr.bf16.mxu1 %v836_v24 }
  0x19   :  { %758 = vmatprep.subr.bf16.mxu0 %v837_v25 }
  0x1b   :  { %727 = vmatpush3.bf16.msra.mxu1 %v838_v26 }
  0x1c   :  { %759 = vmatpush3.bf16.msra.mxu0 %v839_v27  ;;  %728 = vmatprep.subr.bf16.mxu1 %v840_v28 }
  0x1d   :  { %760 = vmatprep.subr.bf16.mxu0 %v841_v29 }
  0x1f   :  { %729 = vmatpush3.bf16.msra.mxu1 %v842_v30 }
  0x20   :  { %761 = vmatpush3.bf16.msra.mxu0 %v843_v31  ;;  %730 = vmatprep.subr.bf16.mxu1 %v847_v34 }
  0x21   :  { %788 = vmatprep.subr.bf16.mxu0 %v848_v35 }
  0x23   :  { %546 = vmatmul.mubr.bf16.vlgmr.msra.gmra.mrb[0].mxu0 %v844_v32  ;;  %731 = vmatpush3.bf16.msra.mxu1 %v849_v36 }
  0x24   :  { %789 = vmatpush3.bf16.msra.mxu0 %v848_v35  ;;  %732 = vmatprep.subr.bf16.mxu1 %v850_v37 }
  0x25   :  { %790 = vmatprep.subr.bf16.mxu0 %v851_v38  ;;  %553 = vmatprep.mubr.bf16.mxu0 %v856_v42 }
  0x27   :  { %733 = vmatpush3.bf16.msra.mxu1 %v852_v39 }
  0x28   :  { %791 = vmatpush3.bf16.msra.mxu0 %v851_v38 }
  0x29   :  { %792 = vmatprep.subr.bf16.mxu0 %v859_v44 }
  0x2a   :  { %497 = vmatmul.mubr.bf16.vlgmr.msra.gmra.mrb[4].mxu1 %v853_v40 }
  0x2b   :  { %554 = vmatmul.mubr.bf16.gmra.mrb[4].mxu0 %v858_v43  ;;  %504 = vmatprep.mubr.bf16.mxu1 %v861_v46 }
  0x2c   :  { %793 = vmatpush3.bf16.msra.mxu0 %v859_v44  ;;  %796 = vmatprep.mubr.msk.bf16.mxu0 %vm457_vm1, %v863_v47 }
  0x2d   :  { %794 = vmatprep.subr.bf16.mxu0 %v860_v45 }
  0x30   :  { %795 = vmatpush3.bf16.msra.mxu0 %v860_v45 }
  0x32   :  { %505 = vmatmul.mubr.bf16.gmra.mrb[8].mxu1 %v864_v48 }
  0x33   :  { %797 = vmatmul.mubr.msk.bf16.vlgmr.msra.gmra.mrb[8].mxu0 %vm457_vm1, %v865_v49 }
  0xdd   :  { %v786_v50 = vpop.f32.mrb[0].mxu1 }
  0xde   :  { %v176_v51 = vpop.f32.mrb[1].mxu1 }
  0xdf   :  { %v787_v52 = vpop.f32.mrb[2].mxu1 }
  0xe0   :  { %v179_v53 = vpop.f32.mrb[3].mxu1 }
  0xf6   :  { %v762_v54 = vpop.f32.mrb[0].mxu0 }
  0xf7   :  { %v763_v55 = vpop.f32.mrb[1].mxu0 }
  0xf8   :  { %v764_v56 = vadd.f32 %v763_v55, %v762_v54  ;;  %v765_v57 = vpop.f32.mrb[2].mxu0 }
  0xf9   :  { %v766_v58 = vpop.f32.mrb[3].mxu0 }
  0xfa   :  { %v767_v59 = vadd.f32 %v766_v58, %v765_v57 }
  0xfd   :  { %v734_v61 = vpop.f32.mrb[4].mxu1 }
  0xfe   :  { %v768_v60 = vpop.f32.mrb[4].mxu0  ;;  %v735_v63 = vpop.f32.mrb[5].mxu1 }
  0xff   :  { %v769_v62 = vpop.f32.mrb[5].mxu0  ;;  %v736_v2 = vadd.f32 %v735_v63, %v734_v61  ;;  %v737_v3 = vpop.f32.mrb[6].mxu1 }
 0x100   :  { %v770_v0 = vadd.f32 %v769_v62, %v768_v60  ;;  %v771_v1 = vpop.f32.mrb[6].mxu0  ;;  %v738_v5 = vpop.f32.mrb[7].mxu1 }
 0x101   :  { %v772_v4 = vpop.f32.mrb[7].mxu0  ;;  %v499_v7 = vadd.f32 %v736_v2, %v176_v51  ;;  %v739_v8 = vadd.f32 %v738_v5, %v737_v3 }
 0x102   :  { %v773_v6 = vadd.f32 %v772_v4, %v771_v1 }
 0x103   :  { %v502_v9 = vadd.f32 %v739_v8, %v179_v53  ;;  %v548_v10 = vadd.f32 %v764_v56, %v499_v7 }
 0x105   :  { %v740_v11 = vpop.f32.mrb[8].mxu1  ;;  %v551_v13 = vadd.f32 %v767_v59, %v502_v9 }
 0x106   :  { %v798_v12 = vpop.f32.mrb[8].mxu0  ;;  %v741_v14 = vpop.f32.mrb[9].mxu1 }
 0x107   :  { %v596_v15 = vpop.f32.mrb[9].mxu0  ;;  %v742_v16 = vadd.f32 %v741_v14, %v740_v11  ;;  %v743_v18 = vpop.f32.mrb[10].mxu1 }
 0x108   :  { %v597_v17 = vadd.f32 %v596_v15, %v548_v10  ;;  %v799_v19 = vpop.f32.mrb[10].mxu0  ;;  %v744_v20 = vpop.f32.mrb[11].mxu1 }
 0x109   :  { %v599_v21 = vpop.f32.mrb[11].mxu0  ;;  %v507_v22 = vadd.f32 %v786_v50, %v742_v16  ;;  %v745_v23 = vadd.f32 %v744_v20, %v743_v18 }
 0x10a   :  { %611 = vst.msk [vmem:[%s1087_s4] sm:$0xff] %vm457_vm1, %v597_v17  ;;  %v630_v24 = vmul.f32 %v597_v17, %v597_v17  ;;  %v600_v25 = vadd.f32 %v599_v21, %v551_v13  ;;  %v615_v28 = vsel %vm457_vm1, %v597_v17, 0.0 }
 0x10b   :  { %v556_v26 = vadd.f32 %v770_v0, %v507_v22  ;;  %v510_v27 = vadd.f32 %v787_v52, %v745_v23 }
 0x10c   :  { %612 = vst.msk [vmem:[%s1087_s4 + $0x8] sm:$0xff] %vm457_vm1, %v600_v25  ;;  %v616_v29 = vsel %vm457_vm1, %v600_v25, 0.0  ;;  %v631_v30 = vmul.f32 %v600_v25, %v600_v25  ;;  %v634_v34 = vsel %vm457_vm1, %v630_v24, 0.0 }
 0x10d   :  { %v605_v31 = vadd.f32 %v798_v12, %v556_v26  ;;  %v559_v32 = vadd.f32 %v773_v6, %v510_v27  ;;  %v617_v33 = vadd.f32 %v616_v29, %v615_v28 }
 0x10e   :  { %v635_v35 = vsel %vm457_vm1, %v631_v30, 0.0 }
 0x10f   :  { %v632_v36 = vmul.f32 %v605_v31, %v605_v31  ;;  %613 = vst.msk [vmem:[%s1087_s4 + $0x10] sm:$0xff] %vm457_vm1, %v605_v31  ;;  %v608_v37 = vadd.f32 %v799_v19, %v559_v32  ;;  %v618_v38 = vsel %vm457_vm1, %v605_v31, 0.0  ;;  %v636_v39 = vadd.f32 %v635_v35, %v634_v34 }
 0x110   :  { %v619_v40 = vadd.f32 %v618_v38, %v617_v33 }
 0x111   :  { %614 = vst.msk [vmem:[%s1087_s4 + $0x18] sm:$0xff] %vm457_vm1, %v608_v37  ;;  %v633_v41 = vmul.f32 %v608_v37, %v608_v37  ;;  %v620_v42 = vsel %vm457_vm1, %v608_v37, 0.0  ;;  %v637_v43 = vsel %vm457_vm1, %v632_v36, 0.0 }
 0x112   :  { %v621_v44 = vadd.f32 %v620_v42, %v619_v40  ;;  %v638_v45 = vadd.f32 %v637_v43, %v636_v39 }
 0x113   :  { %v639_v46 = vsel %vm457_vm1, %v633_v41, 0.0 }
 0x114   :  { %v622_v47 = vrot.slane %v621_v44, 4  ;;  %v640_v48 = vadd.f32 %v639_v46, %v638_v45 }
 0x116   :  { %v623_v49 = vadd.f32 %v622_v47, %v621_v44  ;;  %v641_v50 = vrot.slane %v640_v48, 4 }
 0x118   :  { %v624_v51 = vrot.slane %v623_v49, 2  ;;  %v642_v52 = vadd.f32 %v641_v50, %v640_v48 }
 0x11a   :  { %v625_v53 = vadd.f32 %v624_v51, %v623_v49  ;;  %v643_v54 = vrot.slane %v642_v52, 2 }
 0x11c   :  { %v626_v55 = vrot.slane %v625_v53, 1  ;;  %v644_v56 = vadd.f32 %v643_v54, %v642_v52 }
 0x11e   :  { %v627_v57 = vadd.f32 %v626_v55, %v625_v53  ;;  %v645_v58 = vrot.slane %v644_v56, 1 }
 0x120   :  { %629 = vst.msk [vmem:[%s1088_s5] sm:$0x1] %vm628_vm2, %v627_v57  ;;  %v646_v59 = vadd.f32 %v645_v58, %v644_v56 }
 0x122   :  { %647 = vst.msk [vmem:[%s1089_s6] sm:$0x1] %vm628_vm2, %v646_v59 }

// kernel: wide_resnet_forward.24
= control target key start
LH: loop header
LB: loop body
LE: loop exit
PB: predicated region body
PF: predicated region fallthrough
CT: control target
= control target key end

     0   :  { %v621_v36 = vmov 0.0   ;;  %vm622_vm0 = vmmov 0   ;;  %vm323_vm1 = vcmask 523264   ;;  %s774_s1 = inlined_call_operand.vmem [shape: bf16[576,128], index: 1, kind: input, shape index: {}]   ;;  %s775_s0 = inlined_call_operand.vmem [shape: bf16[8,576], index: 0, kind: input, shape index: {}]   ;;  %s776_s2 = inlined_call_operand.vmem [shape: f32[8,128], index: 2, kind: output, shape index: {0}]   ;;  %s777_s3 = inlined_call_operand.vmem [shape: f32[1,1,128], index: 3, kind: output, shape index: {1}]   ;;  %s778_s4 = inlined_call_operand.vmem [shape: f32[1,1,128], index: 4, kind: output, shape index: {2}]  }
   0x1   :  { %v580_v0 = vld [vmem:[%s774_s1 + $0x40] sm:$0xff]   ;;  %v584_v4 = vld [vmem:[%s774_s1 + $0x48] sm:$0xff]   ;;  %v588_v8 = vld [vmem:[%s774_s1 + $0x50] sm:$0xff]  }
   0x2   :  { %v581_v1 = vld [vmem:[%s774_s1 + $0xc0] sm:$0xff]   ;;  %517 = vmatprep.subr.bf16.mxu0 %v580_v0  ;;  %v585_v5 = vld [vmem:[%s774_s1 + $0xc8] sm:$0xff]   ;;  %v589_v9 = vld [vmem:[%s774_s1 + $0xd0] sm:$0xff]  }
   0x3   :  { %v582_v2 = vld [vmem:[%s774_s1] sm:$0xff]   ;;  %539 = vmatprep.subr.bf16.mxu1 %v581_v1  ;;  %v586_v6 = vld [vmem:[%s774_s1 + $0x8] sm:$0xff]   ;;  %v590_v10 = vld [vmem:[%s774_s1 + $0x10] sm:$0xff]  }
   0x4   :  { %v583_v3 = vld [vmem:[%s774_s1 + $0x80] sm:$0xff]   ;;  %518 = vmatpush3.bf16.msra.mxu0 %v582_v2  ;;  %v587_v7 = vld [vmem:[%s774_s1 + $0x88] sm:$0xff]   ;;  %v591_v11 = vld [vmem:[%s774_s1 + $0x90] sm:$0xff]  }
   0x5   :  { %540 = vmatpush3.bf16.msra.mxu1 %v583_v3  ;;  %519 = vmatprep.subr.bf16.mxu0 %v584_v4  ;;  %v592_v12 = vld [vmem:[%s774_s1 + $0x58] sm:$0xff]   ;;  %v596_v16 = vld [vmem:[%s774_s1 + $0x60] sm:$0xff]   ;;  %v600_v20 = vld [vmem:[%s774_s1 + $0x68] sm:$0xff]  }
   0x6   :  { %541 = vmatprep.subr.bf16.mxu1 %v585_v5  ;;  %v593_v13 = vld [vmem:[%s774_s1 + $0xd8] sm:$0xff]   ;;  %v597_v17 = vld [vmem:[%s774_s1 + $0xe0] sm:$0xff]   ;;  %v601_v21 = vld [vmem:[%s774_s1 + $0xe8] sm:$0xff]  }
   0x7   :  { %v594_v14 = vld [vmem:[%s774_s1 + $0x18] sm:$0xff]   ;;  %v598_v18 = vld [vmem:[%s774_s1 + $0x20] sm:$0xff]   ;;  %v602_v22 = vld [vmem:[%s774_s1 + $0x28] sm:$0xff]  }
   0x8   :  { %520 = vmatpush3.bf16.msra.mxu0 %v586_v6  ;;  %v595_v15 = vld [vmem:[%s774_s1 + $0x98] sm:$0xff]   ;;  %v599_v19 = vld [vmem:[%s774_s1 + $0xa0] sm:$0xff]   ;;  %v603_v23 = vld [vmem:[%s774_s1 + $0xa8] sm:$0xff]  }
   0x9   :  { %542 = vmatpush3.bf16.msra.mxu1 %v587_v7  ;;  %521 = vmatprep.subr.bf16.mxu0 %v588_v8  ;;  %v604_v24 = vld [vmem:[%s774_s1 + $0x70] sm:$0xff]   ;;  %v608_v28 = vld [vmem:[%s774_s1 + $0x78] sm:$0xff]   ;;  %v15_v32 = vld [vmem:[%s775_s0] sm:$0xff] }
   0xa   :  { %543 = vmatprep.subr.bf16.mxu1 %v589_v9  ;;  %v605_v25 = vld [vmem:[%s774_s1 + $0xf0] sm:$0xff]   ;;  %v609_v29 = vld [vmem:[%s774_s1 + $0xf8] sm:$0xff]   ;;  %v475_v33 = vcombine.low %v15_v32, %v15_v32  ;;  %v476_v34 = vcombine.high %v15_v32, %v15_v32  ;;  %v16_v35 = vld [vmem:[%s775_s0 + $0x8] sm:$0xff] }
   0xb   :  { %v606_v26 = vld [vmem:[%s774_s1 + $0x30] sm:$0xff]   ;;  %v610_v30 = vld [vmem:[%s774_s1 + $0x38] sm:$0xff]   ;;  %v477_v37 = vcombine.low %v16_v35, %v16_v35  ;;  %v478_v38 = vcombine.high %v16_v35, %v16_v35  ;;  %v617_v39 = vld [vmem:[%s774_s1 + $0x100] sm:$0xff]  }
   0xc   :  { %522 = vmatpush3.bf16.msra.mxu0 %v590_v10  ;;  %v607_v27 = vld [vmem:[%s774_s1 + $0xb0] sm:$0xff]   ;;  %v611_v31 = vld [vmem:[%s774_s1 + $0xb8] sm:$0xff]   ;;  %359 = vmatprep.mubr.bf16.mxu0 %v476_v34  ;;  %v618_v40 = vld [vmem:[%s774_s1 + $0x108] sm:$0xff]  }
   0xd   :  { %544 = vmatpush3.bf16.msra.mxu1 %v591_v11  ;;  %523 = vmatprep.subr.bf16.mxu0 %v592_v12  ;;  %v619_v41 = vld [vmem:[%s774_s1 + $0x110] sm:$0xff]   ;;  %v620_v42 = vld [vmem:[%s774_s1 + $0x118] sm:$0xff]  }
   0xe   :  { %545 = vmatprep.subr.bf16.mxu1 %v593_v13  ;;  %399 = vmatprep.mubr.bf16.mxu1 %v478_v38  ;;  %v614_v43 = vld [vmem:[%s775_s0 + $0x10] ss:$0 sps:$4 sm:$0xff]  }
  0x10   :  { %524 = vmatpush3.bf16.msra.mxu0 %v594_v14 }
  0x11   :  { %546 = vmatpush3.bf16.msra.mxu1 %v595_v15  ;;  %525 = vmatprep.subr.bf16.mxu0 %v596_v16 }
  0x12   :  { %547 = vmatprep.subr.bf16.mxu1 %v597_v17 }
  0x14   :  { %526 = vmatpush3.bf16.msra.mxu0 %v598_v18 }
  0x15   :  { %548 = vmatpush3.bf16.msra.mxu1 %v599_v19  ;;  %527 = vmatprep.subr.bf16.mxu0 %v600_v20 }
  0x16   :  { %549 = vmatprep.subr.bf16.mxu1 %v601_v21 }
  0x18   :  { %528 = vmatpush3.bf16.msra.mxu0 %v602_v22 }
  0x19   :  { %550 = vmatpush3.bf16.msra.mxu1 %v603_v23  ;;  %529 = vmatprep.subr.bf16.mxu0 %v604_v24 }
  0x1a   :  { %551 = vmatprep.subr.bf16.mxu1 %v605_v25 }
  0x1c   :  { %530 = vmatpush3.bf16.msra.mxu0 %v606_v26 }
  0x1d   :  { %552 = vmatpush3.bf16.msra.mxu1 %v607_v27  ;;  %531 = vmatprep.subr.bf16.mxu0 %v608_v28 }
  0x1e   :  { %553 = vmatprep.subr.bf16.mxu1 %v609_v29 }
  0x20   :  { %532 = vmatpush3.bf16.msra.mxu0 %v610_v30 }
  0x21   :  { %554 = vmatpush3.bf16.msra.mxu1 %v611_v31  ;;  %566 = vmatprep.subr.bf16.mxu0 %v621_v36 }
  0x23   :  { %360 = vmatmul.mubr.bf16.vlgmr.msra.gmra.mrb[0].mxu0 %v475_v33 }
  0x24   :  { %400 = vmatmul.mubr.bf16.vlgmr.msra.gmra.mrb[0].mxu1 %v477_v37  ;;  %567 = vmatpush3.bf16.msra.mxu0 %v617_v39 }
  0x25   :  { %568 = vmatprep.subr.bf16.mxu0 %v621_v36  ;;  %574 = vmatprep.mubr.msk.bf16.mxu0 %vm622_vm0, %v621_v36 }
  0x28   :  { %569 = vmatpush3.bf16.msra.mxu0 %v618_v40 }
  0x29   :  { %570 = vmatprep.subr.bf16.mxu0 %v621_v36 }
  0x2c   :  { %571 = vmatpush3.bf16.msra.mxu0 %v619_v41 }
  0x2d   :  { %572 = vmatprep.subr.bf16.mxu0 %v621_v36 }
  0x30   :  { %573 = vmatpush3.bf16.msra.mxu0 %v620_v42 }
  0x33   :  { %575 = vmatmul.mubr.msk.bf16.vlgmr.msra.gmra.mrb[4].mxu0 %vm323_vm1, %v614_v43 }
  0xf6   :  { %v533_v44 = vpop.f32.mrb[0].mxu0 }
  0xf7   :  { %v555_v45 = vpop.f32.mrb[0].mxu1  ;;  %v534_v46 = vpop.f32.mrb[1].mxu0 }
  0xf8   :  { %v535_v47 = vadd.f32 %v534_v46, %v533_v44  ;;  %v556_v48 = vpop.f32.mrb[1].mxu1  ;;  %v536_v49 = vpop.f32.mrb[2].mxu0 }
  0xf9   :  { %v557_v50 = vadd.f32 %v556_v48, %v555_v45  ;;  %v537_v51 = vpop.f32.mrb[3].mxu0  ;;  %v558_v52 = vpop.f32.mrb[2].mxu1 }
  0xfa   :  { %v559_v53 = vpop.f32.mrb[3].mxu1 }
  0xfb   :  { %v402_v54 = vadd.f32 %v557_v50, %v535_v47 }
 0x106   :  { %v441_v55 = vpop.f32.mrb[4].mxu0 }
 0x107   :  { %v442_v56 = vadd.f32 %v441_v55, %v402_v54  ;;  %v576_v57 = vpop.f32.mrb[5].mxu0 }
 0x108   :  { %v444_v58 = vpop.f32.mrb[6].mxu0 }
 0x109   :  { %447 = vst [vmem:[%s776_s2] sm:$0xff] %v442_v56  ;;  %v448_v59 = vrot.slane %v442_v56, 4  ;;  %v455_v60 = vmul.f32 %v442_v56, %v442_v56  ;;  %v577_v61 = vpop.f32.mrb[7].mxu0 }
 0x10b   :  { %v449_v62 = vadd.f32 %v448_v59, %v442_v56  ;;  %v456_v63 = vrot.slane %v455_v60, 4 }
 0x10d   :  { %v450_v0 = vrot.slane %v449_v62, 2  ;;  %v457_v1 = vadd.f32 %v456_v63, %v455_v60 }
 0x10f   :  { %v451_v2 = vadd.f32 %v450_v0, %v449_v62  ;;  %v458_v3 = vrot.slane %v457_v1, 2 }
 0x111   :  { %v452_v4 = vrot.slane %v451_v2, 1  ;;  %v459_v5 = vadd.f32 %v458_v3, %v457_v1 }
 0x113   :  { %v453_v6 = vadd.f32 %v452_v4, %v451_v2  ;;  %v460_v7 = vrot.slane %v459_v5, 1 }
 0x115   :  { %454 = vst [vmem:[%s777_s3] sm:$0x1] %v453_v6  ;;  %v461_v8 = vadd.f32 %v460_v7, %v459_v5 }
 0x117   :  { %462 = vst [vmem:[%s778_s4] sm:$0x1] %v461_v8 }

// kernel: wide_resnet_forward.27
= control target key start
LH: loop header
LB: loop body
LE: loop exit
PB: predicated region body
PF: predicated region fallthrough
CT: control target
= control target key end

     0   :  { %s146_s0 = inlined_call_operand.vmem [shape: f32[2,4,128], index: 0, kind: input, shape index: {}]   ;;  %s147_s1 = inlined_call_operand.vmem [shape: f32[1,1,128], index: 1, kind: input, shape index: {}]   ;;  %s148_s2 = inlined_call_operand.vmem [shape: f32[1,1,128], index: 2, kind: input, shape index: {}]   ;;  %s149_s3 = inlined_call_operand.hbm [shape: f32[2,128], index: 3, kind: output, shape index: {}]  }
   0x1   :  { %v15_v0 = vld [vmem:[%s146_s0] sm:$0xf]  ;;  %v16_v1 = vld [vmem:[%s146_s0 + $0x4] sm:$0xf] }
   0x2   :  { %v74_v2 = vld [vmem:[%s147_s1] ss:$0 sm:$0xff] }
   0x3   :  { %v24_v3 = vmul.f32 %v74_v2, %v15_v0  ;;  %v25_v4 = vmul.f32 %v74_v2, %v16_v1  ;;  %v75_v5 = vld [vmem:[%s148_s2] ss:$0 sm:$0xff] }
   0x4   :  { %8 = vsyncpa [#allocation3], 0  ;;  %vm37_vm0 = vcmask 1043456   ;;  %s101_s0 = smov [#allocation2]   ;;  %vm56_vm1 = vcmask 1041409  }
   0x5   :  { %v33_v6 = vadd.f32 %v75_v5, %v24_v3  ;;  %v34_v7 = vadd.f32 %v75_v5, %v25_v4  ;;  %s66_s1 = sshll.u32 %s101_s0, 4  ;;  %s67_s1 = int_to_ptr.vmem [resolvable:$true] %s66_s1 }
   0x6   :  { %s77_s2 = scalar_lea.vmem %s67_s1, 32  ;;  %p82_p1 = scmp.lt.s32.totalorder %s67_s1, %s67_s1 }
   0x7   :  { %v35_v8 = vmax.f32 %v33_v6, 0.0  ;;  %v36_v9 = vmax.f32 %v34_v7, 0.0  ;;  %p78_p0 = scmp.ne.s32.totalorder %s67_s1, %s77_s2  ;;  %p83_p2 = scmp.lt.s32.totalorder %s77_s2, %s77_s2 }
   0x9   :  { %v38_v10 = vsel %vm37_vm0, %v35_v8, 0.0  ;;  %v45_v11 = vsel %vm37_vm0, %v36_v9, 0.0  ;;  %p84_p3 = por %p83_p2, %p82_p1 }
   0xa   :  { %v39_v12 = vrot.slane %v38_v10, 4  ;;  %v46_v13 = vrot.slane %v45_v11, 4 }
   0xb   :  { %p85_p4 = pnand %p84_p3, %p78_p0 }
   0xc   :  { %v40_v14 = vadd.f32 %v39_v12, %v38_v10  ;;  %v47_v15 = vadd.f32 %v46_v13, %v45_v11 }
   0xe   :  { %v41_v16 = vrot.slane %v40_v14, 2  ;;  %v48_v17 = vrot.slane %v47_v15, 2 }
  0x10   :  { %v42_v18 = vadd.f32 %v41_v16, %v40_v14  ;;  %v49_v19 = vadd.f32 %v48_v17, %v47_v15 }
  0x12   :  { %v43_v20 = vrot.slane %v42_v18, 1  ;;  %v50_v21 = vrot.slane %v49_v19, 1 }
  0x14   :  { %v44_v22 = vadd.f32 %v43_v20, %v42_v18  ;;  %v51_v23 = vadd.f32 %v50_v21, %v49_v19 }
  0x16   :  { %v52_v24 = vmul.f32 0.25, %v44_v22  ;;  %v53_v25 = vmul.f32 0.25, %v51_v23 }
  0x18   :  { %v57_v26 = vsel %vm56_vm1, %v53_v25, %v52_v24 }
  0x19   :  { %59 = vst [vmem:[#allocation2] sm:$0x3] %v57_v26 }
  0x1a   :  { %88 = shalt.err (!%p85_p4)
}
  0x1b   :  { %s89_s22 = scalar_lea.hbm %s149_s3, 32 }
  0x1c   :  { %p90_p5 = scmp.ne.s32.totalorder %s149_s3, %s89_s22  ;;  %p93_p6 = scmp.lt.u32.totalorder %s89_s22, %s149_s3 }
  0x1e   :  { %p95_p7 = pnand %p93_p6, %p90_p5 }
  0x20   :  { %98 = shalt.err (!%p95_p7)
}
  0x21   :  { %69 = dma.vmem_to_hbm [thread:$0]  %s67_s1, 32, %s149_s3, [#allocation3]  }
  0x22   :  { %99 = dma.done.wait [#allocation3], 32  }
  0x23   :  { %100 = vsyncadd [#allocation3], 4294967264 }
  0x24   :  { %73 = vsyncpa [#allocation3], 1 }

// kernel: wide_resnet_forward.26
= control target key start
LH: loop header
LB: loop body
LE: loop exit
PB: predicated region body
PF: predicated region fallthrough
CT: control target
= control target key end

     0   :  { %v1251_v0 = vmov 0.0   ;;  %vm1252_vm0 = vmmov 0   ;;  %vm203_vm1 = vcmask 523264   ;;  %s1559_s3 = inlined_call_operand.vmem [shape: bf16[64,128], index: 3, kind: input, shape index: {}]   ;;  %s1560_s1 = inlined_call_operand.vmem [shape: bf16[1152,128], index: 1, kind: input, shape index: {}]   ;;  %s1561_s2 = inlined_call_operand.vmem [shape: bf16[8,64], index: 2, kind: input, shape index: {}]   ;;  %s1562_s0 = inlined_call_operand.vmem [shape: bf16[8,1152], index: 0, kind: input, shape index: {}]   ;;  %s1563_s4 = inlined_call_operand.vmem [shape: f32[8,128], index: 4, kind: output, shape index: {0}]   ;;  %s1564_s5 = inlined_call_operand.vmem [shape: f32[1,1,128], index: 5, kind: output, shape index: {1}]   ;;  %s1565_s6 = inlined_call_operand.vmem [shape: f32[1,1,128], index: 6, kind: output, shape index: {2}]  }
   0x1   :  { %1127 = vmatprep.subr.bf16.mxu1 %v1251_v0  ;;  %v1166_v1 = vld [vmem:[%s1559_s3] sm:$0xff]   ;;  %1135 = vmatprep.mubr.msk.bf16.mxu1 %vm1252_vm0, %v1251_v0  ;;  %v1169_v4 = vld [vmem:[%s1559_s3 + $0x8] sm:$0xff]   ;;  %v1172_v7 = vld [vmem:[%s1559_s3 + $0x10] sm:$0xff]  }
   0x2   :  { %v1167_v2 = vld [vmem:[%s1560_s1 + $0xc0] sm:$0xff]   ;;  %1128 = vmatpush3.bf16.msra.mxu1 %v1166_v1  ;;  %v1170_v5 = vld [vmem:[%s1560_s1 + $0xc8] sm:$0xff]   ;;  %v1173_v8 = vld [vmem:[%s1560_s1 + $0xd0] sm:$0xff]  }
   0x3   :  { %v1168_v3 = vld [vmem:[%s1560_s1 + $0x80] sm:$0xff]   ;;  %1052 = vmatprep.subr.bf16.mxu0 %v1167_v2  ;;  %1129 = vmatprep.subr.bf16.mxu1 %v1251_v0  ;;  %v1171_v6 = vld [vmem:[%s1560_s1 + $0x88] sm:$0xff]   ;;  %v1174_v9 = vld [vmem:[%s1560_s1 + $0x90] sm:$0xff]  }
   0x4   :  { %1053 = vmatpush3.bf16.msra.mxu0 %v1168_v3  ;;  %v1175_v10 = vld [vmem:[%s1559_s3 + $0x18] sm:$0xff]   ;;  %v1178_v13 = vld [vmem:[%s1560_s1 + $0x40] sm:$0xff]   ;;  %v1182_v18 = vld [vmem:[%s1560_s1 + $0x48] sm:$0xff]  }
   0x5   :  { %1054 = vmatprep.subr.bf16.mxu0 %v1170_v5  ;;  %v1176_v11 = vld [vmem:[%s1560_s1 + $0xd8] sm:$0xff]   ;;  %v170_v14 = vld [vmem:[%s1561_s2] sm:$0xf]  ;;  %v1183_v19 = vld [vmem:[%s1560_s1 + $0x8] sm:$0xff]  }
   0x6   :  { %1130 = vmatpush3.bf16.msra.mxu1 %v1169_v4  ;;  %v1177_v12 = vld [vmem:[%s1560_s1 + $0x98] sm:$0xff]   ;;  %v1179_v15 = vld [vmem:[%s1560_s1] sm:$0xff]   ;;  %v1184_v20 = vld [vmem:[%s1560_s1 + $0xe8] sm:$0xff]  }
   0x7   :  { %1131 = vmatprep.subr.bf16.mxu1 %v1251_v0  ;;  %v1180_v16 = vld [vmem:[%s1560_s1 + $0xe0] sm:$0xff]   ;;  %v1185_v21 = vld [vmem:[%s1560_s1 + $0xa8] sm:$0xff]   ;;  %v1186_v22 = vld [vmem:[%s1560_s1 + $0x50] sm:$0xff]  }
   0x8   :  { %1055 = vmatpush3.bf16.msra.mxu0 %v1171_v6  ;;  %v1181_v17 = vld [vmem:[%s1560_s1 + $0xa0] sm:$0xff]   ;;  %v1187_v23 = vld [vmem:[%s1560_s1 + $0x10] sm:$0xff]   ;;  %v1190_v26 = vld [vmem:[%s1560_s1 + $0x58] sm:$0xff]  }
   0x9   :  { %1056 = vmatprep.subr.bf16.mxu0 %v1173_v8  ;;  %v1188_v24 = vld [vmem:[%s1560_s1 + $0xf0] sm:$0xff]   ;;  %v1191_v27 = vld [vmem:[%s1560_s1 + $0x18] sm:$0xff]   ;;  %v1194_v30 = vld [vmem:[%s1560_s1 + $0x60] sm:$0xff]  }
   0xa   :  { %1132 = vmatpush3.bf16.msra.mxu1 %v1172_v7  ;;  %v1189_v25 = vld [vmem:[%s1560_s1 + $0xb0] sm:$0xff]   ;;  %v1192_v28 = vld [vmem:[%s1560_s1 + $0xf8] sm:$0xff]   ;;  %v22_v31 = vld [vmem:[%s1562_s0 + $0x8] sm:$0xff] }
   0xb   :  { %1133 = vmatprep.subr.bf16.mxu1 %v1251_v0  ;;  %v1193_v29 = vld [vmem:[%s1560_s1 + $0xb8] sm:$0xff]   ;;  %v947_v32 = vcombine.high %v22_v31, %v22_v31  ;;  %v1197_v33 = vld [vmem:[%s1560_s1 + $0x20] sm:$0xff]   ;;  %v946_v34 = vcombine.low %v22_v31, %v22_v31  ;;  %v1200_v37 = vld [vmem:[%s1560_s1 + $0x68] sm:$0xff]  }
   0xc   :  { %1057 = vmatpush3.bf16.msra.mxu0 %v1174_v9  ;;  %v1198_v35 = vld [vmem:[%s1560_s1 + $0x1c0] sm:$0xff]   ;;  %v1201_v38 = vld [vmem:[%s1560_s1 + $0x28] sm:$0xff]   ;;  %v1204_v41 = vld [vmem:[%s1560_s1 + $0x70] sm:$0xff]  }
   0xd   :  { %1058 = vmatprep.subr.bf16.mxu0 %v1176_v11  ;;  %783 = vmatprep.mubr.bf16.mxu0 %v947_v32  ;;  %v1199_v36 = vld [vmem:[%s1560_s1 + $0x180] sm:$0xff]   ;;  %v1202_v39 = vld [vmem:[%s1560_s1 + $0x1c8] sm:$0xff]   ;;  %v1205_v42 = vld [vmem:[%s1560_s1 + $0x30] sm:$0xff]  }
   0xe   :  { %1134 = vmatpush3.bf16.msra.mxu1 %v1175_v10  ;;  %v1203_v40 = vld [vmem:[%s1560_s1 + $0x188] sm:$0xff]   ;;  %v1206_v43 = vld [vmem:[%s1560_s1 + $0x1d0] sm:$0xff]   ;;  %v1208_v45 = vld [vmem:[%s1560_s1 + $0x78] sm:$0xff]  }
   0xf   :  { %1030 = vmatprep.subr.bf16.mxu1 %v1178_v13  ;;  %v1207_v44 = vld [vmem:[%s1560_s1 + $0x190] sm:$0xff]   ;;  %v1209_v46 = vld [vmem:[%s1560_s1 + $0x38] sm:$0xff]   ;;  %v21_v49 = vld [vmem:[%s1562_s0] sm:$0xff] }
  0x10   :  { %1059 = vmatpush3.bf16.msra.mxu0 %v1177_v12  ;;  %v1210_v47 = vld [vmem:[%s1560_s1 + $0x1d8] sm:$0xff]   ;;  %v944_v50 = vcombine.low %v21_v49, %v21_v49  ;;  %v945_v51 = vcombine.high %v21_v49, %v21_v49  ;;  %v1214_v52 = vld [vmem:[%s1560_s1 + $0x140] sm:$0xff]   ;;  %v1218_v56 = vld [vmem:[%s1560_s1 + $0x148] sm:$0xff]  }
  0x11   :  { %1136 = vmatmul.mubr.msk.bf16.vlgmr.msra.gmra.mrb[0].mxu1 %vm203_vm1, %v170_v14  ;;  %1060 = vmatprep.subr.bf16.mxu0 %v1180_v16  ;;  %v1211_v48 = vld [vmem:[%s1560_s1 + $0x198] sm:$0xff]   ;;  %v1215_v53 = vld [vmem:[%s1560_s1 + $0x100] sm:$0xff]   ;;  %v1219_v57 = vld [vmem:[%s1560_s1 + $0x108] sm:$0xff]  }
  0x12   :  { %1031 = vmatpush3.bf16.msra.mxu1 %v1179_v15  ;;  %743 = vmatprep.mubr.bf16.mxu1 %v945_v51  ;;  %v1216_v54 = vld [vmem:[%s1560_s1 + $0x1e0] sm:$0xff]   ;;  %v1220_v58 = vld [vmem:[%s1560_s1 + $0x1e8] sm:$0xff]   ;;  %v1222_v60 = vld [vmem:[%s1560_s1 + $0x150] sm:$0xff]  }
  0x13   :  { %1032 = vmatprep.subr.bf16.mxu1 %v1182_v18  ;;  %v1217_v55 = vld [vmem:[%s1560_s1 + $0x1a0] sm:$0xff]   ;;  %v1221_v59 = vld [vmem:[%s1560_s1 + $0x1a8] sm:$0xff]   ;;  %v1223_v61 = vld [vmem:[%s1560_s1 + $0x110] sm:$0xff]  }
  0x14   :  { %1061 = vmatpush3.bf16.msra.mxu0 %v1181_v17  ;;  %v1224_v62 = vld [vmem:[%s1560_s1 + $0x1f0] sm:$0xff]   ;;  %v1226_v1 = vld [vmem:[%s1560_s1 + $0x158] sm:$0xff]   ;;  %v1230_v5 = vld [vmem:[%s1560_s1 + $0x160] sm:$0xff]  }
  0x15   :  { %1062 = vmatprep.subr.bf16.mxu0 %v1184_v20  ;;  %v1225_v63 = vld [vmem:[%s1560_s1 + $0x1b0] sm:$0xff]   ;;  %v1227_v2 = vld [vmem:[%s1560_s1 + $0x118] sm:$0xff]   ;;  %v1233_v9 = vld [vmem:[%s1560_s1 + $0x120] sm:$0xff]  }
  0x16   :  { %1033 = vmatpush3.bf16.msra.mxu1 %v1183_v19  ;;  %v1228_v3 = vld [vmem:[%s1560_s1 + $0x1f8] sm:$0xff]   ;;  %v1234_v10 = vld [vmem:[%s1560_s1 + $0x200] sm:$0xff]   ;;  %v1235_v11 = vld [vmem:[%s1560_s1 + $0x168] sm:$0xff]  }
  0x17   :  { %1034 = vmatprep.subr.bf16.mxu1 %v1186_v22  ;;  %v1229_v4 = vld [vmem:[%s1560_s1 + $0x1b8] sm:$0xff]   ;;  %v1236_v12 = vld [vmem:[%s1560_s1 + $0x128] sm:$0xff]   ;;  %v1238_v14 = vld [vmem:[%s1560_s1 + $0x170] sm:$0xff]  }
  0x18   :  { %1063 = vmatpush3.bf16.msra.mxu0 %v1185_v21  ;;  %v24_v6 = vld [vmem:[%s1562_s0 + $0x18] sm:$0xff]  ;;  %v1237_v13 = vld [vmem:[%s1560_s1 + $0x208] sm:$0xff]   ;;  %v1239_v15 = vld [vmem:[%s1560_s1 + $0x130] sm:$0xff]  }
  0x19   :  { %1064 = vmatprep.subr.bf16.mxu0 %v1188_v24  ;;  %v950_v7 = vcombine.low %v24_v6, %v24_v6  ;;  %v951_v8 = vcombine.high %v24_v6, %v24_v6  ;;  %v1241_v16 = vld [vmem:[%s1560_s1 + $0x178] sm:$0xff]   ;;  %v1240_v17 = vld [vmem:[%s1560_s1 + $0x210] sm:$0xff]   ;;  %v1247_v24 = vld [vmem:[%s1560_s1 + $0x228] sm:$0xff]  }
  0x1a   :  { %1035 = vmatpush3.bf16.msra.mxu1 %v1187_v23  ;;  %v23_v18 = vld [vmem:[%s1562_s0 + $0x10] sm:$0xff]  ;;  %v1242_v19 = vld [vmem:[%s1560_s1 + $0x138] sm:$0xff]   ;;  %v1246_v23 = vld [vmem:[%s1560_s1 + $0x220] sm:$0xff]  }
  0x1b   :  { %1036 = vmatprep.subr.bf16.mxu1 %v1190_v26  ;;  %v949_v20 = vcombine.high %v23_v18, %v23_v18  ;;  %v1243_v21 = vld [vmem:[%s1560_s1 + $0x218] sm:$0xff]   ;;  %v948_v22 = vcombine.low %v23_v18, %v23_v18 }
  0x1c   :  { %1065 = vmatpush3.bf16.msra.mxu0 %v1189_v25  ;;  %v1248_v25 = vld [vmem:[%s1560_s1 + $0x230] sm:$0xff]   ;;  %v1249_v26 = vld [vmem:[%s1560_s1 + $0x238] sm:$0xff]  }
  0x1d   :  { %1066 = vmatprep.subr.bf16.mxu0 %v1192_v28 }
  0x1e   :  { %1037 = vmatpush3.bf16.msra.mxu1 %v1191_v27  ;;  %v1250_v27 = vld [vmem:[%s1562_s0 + $0x20] ss:$0 sps:$4 sm:$0xff]  }
  0x1f   :  { %1038 = vmatprep.subr.bf16.mxu1 %v1194_v30 }
  0x20   :  { %1067 = vmatpush3.bf16.msra.mxu0 %v1193_v29 }
  0x21   :  { %1096 = vmatprep.subr.bf16.mxu0 %v1198_v35 }
  0x22   :  { %1039 = vmatpush3.bf16.msra.mxu1 %v1197_v33 }
  0x23   :  { %784 = vmatmul.mubr.bf16.vlgmr.msra.gmra.mrb[0].mxu0 %v946_v34  ;;  %1040 = vmatprep.subr.bf16.mxu1 %v1200_v37 }
  0x24   :  { %1097 = vmatpush3.bf16.msra.mxu0 %v1199_v36  ;;  %863 = vmatprep.mubr.bf16.mxu0 %v951_v8 }
  0x25   :  { %1098 = vmatprep.subr.bf16.mxu0 %v1202_v39 }
  0x26   :  { %1041 = vmatpush3.bf16.msra.mxu1 %v1201_v38 }
  0x27   :  { %1042 = vmatprep.subr.bf16.mxu1 %v1204_v41 }
  0x28   :  { %1099 = vmatpush3.bf16.msra.mxu0 %v1203_v40 }
  0x29   :  { %1100 = vmatprep.subr.bf16.mxu0 %v1206_v43 }
  0x2a   :  { %1043 = vmatpush3.bf16.msra.mxu1 %v1205_v42 }
  0x2b   :  { %1044 = vmatprep.subr.bf16.mxu1 %v1208_v45 }
  0x2c   :  { %1101 = vmatpush3.bf16.msra.mxu0 %v1207_v44 }
  0x2d   :  { %1102 = vmatprep.subr.bf16.mxu0 %v1210_v47 }
  0x2e   :  { %1045 = vmatpush3.bf16.msra.mxu1 %v1209_v46 }
  0x2f   :  { %1074 = vmatprep.subr.bf16.mxu1 %v1214_v52 }
  0x30   :  { %1103 = vmatpush3.bf16.msra.mxu0 %v1211_v48 }
  0x31   :  { %744 = vmatmul.mubr.bf16.vlgmr.msra.gmra.mrb[4].mxu1 %v944_v50  ;;  %1104 = vmatprep.subr.bf16.mxu0 %v1216_v54 }
  0x32   :  { %1075 = vmatpush3.bf16.msra.mxu1 %v1215_v53  ;;  %823 = vmatprep.mubr.bf16.mxu1 %v949_v20 }
  0x33   :  { %1076 = vmatprep.subr.bf16.mxu1 %v1218_v56 }
  0x34   :  { %1105 = vmatpush3.bf16.msra.mxu0 %v1217_v55 }
  0x35   :  { %1106 = vmatprep.subr.bf16.mxu0 %v1220_v58 }
  0x36   :  { %1077 = vmatpush3.bf16.msra.mxu1 %v1219_v57 }
  0x37   :  { %1078 = vmatprep.subr.bf16.mxu1 %v1222_v60 }
  0x38   :  { %1107 = vmatpush3.bf16.msra.mxu0 %v1221_v59 }
  0x39   :  { %1108 = vmatprep.subr.bf16.mxu0 %v1224_v62 }
  0x3a   :  { %1079 = vmatpush3.bf16.msra.mxu1 %v1223_v61 }
  0x3b   :  { %1080 = vmatprep.subr.bf16.mxu1 %v1226_v1 }
  0x3c   :  { %1109 = vmatpush3.bf16.msra.mxu0 %v1225_v63 }
  0x3d   :  { %1110 = vmatprep.subr.bf16.mxu0 %v1228_v3 }
  0x3e   :  { %1081 = vmatpush3.bf16.msra.mxu1 %v1227_v2 }
  0x3f   :  { %1082 = vmatprep.subr.bf16.mxu1 %v1230_v5 }
  0x40   :  { %1111 = vmatpush3.bf16.msra.mxu0 %v1229_v4 }
  0x41   :  { %1139 = vmatprep.subr.bf16.mxu0 %v1251_v0 }
  0x42   :  { %1083 = vmatpush3.bf16.msra.mxu1 %v1233_v9 }
  0x43   :  { %864 = vmatmul.mubr.bf16.vlgmr.msra.gmra.mrb[4].mxu0 %v950_v7  ;;  %1084 = vmatprep.subr.bf16.mxu1 %v1235_v11 }
  0x44   :  { %1140 = vmatpush3.bf16.msra.mxu0 %v1234_v10  ;;  %1155 = vmatprep.mubr.msk.bf16.mxu0 %vm1252_vm0, %v1251_v0 }
  0x45   :  { %1141 = vmatprep.subr.bf16.mxu0 %v1251_v0 }
  0x46   :  { %1085 = vmatpush3.bf16.msra.mxu1 %v1236_v12 }
  0x47   :  { %1086 = vmatprep.subr.bf16.mxu1 %v1238_v14 }
  0x48   :  { %1142 = vmatpush3.bf16.msra.mxu0 %v1237_v13 }
  0x49   :  { %1143 = vmatprep.subr.bf16.mxu0 %v1251_v0 }
  0x4a   :  { %1087 = vmatpush3.bf16.msra.mxu1 %v1239_v15 }
  0x4b   :  { %1088 = vmatprep.subr.bf16.mxu1 %v1241_v16 }
  0x4c   :  { %1144 = vmatpush3.bf16.msra.mxu0 %v1240_v17 }
  0x4d   :  { %1145 = vmatprep.subr.bf16.mxu0 %v1251_v0 }
  0x4e   :  { %1089 = vmatpush3.bf16.msra.mxu1 %v1242_v19 }
  0x50   :  { %1146 = vmatpush3.bf16.msra.mxu0 %v1243_v21 }
  0x51   :  { %824 = vmatmul.mubr.bf16.vlgmr.msra.gmra.mrb[8].mxu1 %v948_v22  ;;  %1147 = vmatprep.subr.bf16.mxu0 %v1251_v0 }
  0x54   :  { %1148 = vmatpush3.bf16.msra.mxu0 %v1246_v23 }
  0x55   :  { %1149 = vmatprep.subr.bf16.mxu0 %v1251_v0 }
  0x58   :  { %1150 = vmatpush3.bf16.msra.mxu0 %v1247_v24 }
  0x59   :  { %1151 = vmatprep.subr.bf16.mxu0 %v1251_v0 }
  0x5c   :  { %1152 = vmatpush3.bf16.msra.mxu0 %v1248_v25 }
  0x5d   :  { %1153 = vmatprep.subr.bf16.mxu0 %v1251_v0 }
  0x60   :  { %1154 = vmatpush3.bf16.msra.mxu0 %v1249_v26 }
  0x63   :  { %1156 = vmatmul.mubr.bf16.vlgmr.msra.gmra.mrb[8].mxu0 %v1250_v27 }
  0xe4   :  { %v241_v28 = vpop.f32.mrb[0].mxu1 }
  0xe5   :  { %v1137_v29 = vpop.f32.mrb[1].mxu1 }
  0xe6   :  { %v244_v30 = vpop.f32.mrb[2].mxu1 }
  0xe7   :  { %v1138_v31 = vpop.f32.mrb[3].mxu1 }
  0xf6   :  { %v1068_v32 = vpop.f32.mrb[0].mxu0 }
  0xf7   :  { %v1069_v33 = vpop.f32.mrb[1].mxu0 }
  0xf8   :  { %v1070_v34 = vadd.f32 %v1069_v33, %v1068_v32  ;;  %v1071_v35 = vpop.f32.mrb[2].mxu0 }
  0xf9   :  { %v1072_v36 = vpop.f32.mrb[3].mxu0 }
 0x104   :  { %v1046_v37 = vpop.f32.mrb[4].mxu1 }
 0x105   :  { %v1047_v38 = vpop.f32.mrb[5].mxu1 }
 0x106   :  { %v1048_v39 = vadd.f32 %v1047_v38, %v1046_v37  ;;  %v1049_v40 = vpop.f32.mrb[6].mxu1 }
 0x107   :  { %v1050_v0 = vpop.f32.mrb[7].mxu1 }
 0x108   :  { %v746_v41 = vadd.f32 %v1048_v39, %v241_v28 }
 0x10a   :  { %v786_v42 = vadd.f32 %v1070_v34, %v746_v41 }
 0x116   :  { %v1112_v43 = vpop.f32.mrb[4].mxu0 }
 0x117   :  { %v1113_v44 = vpop.f32.mrb[5].mxu0 }
 0x118   :  { %v1114_v45 = vadd.f32 %v1113_v44, %v1112_v43  ;;  %v1115_v46 = vpop.f32.mrb[6].mxu0 }
 0x119   :  { %v1116_v47 = vpop.f32.mrb[7].mxu0 }
 0x124   :  { %v1090_v48 = vpop.f32.mrb[8].mxu1 }
 0x125   :  { %v1091_v49 = vpop.f32.mrb[9].mxu1 }
 0x126   :  { %v1092_v50 = vadd.f32 %v1091_v49, %v1090_v48  ;;  %v1093_v51 = vpop.f32.mrb[10].mxu1 }
 0x127   :  { %v1094_v52 = vpop.f32.mrb[11].mxu1 }
 0x128   :  { %v826_v53 = vadd.f32 %v1092_v50, %v786_v42 }
 0x12a   :  { %v866_v54 = vadd.f32 %v1114_v45, %v826_v53 }
 0x136   :  { %v905_v55 = vpop.f32.mrb[8].mxu0 }
 0x137   :  { %v906_v56 = vadd.f32 %v905_v55, %v866_v54  ;;  %v1157_v57 = vpop.f32.mrb[9].mxu0 }
 0x138   :  { %v908_v58 = vpop.f32.mrb[10].mxu0 }
 0x139   :  { %911 = vst [vmem:[%s1563_s4] sm:$0xff] %v906_v56  ;;  %v912_v59 = vrot.slane %v906_v56, 4  ;;  %v919_v60 = vmul.f32 %v906_v56, %v906_v56  ;;  %v1158_v61 = vpop.f32.mrb[11].mxu0 }
 0x13b   :  { %v913_v62 = vadd.f32 %v912_v59, %v906_v56  ;;  %v920_v63 = vrot.slane %v919_v60, 4 }
 0x13d   :  { %v914_v1 = vrot.slane %v913_v62, 2  ;;  %v921_v2 = vadd.f32 %v920_v63, %v919_v60 }
 0x13f   :  { %v915_v3 = vadd.f32 %v914_v1, %v913_v62  ;;  %v922_v4 = vrot.slane %v921_v2, 2 }
 0x141   :  { %v916_v5 = vrot.slane %v915_v3, 1  ;;  %v923_v6 = vadd.f32 %v922_v4, %v921_v2 }
 0x143   :  { %v917_v7 = vadd.f32 %v916_v5, %v915_v3  ;;  %v924_v8 = vrot.slane %v923_v6, 1 }
 0x145   :  { %918 = vst [vmem:[%s1564_s5] sm:$0x1] %v917_v7  ;;  %v925_v9 = vadd.f32 %v924_v8, %v923_v6 }
 0x147   :  { %926 = vst [vmem:[%s1565_s6] sm:$0x1] %v925_v9 }

</bundles_post_ra>
